<compile_context>
chip_gen: v6e
topology: v6e:2x2x1
jax: 0.10.0
libtpu: 0.0.40
codegen_flags: <defaults>
</compile_context>

<pallas_src>
import functools

import jax
import jax.numpy as jnp
from jax.experimental import pallas as pl
from jax.experimental.pallas import tpu as pltpu


# --------------------------------------------------------------------------- #
# Small-parameter packing layout (LayerNorm gains/biases + linear biases)
# --------------------------------------------------------------------------- #

def _sp_layout(D, H):
    fields = [("n1g", D), ("n1b", D), ("n2qg", D), ("n2qb", D),
              ("n2kg", D), ("n2kb", D), ("n3g", D), ("n3b", D),
              ("qkv_b", 3 * D), ("sap_b", D), ("caq_b", D),
              ("cakv_b", 2 * D), ("cap_b", D), ("fc1_b", H), ("fc2_b", D)]
    lay, off = {}, 0
    for name, width in fields:
        lay[name] = (off, width)
        off += width
    return lay, off


# --------------------------------------------------------------------------- #
# In-kernel math helpers (traced inside the Pallas kernel body)
# --------------------------------------------------------------------------- #

def _ln(x, g, b, eps=1e-5):
    """LayerNorm over the last dim, f32 (torch.nn.LayerNorm default eps)."""
    mu = jnp.mean(x, axis=-1, keepdims=True)
    xc = x - mu
    var = jnp.mean(xc * xc, axis=-1, keepdims=True)
    return xc * jax.lax.rsqrt(var + eps) * g + b


def _softmax(s):
    """Row softmax in f32; denominator reciprocal on the EUP (free slot)."""
    s = s - jnp.max(s, axis=-1, keepdims=True)
    p = jnp.exp(s)
    return p * pl.reciprocal(jnp.sum(p, axis=-1, keepdims=True), approx=True)


def _mha_proj(q3, k3, v3, proj_w, num_heads):
    """Multi-head attention with the output projection folded per head.

    q3 (B,Lq,D) / k3,v3 (B,Lk,D) are bf16 (q pre-scaled by head_dim**-0.5 via
    the weights); proj_w is (D,D) bf16.  Returns (B,Lq,D) f32 equal to
    (concat_h softmax(q_h k_h^T) v_h) @ proj_w — without materializing the
    concat (no lane-sparse head-wide stores)."""
    D = q3.shape[-1]
    hd = D // num_heads
    acc = None
    for h in range(num_heads):                       # static head loop (reads only)
        sl = slice(h * hd, (h + 1) * hd)
        s = jnp.einsum('bqd,bkd->bqk', q3[..., sl], k3[..., sl],
                       preferred_element_type=jnp.float32)           # bf16 MXU, f32 acc
        p = _softmax(s).astype(jnp.bfloat16)                          # cast once
        o = jnp.einsum('bqk,bkd->bqd', p, v3[..., sl],
                       preferred_element_type=jnp.float32)            # (B,Lq,hd) f32
        part = jnp.dot(o.astype(jnp.bfloat16), proj_w[sl, :],
                       preferred_element_type=jnp.float32)            # (B,Lq,D)
        acc = part if acc is None else acc + part
    return acc


# --------------------------------------------------------------------------- #
# Fused decoder kernel: grid=(depth,), q carried in VMEM scratch
# --------------------------------------------------------------------------- #

def _cross_decoder_kernel(x_ref, peq_ref, pek_ref, pev_ref, pem_ref,
                          embw_ref, gpar_ref, spar_ref,
                          qkvw_ref, sapw_ref, caqw_ref, cakvw_ref, capw_ref,
                          fc1w_ref, fc2w_ref,
                          o_ref, q_scr, kv_scr, *, num_heads):
    B, Lm, D = q_scr.shape
    H = fc1w_ref.shape[-1]
    d = pl.program_id(0)

    g = gpar_ref[...]            # (1, 5D): [embed_b | mask_tok | cls_tok | norm_g | norm_b]

    # ---------------- prologue (depth step 0 only) -------------------------- #
    @pl.when(d == 0)
    def _prologue():
        emb_b = g[:, 0:D]
        mask_tk = g[:, D:2 * D]
        cls_tk = g[:, 2 * D:3 * D]
        # x = self.embed(x)  -- TODO(synk): embed_layer source not provided;
        # implemented as Linear(patch_dim -> D).
        x = jnp.dot(x_ref[...].astype(jnp.bfloat16), embw_ref[...],
                    preferred_element_type=jnp.float32) + emb_b       # (B, Lx, D)
        # kv = x + pos_embed(pid, cls=True)
        kv_scr[...] = x + pev_ref[...]
        # m = mask_token + mask_proj(pe_q, pe_k, x[:, 1:])
        # TODO(synk): CrossPositionAttentionStem source not provided; implemented
        # as single-head position cross-attention over the visible tokens.
        xv = x[:, 1:, :]
        s = jnp.einsum('bqd,bkd->bqk',
                       (peq_ref[...] * (D ** -0.5)).astype(jnp.bfloat16),
                       pek_ref[...].astype(jnp.bfloat16),
                       preferred_element_type=jnp.float32)
        p = _softmax(s).astype(jnp.bfloat16)
        mtok = jnp.einsum('bqk,bkd->bqd', p, xv.astype(jnp.bfloat16),
                          preferred_element_type=jnp.float32) + mask_tk
        # q0 = cat(cls_token, m) + pos_embed(mask_pid, cls=True)  (no concat:
        # two slice writes into the resident q scratch)
        pem = pem_ref[...]
        q_scr[:, 0:1, :] = cls_tk[None, :, :] + pem[:, 0:1, :]
        q_scr[:, 1:, :] = mtok + pem[:, 1:, :]

    # ---------------- one CrossBlock per grid step --------------------------- #
    sp = spar_ref[0]                       # (1, 17D+H) packed LN + bias vectors
    lay, _ = _sp_layout(D, H)

    def pv(name):                          # static lane slice of the packed params
        a, w = lay[name]
        return sp[:, a:a + w]

    q = q_scr[...]                         # (B, Lm, D) f32 residual stream
    kv = kv_scr[...]                       # (B, Lx, D) f32

    # q = q + self_attn(norm1(q))   (head_dim**-0.5 folded into qkv_w / qkv_b)
    qn = _ln(q, pv('n1g'), pv('n1b')).astype(jnp.bfloat16)
    qkv = (jnp.dot(qn, qkvw_ref[0], preferred_element_type=jnp.float32)
           + pv('qkv_b')).astype(jnp.bfloat16)                        # (B, Lm, 3D)
    sa = _mha_proj(qkv[..., :D], qkv[..., D:2 * D], qkv[..., 2 * D:],
                   sapw_ref[0], num_heads)
    q = q + sa + pv('sap_b')

    # q = q + cross_attn(norm2q(q), norm2kv(kv))
    qn = _ln(q, pv('n2qg'), pv('n2qb')).astype(jnp.bfloat16)
    kvn = _ln(kv, pv('n2kg'), pv('n2kb')).astype(jnp.bfloat16)
    qp = (jnp.dot(qn, caqw_ref[0], preferred_element_type=jnp.float32)
          + pv('caq_b')).astype(jnp.bfloat16)                         # (B, Lm, D)
    kvp = (jnp.dot(kvn, cakvw_ref[0], preferred_element_type=jnp.float32)
           + pv('cakv_b')).astype(jnp.bfloat16)                       # (B, Lx, 2D)
    ca = _mha_proj(qp, kvp[..., :D], kvp[..., D:], capw_ref[0], num_heads)
    q = q + ca + pv('cap_b')

    # q = q + mlp(norm3(q))
    qn = _ln(q, pv('n3g'), pv('n3b')).astype(jnp.bfloat16)
    h = jnp.dot(qn, fc1w_ref[0], preferred_element_type=jnp.float32) + pv('fc1_b')
    # TODO(synk): torch.nn.GELU defaults to exact erf; tanh approximation used
    # here for a clean TPU lowering (small numerical divergence).
    h = jax.nn.gelu(h, approximate=True).astype(jnp.bfloat16)
    q = q + jnp.dot(h, fc2w_ref[0], preferred_element_type=jnp.float32) + pv('fc2_b')

    q_scr[...] = q

    # ---------------- epilogue: final LayerNorm on the last layer ------------ #
    @pl.when(d == pl.num_programs(0) - 1)
    def _epilogue():
        o_ref[...] = _ln(q, g[:, 3 * D:4 * D], g[:, 4 * D:5 * D])


# --------------------------------------------------------------------------- #
# pallas_call wrapper
# --------------------------------------------------------------------------- #

def pallas_cross_decoder(params, x, pe_q, pe_k, pe_vis, pe_mask, *, num_heads):
    B, Lx, P = x.shape
    Lm = pe_mask.shape[1]
    depth = params["qkv_w"].shape[0]
    D = params["embed_w"].shape[1]

    def const_spec(shape):                         # grid-invariant: DMA'd once
        n = len(shape)
        return pl.BlockSpec(shape, lambda d, n=n: (0,) * n)

    def layer_spec(full_shape):                    # indexed by the depth coordinate
        blk = (1,) + tuple(full_shape[1:])
        pad = (0,) * (len(full_shape) - 1)
        return pl.BlockSpec(blk, lambda d, pad=pad: (d,) + pad)

    in_specs = [
        const_spec((B, Lx, P)),                    # pre-patchified tokens
        const_spec(tuple(pe_q.shape)),             # pos-embed of masked ids (no cls)
        const_spec(tuple(pe_k.shape)),             # pos-embed of visible ids (no cls)
        const_spec(tuple(pe_vis.shape)),           # pos-embed of visible ids (+cls)
        const_spec(tuple(pe_mask.shape)),          # pos-embed of masked ids (+cls)
        const_spec((P, D)),                        # embed weight (bf16)
        const_spec((1, 5 * D)),                    # packed globals
        layer_spec(params["small"].shape),         # packed per-layer LN/bias vectors
        layer_spec(params["qkv_w"].shape),
        layer_spec(params["sa_proj_w"].shape),
        layer_spec(params["ca_q_w"].shape),
        layer_spec(params["ca_kv_w"].shape),
        layer_spec(params["ca_proj_w"].shape),
        layer_spec(params["fc1_w"].shape),
        layer_spec(params["fc2_w"].shape),
    ]
    grid_spec = pltpu.PrefetchScalarGridSpec(
        num_scalar_prefetch=0,
        grid=(depth,),
        in_specs=in_specs,
        out_specs=pl.BlockSpec((B, Lm, D), lambda d: (0, 0, 0)),
        scratch_shapes=[pltpu.VMEM((B, Lm, D), jnp.float32),   # q residual carry
                        pltpu.VMEM((B, Lx, D), jnp.float32)],  # kv, resident
    )
    return pl.pallas_call(
        functools.partial(_cross_decoder_kernel, num_heads=num_heads),
        grid_spec=grid_spec,
        out_shape=jax.ShapeDtypeStruct((B, Lm, D), jnp.float32),
        compiler_params=pltpu.CompilerParams(
            dimension_semantics=("arbitrary",)),   # q carried across depth
    )(x, pe_q, pe_k, pe_vis, pe_mask,
      params["embed_w"], params["globals"], params["small"],
      params["qkv_w"], params["sa_proj_w"], params["ca_q_w"],
      params["ca_kv_w"], params["ca_proj_w"], params["fc1_w"], params["fc2_w"])


# --------------------------------------------------------------------------- #
# Model glue (only the data-dependent pos-embed gathers stay in plain XLA)
# --------------------------------------------------------------------------- #

def pos_embed(table, ids, cls=True):
    # table: (1 + num_patches, D); row 0 is the cls-token position embedding.
    # TODO(synk): AbsolutePositionEmbeds source not provided; learnable-table form.
    pe = jnp.take(table, 1 + ids, axis=0)                       # (B, L, D) gather
    if cls:
        B = ids.shape[0]
        cls_pe = jnp.broadcast_to(table[0][None, None, :], (B, 1, table.shape[1]))
        pe = jnp.concatenate([cls_pe, pe], axis=1)
    return pe


def cross_decoder_forward(params, x, pid, mask_pid, *, num_heads):
    table = params["pos_table"]
    pe_q = pos_embed(table, mask_pid, cls=False)
    pe_k = pos_embed(table, pid, cls=False)
    pe_vis = pos_embed(table, pid, cls=True)
    pe_mask = pos_embed(table, mask_pid, cls=True)
    # self.head is None in this synthetic config.
    return pallas_cross_decoder(params, x, pe_q, pe_k, pe_vis, pe_mask,
                                num_heads=num_heads)


# --------------------------------------------------------------------------- #
# Deterministic parameter construction (weights stored bf16, depth-stacked)
# --------------------------------------------------------------------------- #

def xavier(key, fan_in, fan_out):
    bound = (6.0 / (fan_in + fan_out)) ** 0.5
    return jax.random.uniform(key, (fan_in, fan_out), jnp.float32, -bound, bound)


def make_params(key, *, patch_dim, embed_dim, depth, num_heads, mlp_ratio,
                num_patches):
    D, H = embed_dim, int(embed_dim * mlp_ratio)
    hd = D // num_heads
    scale = hd ** -0.5
    lay, sp_len = _sp_layout(D, H)
    ki = iter(jax.random.split(key, 2 + depth * 7))

    # Packed per-layer small params (LN gamma=1, LN beta=0, linear biases=0 —
    # matches CrossDecoder._init_weights).  If biases were nonzero, the q-part
    # of qkv_b / caq_b would also be pre-scaled by head_dim**-0.5.
    sp = jnp.zeros((sp_len,), jnp.float32)
    for name in ("n1g", "n2qg", "n2kg", "n3g"):
        a, w = lay[name]
        sp = sp.at[a:a + w].set(1.0)
    small = jnp.broadcast_to(sp, (depth, 1, sp_len))

    def stack(maker):  # per-layer weights stacked along a leading depth axis
        return jnp.stack([maker(next(ki)) for _ in range(depth)]).astype(jnp.bfloat16)

    # Attention scale folded into the q projections (Similarity(head_dim)).
    qkv_w = stack(lambda k: xavier(k, D, 3 * D).at[:, :D].multiply(scale))
    sa_proj_w = stack(lambda k: xavier(k, D, D))
    ca_q_w = stack(lambda k: xavier(k, D, D) * scale)
    ca_kv_w = stack(lambda k: xavier(k, D, 2 * D))
    ca_proj_w = stack(lambda k: xavier(k, D, D))
    fc1_w = stack(lambda k: xavier(k, D, H))
    fc2_w = stack(lambda k: xavier(k, H, D))

    embed_w = xavier(next(ki), patch_dim, D).astype(jnp.bfloat16)
    cls_token = 0.02 * jax.random.normal(next(ki), (D,), jnp.float32)
    # packed globals: [embed_b | mask_token | cls_token | final norm_g | final norm_b]
    gl = jnp.concatenate([jnp.zeros((D,), jnp.float32),
                          jnp.zeros((D,), jnp.float32),
                          cls_token,
                          jnp.ones((D,), jnp.float32),
                          jnp.zeros((D,), jnp.float32)]).reshape(1, 5 * D)
    pos_table = 0.02 * jax.random.normal(jax.random.fold_in(key, 123),
                                         (1 + num_patches, D), jnp.float32)
    return dict(embed_w=embed_w, globals=gl, small=small, pos_table=pos_table,
                qkv_w=qkv_w, sa_proj_w=sa_proj_w, ca_q_w=ca_q_w,
                ca_kv_w=ca_kv_w, ca_proj_w=ca_proj_w, fc1_w=fc1_w, fc2_w=fc2_w)


# --------------------------------------------------------------------------- #
# Main
# --------------------------------------------------------------------------- #

if __name__ == "__main__":
    # Small synthetic config (scaled-down CrossDecoder):
    B = 2
    grid_hw = (4, 4)                     # grid_size -> 16 patch positions
    num_patches = grid_hw[0] * grid_hw[1]
    embed_dim = 32
    depth = 2
    num_heads = 4
    mlp_ratio = 4.0
    patch_dim = 48
    n_vis, n_mask = 8, 8                 # visible / masked positions

    key = jax.random.PRNGKey(0)
    k_par, k_x, k_perm = jax.random.split(key, 3)

    params = make_params(k_par, patch_dim=patch_dim, embed_dim=embed_dim,
                         depth=depth, num_heads=num_heads, mlp_ratio=mlp_ratio,
                         num_patches=num_patches)

    # Inputs: pre-patchified tokens (cls slot + n_vis visible patches), position ids.
    x = jax.random.normal(k_x, (B, n_vis + 1, patch_dim), jnp.float32)
    perms = jax.vmap(lambda k: jax.random.permutation(k, num_patches))(
        jax.random.split(k_perm, B))
    pid = perms[:, :n_vis].astype(jnp.int32)
    mask_pid = perms[:, n_vis:n_vis + n_mask].astype(jnp.int32)

    forward = jax.jit(functools.partial(cross_decoder_forward, num_heads=num_heads))
    out = jax.block_until_ready(forward(params, x, pid, mask_pid))

    assert out.shape == (B, n_mask + 1, embed_dim)
    assert bool(jnp.all(jnp.isfinite(out)))
    print("KERNEL_OK")
</pallas_src>

<mosaic_0001>
module attributes {stable_mosaic.version = 11 : i64} {
  func.func @_cross_decoder_kernel(%arg0: i32, %arg1: memref<2x9x48xf32, #tpu.memory_space<vmem>>, %arg2: memref<2x8x32xf32, #tpu.memory_space<vmem>>, %arg3: memref<2x8x32xf32, #tpu.memory_space<vmem>>, %arg4: memref<2x9x32xf32, #tpu.memory_space<vmem>>, %arg5: memref<2x9x32xf32, #tpu.memory_space<vmem>>, %arg6: memref<48x32xbf16, #tpu.memory_space<vmem>>, %arg7: memref<1x160xf32, #tpu.memory_space<vmem>>, %arg8: memref<1x1x672xf32, #tpu.memory_space<vmem>>, %arg9: memref<1x32x96xbf16, #tpu.memory_space<vmem>>, %arg10: memref<1x32x32xbf16, #tpu.memory_space<vmem>>, %arg11: memref<1x32x32xbf16, #tpu.memory_space<vmem>>, %arg12: memref<1x32x64xbf16, #tpu.memory_space<vmem>>, %arg13: memref<1x32x32xbf16, #tpu.memory_space<vmem>>, %arg14: memref<1x32x128xbf16, #tpu.memory_space<vmem>>, %arg15: memref<1x128x32xbf16, #tpu.memory_space<vmem>>, %arg16: memref<2x9x32xf32, #tpu.memory_space<vmem>>, %arg17: memref<2x9x32xf32, #tpu.memory_space<vmem>>, %arg18: memref<2x9x32xf32, #tpu.memory_space<vmem>>) attributes {dimension_semantics = [#tpu.dimension_semantics<arbitrary>], iteration_bounds = array<i64: 2>, scalar_prefetch = 0 : i64, scratch_operands = 2 : i64, tpu.core_type = #tpu.core_type<tc>, window_params = [{pipeline_mode = #tpu.pipeline_mode<synchronous>, transform_indices = @transform_0, window_bounds = array<i64: 2, 9, 48>}, {pipeline_mode = #tpu.pipeline_mode<synchronous>, transform_indices = @transform_1, window_bounds = array<i64: 2, 8, 32>}, {pipeline_mode = #tpu.pipeline_mode<synchronous>, transform_indices = @transform_2, window_bounds = array<i64: 2, 8, 32>}, {pipeline_mode = #tpu.pipeline_mode<synchronous>, transform_indices = @transform_3, window_bounds = array<i64: 2, 9, 32>}, {pipeline_mode = #tpu.pipeline_mode<synchronous>, transform_indices = @transform_4, window_bounds = array<i64: 2, 9, 32>}, {pipeline_mode = #tpu.pipeline_mode<synchronous>, transform_indices = @transform_5, window_bounds = array<i64: 48, 32>}, {pipeline_mode = #tpu.pipeline_mode<synchronous>, transform_indices = @transform_6, window_bounds = array<i64: 1, 160>}, {transform_indices = @transform_7, window_bounds = array<i64: 1, 1, 672>}, {transform_indices = @transform_8, window_bounds = array<i64: 1, 32, 96>}, {transform_indices = @transform_9, window_bounds = array<i64: 1, 32, 32>}, {transform_indices = @transform_10, window_bounds = array<i64: 1, 32, 32>}, {transform_indices = @transform_11, window_bounds = array<i64: 1, 32, 64>}, {transform_indices = @transform_12, window_bounds = array<i64: 1, 32, 32>}, {transform_indices = @transform_13, window_bounds = array<i64: 1, 32, 128>}, {transform_indices = @transform_14, window_bounds = array<i64: 1, 128, 32>}, {pipeline_mode = #tpu.pipeline_mode<synchronous>, transform_indices = @transform_15, window_bounds = array<i64: 2, 9, 32>}]} {
    %c0 = arith.constant 0 : index
    %c0_0 = arith.constant 0 : index
    %0 = vector.load %arg7[%c0, %c0_0] : memref<1x160xf32, #tpu.memory_space<vmem>>, vector<1x160xf32>
    %c0_i32 = arith.constant 0 : i32
    %1 = arith.cmpi eq, %arg0, %c0_i32 : i32
    %2 = arith.extui %1 : i1 to i32
    %c0_i32_1 = arith.constant 0 : i32
    %3 = arith.cmpi ne, %2, %c0_i32_1 : i32
    scf.if %3 {
      %342 = vector.extract_strided_slice %0 {offsets = [0, 0], sizes = [1, 32], strides = [1, 1]} : vector<1x160xf32> to vector<1x32xf32>
      %343 = vector.extract_strided_slice %0 {offsets = [0, 32], sizes = [1, 32], strides = [1, 1]} : vector<1x160xf32> to vector<1x32xf32>
      %344 = vector.extract_strided_slice %0 {offsets = [0, 64], sizes = [1, 32], strides = [1, 1]} : vector<1x160xf32> to vector<1x32xf32>
      %c0_104 = arith.constant 0 : index
      %c0_105 = arith.constant 0 : index
      %c0_106 = arith.constant 0 : index
      %345 = vector.load %arg1[%c0_104, %c0_105, %c0_106] : memref<2x9x48xf32, #tpu.memory_space<vmem>>, vector<2x9x48xf32>
      %346 = arith.truncf %345 : vector<2x9x48xf32> to vector<2x9x48xbf16>
      %c0_107 = arith.constant 0 : index
      %c0_108 = arith.constant 0 : index
      %347 = vector.load %arg6[%c0_107, %c0_108] : memref<48x32xbf16, #tpu.memory_space<vmem>>, vector<48x32xbf16>
      %cst_109 = arith.constant dense<0.000000e+00> : vector<2x9x32xf32>
      %348 = tpu.matmul %346, %347, %cst_109 {dimension_numbers = #tpu.dot_dimension_numbers<[2], [0], [0, 1], [1], [0, 0, 0, 1, 1, 1], [], []>} : vector<2x9x48xbf16>, vector<48x32xbf16>, vector<2x9x32xf32> -> vector<2x9x32xf32>
      %349 = vector.shape_cast %342 : vector<1x32xf32> to vector<1x1x32xf32>
      %350 = vector.broadcast %349 : vector<1x1x32xf32> to vector<2x9x32xf32>
      %351 = arith.addf %348, %350 : vector<2x9x32xf32>
      %c0_110 = arith.constant 0 : index
      %c0_111 = arith.constant 0 : index
      %c0_112 = arith.constant 0 : index
      %352 = vector.load %arg4[%c0_110, %c0_111, %c0_112] : memref<2x9x32xf32, #tpu.memory_space<vmem>>, vector<2x9x32xf32>
      %353 = arith.addf %351, %352 : vector<2x9x32xf32>
      %c0_113 = arith.constant 0 : index
      %c0_114 = arith.constant 0 : index
      %c0_115 = arith.constant 0 : index
      %354 = vector.load %arg18[%c0_113, %c0_114, %c0_115] : memref<2x9x32xf32, #tpu.memory_space<vmem>>, vector<2x9x32xf32>
      tpu.vector_store %arg18[%c0_113, %c0_114, %c0_115], %353 {strides = array<i32>} : memref<2x9x32xf32, #tpu.memory_space<vmem>>, vector<2x9x32xf32>,
      %355 = vector.extract_strided_slice %351 {offsets = [0, 1, 0], sizes = [2, 8, 32], strides = [1, 1, 1]} : vector<2x9x32xf32> to vector<2x8x32xf32>
      %c0_116 = arith.constant 0 : index
      %c0_117 = arith.constant 0 : index
      %c0_118 = arith.constant 0 : index
      %356 = vector.load %arg2[%c0_116, %c0_117, %c0_118] : memref<2x8x32xf32, #tpu.memory_space<vmem>>, vector<2x8x32xf32>
      %cst_119 = arith.constant 0.176776692 : f32
      %357 = vector.broadcast %cst_119 : f32 to vector<2x8x32xf32>
      %358 = arith.mulf %356, %357 : vector<2x8x32xf32>
      %359 = arith.truncf %358 : vector<2x8x32xf32> to vector<2x8x32xbf16>
      %c0_120 = arith.constant 0 : index
      %c0_121 = arith.constant 0 : index
      %c0_122 = arith.constant 0 : index
      %360 = vector.load %arg3[%c0_120, %c0_121, %c0_122] : memref<2x8x32xf32, #tpu.memory_space<vmem>>, vector<2x8x32xf32>
      %361 = arith.truncf %360 : vector<2x8x32xf32> to vector<2x8x32xbf16>
      "tpu.trace_start"() <{level = 10 : i32, message = "bqd,bkd->bqk"}> : () -> ()
      %cst_123 = arith.constant dense<0.000000e+00> : vector<2x8x8xf32>
      %362 = tpu.matmul %359, %361, %cst_123 {dimension_numbers = #tpu.dot_dimension_numbers<[2], [2], [1], [1], [0, 0, 0, 1, 1, 1], [0], [0]>} : vector<2x8x32xbf16>, vector<2x8x32xbf16>, vector<2x8x8xf32> -> vector<2x8x8xf32>
      "tpu.trace_stop"() : () -> ()
      %cst_124 = arith.constant dense<0xFF800000> : vector<2x8xf32>
      %363 = vector.multi_reduction <maximumf>, %362, %cst_124 [2] : vector<2x8x8xf32> to vector<2x8xf32>
      %364 = vector.shape_cast %363 : vector<2x8xf32> to vector<2x8x1xf32>
      %365 = vector.broadcast %364 : vector<2x8x1xf32> to vector<2x8x8xf32>
      %366 = arith.subf %362, %365 : vector<2x8x8xf32>
      %367 = math.exp %366 : vector<2x8x8xf32>
      %cst_125 = arith.constant dense<0.000000e+00> : vector<2x8xf32>
      %368 = vector.multi_reduction <add>, %367, %cst_125 [2] : vector<2x8x8xf32> to vector<2x8xf32>
      %369 = vector.shape_cast %368 : vector<2x8xf32> to vector<2x8x1xf32>
      %370 = tpu.reciprocal %369 {approx = true} : vector<2x8x1xf32> -> vector<2x8x1xf32>
      %371 = vector.broadcast %370 : vector<2x8x1xf32> to vector<2x8x8xf32>
      %372 = arith.mulf %367, %371 : vector<2x8x8xf32>
      %373 = arith.truncf %372 : vector<2x8x8xf32> to vector<2x8x8xbf16>
      %374 = arith.truncf %355 : vector<2x8x32xf32> to vector<2x8x32xbf16>
      "tpu.trace_start"() <{level = 10 : i32, message = "bqk,bkd->bqd"}> : () -> ()
      %cst_126 = arith.constant dense<0.000000e+00> : vector<2x8x32xf32>
      %375 = tpu.matmul %373, %374, %cst_126 {dimension_numbers = #tpu.dot_dimension_numbers<[2], [1], [1], [2], [0, 0, 0, 1, 1, 2], [0], [0]>} : vector<2x8x8xbf16>, vector<2x8x32xbf16>, vector<2x8x32xf32> -> vector<2x8x32xf32>
      "tpu.trace_stop"() : () -> ()
      %376 = vector.shape_cast %343 : vector<1x32xf32> to vector<1x1x32xf32>
      %377 = vector.broadcast %376 : vector<1x1x32xf32> to vector<2x8x32xf32>
      %378 = arith.addf %375, %377 : vector<2x8x32xf32>
      %c0_127 = arith.constant 0 : index
      %c0_128 = arith.constant 0 : index
      %c0_129 = arith.constant 0 : index
      %379 = vector.load %arg5[%c0_127, %c0_128, %c0_129] : memref<2x9x32xf32, #tpu.memory_space<vmem>>, vector<2x9x32xf32>
      %380 = vector.shape_cast %344 : vector<1x32xf32> to vector<1x1x32xf32>
      %381 = vector.extract_strided_slice %379 {offsets = [0, 0, 0], sizes = [2, 1, 32], strides = [1, 1, 1]} : vector<2x9x32xf32> to vector<2x1x32xf32>
      %382 = vector.broadcast %380 : vector<1x1x32xf32> to vector<2x1x32xf32>
      %383 = arith.addf %382, %381 : vector<2x1x32xf32>
      %c0_130 = arith.constant 0 : index
      %c0_131 = arith.constant 0 : index
      %c0_132 = arith.constant 0 : index
      %384 = vector.load %arg17[%c0_130, %c0_131, %c0_132] : memref<2x9x32xf32, #tpu.memory_space<vmem>>, vector<2x1x32xf32>
      tpu.vector_store %arg17[%c0_130, %c0_131, %c0_132], %383 {strides = array<i32>} : memref<2x9x32xf32, #tpu.memory_space<vmem>>, vector<2x1x32xf32>,
      %385 = vector.extract_strided_slice %379 {offsets = [0, 1, 0], sizes = [2, 8, 32], strides = [1, 1, 1]} : vector<2x9x32xf32> to vector<2x8x32xf32>
      %386 = arith.addf %378, %385 : vector<2x8x32xf32>
      %c0_133 = arith.constant 0 : index
      %c1 = arith.constant 1 : index
      %c0_134 = arith.constant 0 : index
      %387 = vector.load %arg17[%c0_133, %c1, %c0_134] : memref<2x9x32xf32, #tpu.memory_space<vmem>>, vector<2x8x32xf32>
      tpu.vector_store %arg17[%c0_133, %c1, %c0_134], %386 {strides = array<i32>} : memref<2x9x32xf32, #tpu.memory_space<vmem>>, vector<2x8x32xf32>,
    } else {
    }
    %c0_2 = arith.constant 0 : index
    %c0_3 = arith.constant 0 : index
    %c0_4 = arith.constant 0 : index
    %4 = vector.load %arg8[%c0_2, %c0_3, %c0_4] : memref<1x1x672xf32, #tpu.memory_space<vmem>>, vector<1x1x672xf32>
    %5 = vector.shape_cast %4 : vector<1x1x672xf32> to vector<1x672xf32>
    %c0_5 = arith.constant 0 : index
    %c0_6 = arith.constant 0 : index
    %c0_7 = arith.constant 0 : index
    %6 = vector.load %arg17[%c0_5, %c0_6, %c0_7] : memref<2x9x32xf32, #tpu.memory_space<vmem>>, vector<2x9x32xf32>
    %c0_8 = arith.constant 0 : index
    %c0_9 = arith.constant 0 : index
    %c0_10 = arith.constant 0 : index
    %7 = vector.load %arg18[%c0_8, %c0_9, %c0_10] : memref<2x9x32xf32, #tpu.memory_space<vmem>>, vector<2x9x32xf32>
    %8 = vector.extract_strided_slice %5 {offsets = [0, 0], sizes = [1, 32], strides = [1, 1]} : vector<1x672xf32> to vector<1x32xf32>
    %9 = vector.extract_strided_slice %5 {offsets = [0, 32], sizes = [1, 32], strides = [1, 1]} : vector<1x672xf32> to vector<1x32xf32>
    %cst = arith.constant dense<0.000000e+00> : vector<2x9xf32>
    %10 = vector.multi_reduction <add>, %6, %cst [2] : vector<2x9x32xf32> to vector<2x9xf32>
    %11 = vector.shape_cast %10 : vector<2x9xf32> to vector<2x9x1xf32>
    %cst_11 = arith.constant 3.200000e+01 : f32
    %12 = vector.broadcast %cst_11 : f32 to vector<2x9x1xf32>
    %13 = arith.divf %11, %12 : vector<2x9x1xf32>
    %14 = vector.broadcast %13 : vector<2x9x1xf32> to vector<2x9x32xf32>
    %15 = arith.subf %6, %14 : vector<2x9x32xf32>
    %16 = arith.mulf %15, %15 : vector<2x9x32xf32>
    %cst_12 = arith.constant dense<0.000000e+00> : vector<2x9xf32>
    %17 = vector.multi_reduction <add>, %16, %cst_12 [2] : vector<2x9x32xf32> to vector<2x9xf32>
    %18 = vector.shape_cast %17 : vector<2x9xf32> to vector<2x9x1xf32>
    %cst_13 = arith.constant 3.200000e+01 : f32
    %19 = vector.broadcast %cst_13 : f32 to vector<2x9x1xf32>
    %20 = arith.divf %18, %19 : vector<2x9x1xf32>
    %cst_14 = arith.constant 9.99999974E-6 : f32
    %21 = vector.broadcast %cst_14 : f32 to vector<2x9x1xf32>
    %22 = arith.addf %20, %21 : vector<2x9x1xf32>
    %23 = math.rsqrt %22 : vector<2x9x1xf32>
    %24 = vector.broadcast %23 : vector<2x9x1xf32> to vector<2x9x32xf32>
    %25 = arith.mulf %15, %24 : vector<2x9x32xf32>
    %26 = vector.shape_cast %8 : vector<1x32xf32> to vector<1x1x32xf32>
    %27 = vector.broadcast %26 : vector<1x1x32xf32> to vector<2x9x32xf32>
    %28 = arith.mulf %25, %27 : vector<2x9x32xf32>
    %29 = vector.shape_cast %9 : vector<1x32xf32> to vector<1x1x32xf32>
    %30 = vector.broadcast %29 : vector<1x1x32xf32> to vector<2x9x32xf32>
    %31 = arith.addf %28, %30 : vector<2x9x32xf32>
    %32 = arith.truncf %31 : vector<2x9x32xf32> to vector<2x9x32xbf16>
    %c0_15 = arith.constant 0 : index
    %c0_16 = arith.constant 0 : index
    %c0_17 = arith.constant 0 : index
    %33 = vector.load %arg9[%c0_15, %c0_16, %c0_17] : memref<1x32x96xbf16, #tpu.memory_space<vmem>>, vector<1x32x96xbf16>
    %34 = vector.shape_cast %33 : vector<1x32x96xbf16> to vector<32x96xbf16>
    %cst_18 = arith.constant dense<0.000000e+00> : vector<2x9x96xf32>
    %35 = tpu.matmul %32, %34, %cst_18 {dimension_numbers = #tpu.dot_dimension_numbers<[2], [0], [0, 1], [1], [0, 0, 0, 1, 1, 1], [], []>} : vector<2x9x32xbf16>, vector<32x96xbf16>, vector<2x9x96xf32> -> vector<2x9x96xf32>
    %36 = vector.extract_strided_slice %5 {offsets = [0, 256], sizes = [1, 96], strides = [1, 1]} : vector<1x672xf32> to vector<1x96xf32>
    %37 = vector.shape_cast %36 : vector<1x96xf32> to vector<1x1x96xf32>
    %38 = vector.broadcast %37 : vector<1x1x96xf32> to vector<2x9x96xf32>
    %39 = arith.addf %35, %38 : vector<2x9x96xf32>
    %40 = arith.truncf %39 : vector<2x9x96xf32> to vector<2x9x96xbf16>
    %41 = vector.extract_strided_slice %40 {offsets = [0, 0, 0], sizes = [2, 9, 32], strides = [1, 1, 1]} : vector<2x9x96xbf16> to vector<2x9x32xbf16>
    %42 = vector.extract_strided_slice %40 {offsets = [0, 0, 32], sizes = [2, 9, 32], strides = [1, 1, 1]} : vector<2x9x96xbf16> to vector<2x9x32xbf16>
    %43 = vector.extract_strided_slice %40 {offsets = [0, 0, 64], sizes = [2, 9, 32], strides = [1, 1, 1]} : vector<2x9x96xbf16> to vector<2x9x32xbf16>
    %c0_19 = arith.constant 0 : index
    %c0_20 = arith.constant 0 : index
    %c0_21 = arith.constant 0 : index
    %44 = vector.load %arg10[%c0_19, %c0_20, %c0_21] : memref<1x32x32xbf16, #tpu.memory_space<vmem>>, vector<1x32x32xbf16>
    %45 = vector.shape_cast %44 : vector<1x32x32xbf16> to vector<32x32xbf16>
    %46 = vector.extract_strided_slice %41 {offsets = [0, 0, 0], sizes = [2, 9, 8], strides = [1, 1, 1]} : vector<2x9x32xbf16> to vector<2x9x8xbf16>
    %47 = vector.extract_strided_slice %42 {offsets = [0, 0, 0], sizes = [2, 9, 8], strides = [1, 1, 1]} : vector<2x9x32xbf16> to vector<2x9x8xbf16>
    "tpu.trace_start"() <{level = 10 : i32, message = "bqd,bkd->bqk"}> : () -> ()
    %cst_22 = arith.constant dense<0.000000e+00> : vector<2x9x9xf32>
    %48 = tpu.matmul %46, %47, %cst_22 {dimension_numbers = #tpu.dot_dimension_numbers<[2], [2], [1], [1], [0, 0, 0, 1, 1, 1], [0], [0]>} : vector<2x9x8xbf16>, vector<2x9x8xbf16>, vector<2x9x9xf32> -> vector<2x9x9xf32>
    "tpu.trace_stop"() : () -> ()
    %cst_23 = arith.constant dense<0xFF800000> : vector<2x9xf32>
    %49 = vector.multi_reduction <maximumf>, %48, %cst_23 [2] : vector<2x9x9xf32> to vector<2x9xf32>
    %50 = vector.shape_cast %49 : vector<2x9xf32> to vector<2x9x1xf32>
    %51 = vector.broadcast %50 : vector<2x9x1xf32> to vector<2x9x9xf32>
    %52 = arith.subf %48, %51 : vector<2x9x9xf32>
    %53 = math.exp %52 : vector<2x9x9xf32>
    %cst_24 = arith.constant dense<0.000000e+00> : vector<2x9xf32>
    %54 = vector.multi_reduction <add>, %53, %cst_24 [2] : vector<2x9x9xf32> to vector<2x9xf32>
    %55 = vector.shape_cast %54 : vector<2x9xf32> to vector<2x9x1xf32>
    %56 = tpu.reciprocal %55 {approx = true} : vector<2x9x1xf32> -> vector<2x9x1xf32>
    %57 = vector.broadcast %56 : vector<2x9x1xf32> to vector<2x9x9xf32>
    %58 = arith.mulf %53, %57 : vector<2x9x9xf32>
    %59 = arith.truncf %58 : vector<2x9x9xf32> to vector<2x9x9xbf16>
    %60 = vector.extract_strided_slice %43 {offsets = [0, 0, 0], sizes = [2, 9, 8], strides = [1, 1, 1]} : vector<2x9x32xbf16> to vector<2x9x8xbf16>
    "tpu.trace_start"() <{level = 10 : i32, message = "bqk,bkd->bqd"}> : () -> ()
    %cst_25 = arith.constant dense<0.000000e+00> : vector<2x9x8xf32>
    %61 = tpu.matmul %59, %60, %cst_25 {dimension_numbers = #tpu.dot_dimension_numbers<[2], [1], [1], [2], [0, 0, 0, 1, 1, 2], [0], [0]>} : vector<2x9x9xbf16>, vector<2x9x8xbf16>, vector<2x9x8xf32> -> vector<2x9x8xf32>
    "tpu.trace_stop"() : () -> ()
    %62 = arith.truncf %61 : vector<2x9x8xf32> to vector<2x9x8xbf16>
    %63 = vector.extract_strided_slice %45 {offsets = [0, 0], sizes = [8, 32], strides = [1, 1]} : vector<32x32xbf16> to vector<8x32xbf16>
    %cst_26 = arith.constant dense<0.000000e+00> : vector<2x9x32xf32>
    %64 = tpu.matmul %62, %63, %cst_26 {dimension_numbers = #tpu.dot_dimension_numbers<[2], [0], [0, 1], [1], [0, 0, 0, 1, 1, 1], [], []>} : vector<2x9x8xbf16>, vector<8x32xbf16>, vector<2x9x32xf32> -> vector<2x9x32xf32>
    %65 = vector.extract_strided_slice %41 {offsets = [0, 0, 8], sizes = [2, 9, 8], strides = [1, 1, 1]} : vector<2x9x32xbf16> to vector<2x9x8xbf16>
    %66 = vector.extract_strided_slice %42 {offsets = [0, 0, 8], sizes = [2, 9, 8], strides = [1, 1, 1]} : vector<2x9x32xbf16> to vector<2x9x8xbf16>
    "tpu.trace_start"() <{level = 10 : i32, message = "bqd,bkd->bqk"}> : () -> ()
    %cst_27 = arith.constant dense<0.000000e+00> : vector<2x9x9xf32>
    %67 = tpu.matmul %65, %66, %cst_27 {dimension_numbers = #tpu.dot_dimension_numbers<[2], [2], [1], [1], [0, 0, 0, 1, 1, 1], [0], [0]>} : vector<2x9x8xbf16>, vector<2x9x8xbf16>, vector<2x9x9xf32> -> vector<2x9x9xf32>
    "tpu.trace_stop"() : () -> ()
    %cst_28 = arith.constant dense<0xFF800000> : vector<2x9xf32>
    %68 = vector.multi_reduction <maximumf>, %67, %cst_28 [2] : vector<2x9x9xf32> to vector<2x9xf32>
    %69 = vector.shape_cast %68 : vector<2x9xf32> to vector<2x9x1xf32>
    %70 = vector.broadcast %69 : vector<2x9x1xf32> to vector<2x9x9xf32>
    %71 = arith.subf %67, %70 : vector<2x9x9xf32>
    %72 = math.exp %71 : vector<2x9x9xf32>
    %cst_29 = arith.constant dense<0.000000e+00> : vector<2x9xf32>
    %73 = vector.multi_reduction <add>, %72, %cst_29 [2] : vector<2x9x9xf32> to vector<2x9xf32>
    %74 = vector.shape_cast %73 : vector<2x9xf32> to vector<2x9x1xf32>
    %75 = tpu.reciprocal %74 {approx = true} : vector<2x9x1xf32> -> vector<2x9x1xf32>
    %76 = vector.broadcast %75 : vector<2x9x1xf32> to vector<2x9x9xf32>
    %77 = arith.mulf %72, %76 : vector<2x9x9xf32>
    %78 = arith.truncf %77 : vector<2x9x9xf32> to vector<2x9x9xbf16>
    %79 = vector.extract_strided_slice %43 {offsets = [0, 0, 8], sizes = [2, 9, 8], strides = [1, 1, 1]} : vector<2x9x32xbf16> to vector<2x9x8xbf16>
    "tpu.trace_start"() <{level = 10 : i32, message = "bqk,bkd->bqd"}> : () -> ()
    %cst_30 = arith.constant dense<0.000000e+00> : vector<2x9x8xf32>
    %80 = tpu.matmul %78, %79, %cst_30 {dimension_numbers = #tpu.dot_dimension_numbers<[2], [1], [1], [2], [0, 0, 0, 1, 1, 2], [0], [0]>} : vector<2x9x9xbf16>, vector<2x9x8xbf16>, vector<2x9x8xf32> -> vector<2x9x8xf32>
    "tpu.trace_stop"() : () -> ()
    %81 = arith.truncf %80 : vector<2x9x8xf32> to vector<2x9x8xbf16>
    %82 = vector.extract_strided_slice %45 {offsets = [8, 0], sizes = [8, 32], strides = [1, 1]} : vector<32x32xbf16> to vector<8x32xbf16>
    %cst_31 = arith.constant dense<0.000000e+00> : vector<2x9x32xf32>
    %83 = tpu.matmul %81, %82, %cst_31 {dimension_numbers = #tpu.dot_dimension_numbers<[2], [0], [0, 1], [1], [0, 0, 0, 1, 1, 1], [], []>} : vector<2x9x8xbf16>, vector<8x32xbf16>, vector<2x9x32xf32> -> vector<2x9x32xf32>
    %84 = arith.addf %64, %83 : vector<2x9x32xf32>
    %85 = vector.extract_strided_slice %41 {offsets = [0, 0, 16], sizes = [2, 9, 8], strides = [1, 1, 1]} : vector<2x9x32xbf16> to vector<2x9x8xbf16>
    %86 = vector.extract_strided_slice %42 {offsets = [0, 0, 16], sizes = [2, 9, 8], strides = [1, 1, 1]} : vector<2x9x32xbf16> to vector<2x9x8xbf16>
    "tpu.trace_start"() <{level = 10 : i32, message = "bqd,bkd->bqk"}> : () -> ()
    %cst_32 = arith.constant dense<0.000000e+00> : vector<2x9x9xf32>
    %87 = tpu.matmul %85, %86, %cst_32 {dimension_numbers = #tpu.dot_dimension_numbers<[2], [2], [1], [1], [0, 0, 0, 1, 1, 1], [0], [0]>} : vector<2x9x8xbf16>, vector<2x9x8xbf16>, vector<2x9x9xf32> -> vector<2x9x9xf32>
    "tpu.trace_stop"() : () -> ()
    %cst_33 = arith.constant dense<0xFF800000> : vector<2x9xf32>
    %88 = vector.multi_reduction <maximumf>, %87, %cst_33 [2] : vector<2x9x9xf32> to vector<2x9xf32>
    %89 = vector.shape_cast %88 : vector<2x9xf32> to vector<2x9x1xf32>
    %90 = vector.broadcast %89 : vector<2x9x1xf32> to vector<2x9x9xf32>
    %91 = arith.subf %87, %90 : vector<2x9x9xf32>
    %92 = math.exp %91 : vector<2x9x9xf32>
    %cst_34 = arith.constant dense<0.000000e+00> : vector<2x9xf32>
    %93 = vector.multi_reduction <add>, %92, %cst_34 [2] : vector<2x9x9xf32> to vector<2x9xf32>
    %94 = vector.shape_cast %93 : vector<2x9xf32> to vector<2x9x1xf32>
    %95 = tpu.reciprocal %94 {approx = true} : vector<2x9x1xf32> -> vector<2x9x1xf32>
    %96 = vector.broadcast %95 : vector<2x9x1xf32> to vector<2x9x9xf32>
    %97 = arith.mulf %92, %96 : vector<2x9x9xf32>
    %98 = arith.truncf %97 : vector<2x9x9xf32> to vector<2x9x9xbf16>
    %99 = vector.extract_strided_slice %43 {offsets = [0, 0, 16], sizes = [2, 9, 8], strides = [1, 1, 1]} : vector<2x9x32xbf16> to vector<2x9x8xbf16>
    "tpu.trace_start"() <{level = 10 : i32, message = "bqk,bkd->bqd"}> : () -> ()
    %cst_35 = arith.constant dense<0.000000e+00> : vector<2x9x8xf32>
    %100 = tpu.matmul %98, %99, %cst_35 {dimension_numbers = #tpu.dot_dimension_numbers<[2], [1], [1], [2], [0, 0, 0, 1, 1, 2], [0], [0]>} : vector<2x9x9xbf16>, vector<2x9x8xbf16>, vector<2x9x8xf32> -> vector<2x9x8xf32>
    "tpu.trace_stop"() : () -> ()
    %101 = arith.truncf %100 : vector<2x9x8xf32> to vector<2x9x8xbf16>
    %102 = vector.extract_strided_slice %45 {offsets = [16, 0], sizes = [8, 32], strides = [1, 1]} : vector<32x32xbf16> to vector<8x32xbf16>
    %cst_36 = arith.constant dense<0.000000e+00> : vector<2x9x32xf32>
    %103 = tpu.matmul %101, %102, %cst_36 {dimension_numbers = #tpu.dot_dimension_numbers<[2], [0], [0, 1], [1], [0, 0, 0, 1, 1, 1], [], []>} : vector<2x9x8xbf16>, vector<8x32xbf16>, vector<2x9x32xf32> -> vector<2x9x32xf32>
    %104 = arith.addf %84, %103 : vector<2x9x32xf32>
    %105 = vector.extract_strided_slice %41 {offsets = [0, 0, 24], sizes = [2, 9, 8], strides = [1, 1, 1]} : vector<2x9x32xbf16> to vector<2x9x8xbf16>
    %106 = vector.extract_strided_slice %42 {offsets = [0, 0, 24], sizes = [2, 9, 8], strides = [1, 1, 1]} : vector<2x9x32xbf16> to vector<2x9x8xbf16>
    "tpu.trace_start"() <{level = 10 : i32, message = "bqd,bkd->bqk"}> : () -> ()
    %cst_37 = arith.constant dense<0.000000e+00> : vector<2x9x9xf32>
    %107 = tpu.matmul %105, %106, %cst_37 {dimension_numbers = #tpu.dot_dimension_numbers<[2], [2], [1], [1], [0, 0, 0, 1, 1, 1], [0], [0]>} : vector<2x9x8xbf16>, vector<2x9x8xbf16>, vector<2x9x9xf32> -> vector<2x9x9xf32>
    "tpu.trace_stop"() : () -> ()
    %cst_38 = arith.constant dense<0xFF800000> : vector<2x9xf32>
    %108 = vector.multi_reduction <maximumf>, %107, %cst_38 [2] : vector<2x9x9xf32> to vector<2x9xf32>
    %109 = vector.shape_cast %108 : vector<2x9xf32> to vector<2x9x1xf32>
    %110 = vector.broadcast %109 : vector<2x9x1xf32> to vector<2x9x9xf32>
    %111 = arith.subf %107, %110 : vector<2x9x9xf32>
    %112 = math.exp %111 : vector<2x9x9xf32>
    %cst_39 = arith.constant dense<0.000000e+00> : vector<2x9xf32>
    %113 = vector.multi_reduction <add>, %112, %cst_39 [2] : vector<2x9x9xf32> to vector<2x9xf32>
    %114 = vector.shape_cast %113 : vector<2x9xf32> to vector<2x9x1xf32>
    %115 = tpu.reciprocal %114 {approx = true} : vector<2x9x1xf32> -> vector<2x9x1xf32>
    %116 = vector.broadcast %115 : vector<2x9x1xf32> to vector<2x9x9xf32>
    %117 = arith.mulf %112, %116 : vector<2x9x9xf32>
    %118 = arith.truncf %117 : vector<2x9x9xf32> to vector<2x9x9xbf16>
    %119 = vector.extract_strided_slice %43 {offsets = [0, 0, 24], sizes = [2, 9, 8], strides = [1, 1, 1]} : vector<2x9x32xbf16> to vector<2x9x8xbf16>
    "tpu.trace_start"() <{level = 10 : i32, message = "bqk,bkd->bqd"}> : () -> ()
    %cst_40 = arith.constant dense<0.000000e+00> : vector<2x9x8xf32>
    %120 = tpu.matmul %118, %119, %cst_40 {dimension_numbers = #tpu.dot_dimension_numbers<[2], [1], [1], [2], [0, 0, 0, 1, 1, 2], [0], [0]>} : vector<2x9x9xbf16>, vector<2x9x8xbf16>, vector<2x9x8xf32> -> vector<2x9x8xf32>
    "tpu.trace_stop"() : () -> ()
    %121 = arith.truncf %120 : vector<2x9x8xf32> to vector<2x9x8xbf16>
    %122 = vector.extract_strided_slice %45 {offsets = [24, 0], sizes = [8, 32], strides = [1, 1]} : vector<32x32xbf16> to vector<8x32xbf16>
    %cst_41 = arith.constant dense<0.000000e+00> : vector<2x9x32xf32>
    %123 = tpu.matmul %121, %122, %cst_41 {dimension_numbers = #tpu.dot_dimension_numbers<[2], [0], [0, 1], [1], [0, 0, 0, 1, 1, 1], [], []>} : vector<2x9x8xbf16>, vector<8x32xbf16>, vector<2x9x32xf32> -> vector<2x9x32xf32>
    %124 = arith.addf %104, %123 : vector<2x9x32xf32>
    %125 = arith.addf %6, %124 : vector<2x9x32xf32>
    %126 = vector.extract_strided_slice %5 {offsets = [0, 352], sizes = [1, 32], strides = [1, 1]} : vector<1x672xf32> to vector<1x32xf32>
    %127 = vector.shape_cast %126 : vector<1x32xf32> to vector<1x1x32xf32>
    %128 = vector.broadcast %127 : vector<1x1x32xf32> to vector<2x9x32xf32>
    %129 = arith.addf %125, %128 : vector<2x9x32xf32>
    %130 = vector.extract_strided_slice %5 {offsets = [0, 64], sizes = [1, 32], strides = [1, 1]} : vector<1x672xf32> to vector<1x32xf32>
    %131 = vector.extract_strided_slice %5 {offsets = [0, 96], sizes = [1, 32], strides = [1, 1]} : vector<1x672xf32> to vector<1x32xf32>
    %cst_42 = arith.constant dense<0.000000e+00> : vector<2x9xf32>
    %132 = vector.multi_reduction <add>, %129, %cst_42 [2] : vector<2x9x32xf32> to vector<2x9xf32>
    %133 = vector.shape_cast %132 : vector<2x9xf32> to vector<2x9x1xf32>
    %cst_43 = arith.constant 3.200000e+01 : f32
    %134 = vector.broadcast %cst_43 : f32 to vector<2x9x1xf32>
    %135 = arith.divf %133, %134 : vector<2x9x1xf32>
    %136 = vector.broadcast %135 : vector<2x9x1xf32> to vector<2x9x32xf32>
    %137 = arith.subf %129, %136 : vector<2x9x32xf32>
    %138 = arith.mulf %137, %137 : vector<2x9x32xf32>
    %cst_44 = arith.constant dense<0.000000e+00> : vector<2x9xf32>
    %139 = vector.multi_reduction <add>, %138, %cst_44 [2] : vector<2x9x32xf32> to vector<2x9xf32>
    %140 = vector.shape_cast %139 : vector<2x9xf32> to vector<2x9x1xf32>
    %cst_45 = arith.constant 3.200000e+01 : f32
    %141 = vector.broadcast %cst_45 : f32 to vector<2x9x1xf32>
    %142 = arith.divf %140, %141 : vector<2x9x1xf32>
    %cst_46 = arith.constant 9.99999974E-6 : f32
    %143 = vector.broadcast %cst_46 : f32 to vector<2x9x1xf32>
    %144 = arith.addf %142, %143 : vector<2x9x1xf32>
    %145 = math.rsqrt %144 : vector<2x9x1xf32>
    %146 = vector.broadcast %145 : vector<2x9x1xf32> to vector<2x9x32xf32>
    %147 = arith.mulf %137, %146 : vector<2x9x32xf32>
    %148 = vector.shape_cast %130 : vector<1x32xf32> to vector<1x1x32xf32>
    %149 = vector.broadcast %148 : vector<1x1x32xf32> to vector<2x9x32xf32>
    %150 = arith.mulf %147, %149 : vector<2x9x32xf32>
    %151 = vector.shape_cast %131 : vector<1x32xf32> to vector<1x1x32xf32>
    %152 = vector.broadcast %151 : vector<1x1x32xf32> to vector<2x9x32xf32>
    %153 = arith.addf %150, %152 : vector<2x9x32xf32>
    %154 = arith.truncf %153 : vector<2x9x32xf32> to vector<2x9x32xbf16>
    %155 = vector.extract_strided_slice %5 {offsets = [0, 128], sizes = [1, 32], strides = [1, 1]} : vector<1x672xf32> to vector<1x32xf32>
    %156 = vector.extract_strided_slice %5 {offsets = [0, 160], sizes = [1, 32], strides = [1, 1]} : vector<1x672xf32> to vector<1x32xf32>
    %cst_47 = arith.constant dense<0.000000e+00> : vector<2x9xf32>
    %157 = vector.multi_reduction <add>, %7, %cst_47 [2] : vector<2x9x32xf32> to vector<2x9xf32>
    %158 = vector.shape_cast %157 : vector<2x9xf32> to vector<2x9x1xf32>
    %cst_48 = arith.constant 3.200000e+01 : f32
    %159 = vector.broadcast %cst_48 : f32 to vector<2x9x1xf32>
    %160 = arith.divf %158, %159 : vector<2x9x1xf32>
    %161 = vector.broadcast %160 : vector<2x9x1xf32> to vector<2x9x32xf32>
    %162 = arith.subf %7, %161 : vector<2x9x32xf32>
    %163 = arith.mulf %162, %162 : vector<2x9x32xf32>
    %cst_49 = arith.constant dense<0.000000e+00> : vector<2x9xf32>
    %164 = vector.multi_reduction <add>, %163, %cst_49 [2] : vector<2x9x32xf32> to vector<2x9xf32>
    %165 = vector.shape_cast %164 : vector<2x9xf32> to vector<2x9x1xf32>
    %cst_50 = arith.constant 3.200000e+01 : f32
    %166 = vector.broadcast %cst_50 : f32 to vector<2x9x1xf32>
    %167 = arith.divf %165, %166 : vector<2x9x1xf32>
    %cst_51 = arith.constant 9.99999974E-6 : f32
    %168 = vector.broadcast %cst_51 : f32 to vector<2x9x1xf32>
    %169 = arith.addf %167, %168 : vector<2x9x1xf32>
    %170 = math.rsqrt %169 : vector<2x9x1xf32>
    %171 = vector.broadcast %170 : vector<2x9x1xf32> to vector<2x9x32xf32>
    %172 = arith.mulf %162, %171 : vector<2x9x32xf32>
    %173 = vector.shape_cast %155 : vector<1x32xf32> to vector<1x1x32xf32>
    %174 = vector.broadcast %173 : vector<1x1x32xf32> to vector<2x9x32xf32>
    %175 = arith.mulf %172, %174 : vector<2x9x32xf32>
    %176 = vector.shape_cast %156 : vector<1x32xf32> to vector<1x1x32xf32>
    %177 = vector.broadcast %176 : vector<1x1x32xf32> to vector<2x9x32xf32>
    %178 = arith.addf %175, %177 : vector<2x9x32xf32>
    %179 = arith.truncf %178 : vector<2x9x32xf32> to vector<2x9x32xbf16>
    %c0_52 = arith.constant 0 : index
    %c0_53 = arith.constant 0 : index
    %c0_54 = arith.constant 0 : index
    %180 = vector.load %arg11[%c0_52, %c0_53, %c0_54] : memref<1x32x32xbf16, #tpu.memory_space<vmem>>, vector<1x32x32xbf16>
    %181 = vector.shape_cast %180 : vector<1x32x32xbf16> to vector<32x32xbf16>
    %cst_55 = arith.constant dense<0.000000e+00> : vector<2x9x32xf32>
    %182 = tpu.matmul %154, %181, %cst_55 {dimension_numbers = #tpu.dot_dimension_numbers<[2], [0], [0, 1], [1], [0, 0, 0, 1, 1, 1], [], []>} : vector<2x9x32xbf16>, vector<32x32xbf16>, vector<2x9x32xf32> -> vector<2x9x32xf32>
    %183 = vector.extract_strided_slice %5 {offsets = [0, 384], sizes = [1, 32], strides = [1, 1]} : vector<1x672xf32> to vector<1x32xf32>
    %184 = vector.shape_cast %183 : vector<1x32xf32> to vector<1x1x32xf32>
    %185 = vector.broadcast %184 : vector<1x1x32xf32> to vector<2x9x32xf32>
    %186 = arith.addf %182, %185 : vector<2x9x32xf32>
    %187 = arith.truncf %186 : vector<2x9x32xf32> to vector<2x9x32xbf16>
    %c0_56 = arith.constant 0 : index
    %c0_57 = arith.constant 0 : index
    %c0_58 = arith.constant 0 : index
    %188 = vector.load %arg12[%c0_56, %c0_57, %c0_58] : memref<1x32x64xbf16, #tpu.memory_space<vmem>>, vector<1x32x64xbf16>
    %189 = vector.shape_cast %188 : vector<1x32x64xbf16> to vector<32x64xbf16>
    %cst_59 = arith.constant dense<0.000000e+00> : vector<2x9x64xf32>
    %190 = tpu.matmul %179, %189, %cst_59 {dimension_numbers = #tpu.dot_dimension_numbers<[2], [0], [0, 1], [1], [0, 0, 0, 1, 1, 1], [], []>} : vector<2x9x32xbf16>, vector<32x64xbf16>, vector<2x9x64xf32> -> vector<2x9x64xf32>
    %191 = vector.extract_strided_slice %5 {offsets = [0, 416], sizes = [1, 64], strides = [1, 1]} : vector<1x672xf32> to vector<1x64xf32>
    %192 = vector.shape_cast %191 : vector<1x64xf32> to vector<1x1x64xf32>
    %193 = vector.broadcast %192 : vector<1x1x64xf32> to vector<2x9x64xf32>
    %194 = arith.addf %190, %193 : vector<2x9x64xf32>
    %195 = arith.truncf %194 : vector<2x9x64xf32> to vector<2x9x64xbf16>
    %196 = vector.extract_strided_slice %195 {offsets = [0, 0, 0], sizes = [2, 9, 32], strides = [1, 1, 1]} : vector<2x9x64xbf16> to vector<2x9x32xbf16>
    %197 = vector.extract_strided_slice %195 {offsets = [0, 0, 32], sizes = [2, 9, 32], strides = [1, 1, 1]} : vector<2x9x64xbf16> to vector<2x9x32xbf16>
    %c0_60 = arith.constant 0 : index
    %c0_61 = arith.constant 0 : index
    %c0_62 = arith.constant 0 : index
    %198 = vector.load %arg13[%c0_60, %c0_61, %c0_62] : memref<1x32x32xbf16, #tpu.memory_space<vmem>>, vector<1x32x32xbf16>
    %199 = vector.shape_cast %198 : vector<1x32x32xbf16> to vector<32x32xbf16>
    %200 = vector.extract_strided_slice %187 {offsets = [0, 0, 0], sizes = [2, 9, 8], strides = [1, 1, 1]} : vector<2x9x32xbf16> to vector<2x9x8xbf16>
    %201 = vector.extract_strided_slice %196 {offsets = [0, 0, 0], sizes = [2, 9, 8], strides = [1, 1, 1]} : vector<2x9x32xbf16> to vector<2x9x8xbf16>
    "tpu.trace_start"() <{level = 10 : i32, message = "bqd,bkd->bqk"}> : () -> ()
    %cst_63 = arith.constant dense<0.000000e+00> : vector<2x9x9xf32>
    %202 = tpu.matmul %200, %201, %cst_63 {dimension_numbers = #tpu.dot_dimension_numbers<[2], [2], [1], [1], [0, 0, 0, 1, 1, 1], [0], [0]>} : vector<2x9x8xbf16>, vector<2x9x8xbf16>, vector<2x9x9xf32> -> vector<2x9x9xf32>
    "tpu.trace_stop"() : () -> ()
    %cst_64 = arith.constant dense<0xFF800000> : vector<2x9xf32>
    %203 = vector.multi_reduction <maximumf>, %202, %cst_64 [2] : vector<2x9x9xf32> to vector<2x9xf32>
    %204 = vector.shape_cast %203 : vector<2x9xf32> to vector<2x9x1xf32>
    %205 = vector.broadcast %204 : vector<2x9x1xf32> to vector<2x9x9xf32>
    %206 = arith.subf %202, %205 : vector<2x9x9xf32>
    %207 = math.exp %206 : vector<2x9x9xf32>
    %cst_65 = arith.constant dense<0.000000e+00> : vector<2x9xf32>
    %208 = vector.multi_reduction <add>, %207, %cst_65 [2] : vector<2x9x9xf32> to vector<2x9xf32>
    %209 = vector.shape_cast %208 : vector<2x9xf32> to vector<2x9x1xf32>
    %210 = tpu.reciprocal %209 {approx = true} : vector<2x9x1xf32> -> vector<2x9x1xf32>
    %211 = vector.broadcast %210 : vector<2x9x1xf32> to vector<2x9x9xf32>
    %212 = arith.mulf %207, %211 : vector<2x9x9xf32>
    %213 = arith.truncf %212 : vector<2x9x9xf32> to vector<2x9x9xbf16>
    %214 = vector.extract_strided_slice %197 {offsets = [0, 0, 0], sizes = [2, 9, 8], strides = [1, 1, 1]} : vector<2x9x32xbf16> to vector<2x9x8xbf16>
    "tpu.trace_start"() <{level = 10 : i32, message = "bqk,bkd->bqd"}> : () -> ()
    %cst_66 = arith.constant dense<0.000000e+00> : vector<2x9x8xf32>
    %215 = tpu.matmul %213, %214, %cst_66 {dimension_numbers = #tpu.dot_dimension_numbers<[2], [1], [1], [2], [0, 0, 0, 1, 1, 2], [0], [0]>} : vector<2x9x9xbf16>, vector<2x9x8xbf16>, vector<2x9x8xf32> -> vector<2x9x8xf32>
    "tpu.trace_stop"() : () -> ()
    %216 = arith.truncf %215 : vector<2x9x8xf32> to vector<2x9x8xbf16>
    %217 = vector.extract_strided_slice %199 {offsets = [0, 0], sizes = [8, 32], strides = [1, 1]} : vector<32x32xbf16> to vector<8x32xbf16>
    %cst_67 = arith.constant dense<0.000000e+00> : vector<2x9x32xf32>
    %218 = tpu.matmul %216, %217, %cst_67 {dimension_numbers = #tpu.dot_dimension_numbers<[2], [0], [0, 1], [1], [0, 0, 0, 1, 1, 1], [], []>} : vector<2x9x8xbf16>, vector<8x32xbf16>, vector<2x9x32xf32> -> vector<2x9x32xf32>
    %219 = vector.extract_strided_slice %187 {offsets = [0, 0, 8], sizes = [2, 9, 8], strides = [1, 1, 1]} : vector<2x9x32xbf16> to vector<2x9x8xbf16>
    %220 = vector.extract_strided_slice %196 {offsets = [0, 0, 8], sizes = [2, 9, 8], strides = [1, 1, 1]} : vector<2x9x32xbf16> to vector<2x9x8xbf16>
    "tpu.trace_start"() <{level = 10 : i32, message = "bqd,bkd->bqk"}> : () -> ()
    %cst_68 = arith.constant dense<0.000000e+00> : vector<2x9x9xf32>
    %221 = tpu.matmul %219, %220, %cst_68 {dimension_numbers = #tpu.dot_dimension_numbers<[2], [2], [1], [1], [0, 0, 0, 1, 1, 1], [0], [0]>} : vector<2x9x8xbf16>, vector<2x9x8xbf16>, vector<2x9x9xf32> -> vector<2x9x9xf32>
    "tpu.trace_stop"() : () -> ()
    %cst_69 = arith.constant dense<0xFF800000> : vector<2x9xf32>
    %222 = vector.multi_reduction <maximumf>, %221, %cst_69 [2] : vector<2x9x9xf32> to vector<2x9xf32>
    %223 = vector.shape_cast %222 : vector<2x9xf32> to vector<2x9x1xf32>
    %224 = vector.broadcast %223 : vector<2x9x1xf32> to vector<2x9x9xf32>
    %225 = arith.subf %221, %224 : vector<2x9x9xf32>
    %226 = math.exp %225 : vector<2x9x9xf32>
    %cst_70 = arith.constant dense<0.000000e+00> : vector<2x9xf32>
    %227 = vector.multi_reduction <add>, %226, %cst_70 [2] : vector<2x9x9xf32> to vector<2x9xf32>
    %228 = vector.shape_cast %227 : vector<2x9xf32> to vector<2x9x1xf32>
    %229 = tpu.reciprocal %228 {approx = true} : vector<2x9x1xf32> -> vector<2x9x1xf32>
    %230 = vector.broadcast %229 : vector<2x9x1xf32> to vector<2x9x9xf32>
    %231 = arith.mulf %226, %230 : vector<2x9x9xf32>
    %232 = arith.truncf %231 : vector<2x9x9xf32> to vector<2x9x9xbf16>
    %233 = vector.extract_strided_slice %197 {offsets = [0, 0, 8], sizes = [2, 9, 8], strides = [1, 1, 1]} : vector<2x9x32xbf16> to vector<2x9x8xbf16>
    "tpu.trace_start"() <{level = 10 : i32, message = "bqk,bkd->bqd"}> : () -> ()
    %cst_71 = arith.constant dense<0.000000e+00> : vector<2x9x8xf32>
    %234 = tpu.matmul %232, %233, %cst_71 {dimension_numbers = #tpu.dot_dimension_numbers<[2], [1], [1], [2], [0, 0, 0, 1, 1, 2], [0], [0]>} : vector<2x9x9xbf16>, vector<2x9x8xbf16>, vector<2x9x8xf32> -> vector<2x9x8xf32>
    "tpu.trace_stop"() : () -> ()
    %235 = arith.truncf %234 : vector<2x9x8xf32> to vector<2x9x8xbf16>
    %236 = vector.extract_strided_slice %199 {offsets = [8, 0], sizes = [8, 32], strides = [1, 1]} : vector<32x32xbf16> to vector<8x32xbf16>
    %cst_72 = arith.constant dense<0.000000e+00> : vector<2x9x32xf32>
    %237 = tpu.matmul %235, %236, %cst_72 {dimension_numbers = #tpu.dot_dimension_numbers<[2], [0], [0, 1], [1], [0, 0, 0, 1, 1, 1], [], []>} : vector<2x9x8xbf16>, vector<8x32xbf16>, vector<2x9x32xf32> -> vector<2x9x32xf32>
    %238 = arith.addf %218, %237 : vector<2x9x32xf32>
    %239 = vector.extract_strided_slice %187 {offsets = [0, 0, 16], sizes = [2, 9, 8], strides = [1, 1, 1]} : vector<2x9x32xbf16> to vector<2x9x8xbf16>
    %240 = vector.extract_strided_slice %196 {offsets = [0, 0, 16], sizes = [2, 9, 8], strides = [1, 1, 1]} : vector<2x9x32xbf16> to vector<2x9x8xbf16>
    "tpu.trace_start"() <{level = 10 : i32, message = "bqd,bkd->bqk"}> : () -> ()
    %cst_73 = arith.constant dense<0.000000e+00> : vector<2x9x9xf32>
    %241 = tpu.matmul %239, %240, %cst_73 {dimension_numbers = #tpu.dot_dimension_numbers<[2], [2], [1], [1], [0, 0, 0, 1, 1, 1], [0], [0]>} : vector<2x9x8xbf16>, vector<2x9x8xbf16>, vector<2x9x9xf32> -> vector<2x9x9xf32>
    "tpu.trace_stop"() : () -> ()
    %cst_74 = arith.constant dense<0xFF800000> : vector<2x9xf32>
    %242 = vector.multi_reduction <maximumf>, %241, %cst_74 [2] : vector<2x9x9xf32> to vector<2x9xf32>
    %243 = vector.shape_cast %242 : vector<2x9xf32> to vector<2x9x1xf32>
    %244 = vector.broadcast %243 : vector<2x9x1xf32> to vector<2x9x9xf32>
    %245 = arith.subf %241, %244 : vector<2x9x9xf32>
    %246 = math.exp %245 : vector<2x9x9xf32>
    %cst_75 = arith.constant dense<0.000000e+00> : vector<2x9xf32>
    %247 = vector.multi_reduction <add>, %246, %cst_75 [2] : vector<2x9x9xf32> to vector<2x9xf32>
    %248 = vector.shape_cast %247 : vector<2x9xf32> to vector<2x9x1xf32>
    %249 = tpu.reciprocal %248 {approx = true} : vector<2x9x1xf32> -> vector<2x9x1xf32>
    %250 = vector.broadcast %249 : vector<2x9x1xf32> to vector<2x9x9xf32>
    %251 = arith.mulf %246, %250 : vector<2x9x9xf32>
    %252 = arith.truncf %251 : vector<2x9x9xf32> to vector<2x9x9xbf16>
    %253 = vector.extract_strided_slice %197 {offsets = [0, 0, 16], sizes = [2, 9, 8], strides = [1, 1, 1]} : vector<2x9x32xbf16> to vector<2x9x8xbf16>
    "tpu.trace_start"() <{level = 10 : i32, message = "bqk,bkd->bqd"}> : () -> ()
    %cst_76 = arith.constant dense<0.000000e+00> : vector<2x9x8xf32>
    %254 = tpu.matmul %252, %253, %cst_76 {dimension_numbers = #tpu.dot_dimension_numbers<[2], [1], [1], [2], [0, 0, 0, 1, 1, 2], [0], [0]>} : vector<2x9x9xbf16>, vector<2x9x8xbf16>, vector<2x9x8xf32> -> vector<2x9x8xf32>
    "tpu.trace_stop"() : () -> ()
    %255 = arith.truncf %254 : vector<2x9x8xf32> to vector<2x9x8xbf16>
    %256 = vector.extract_strided_slice %199 {offsets = [16, 0], sizes = [8, 32], strides = [1, 1]} : vector<32x32xbf16> to vector<8x32xbf16>
    %cst_77 = arith.constant dense<0.000000e+00> : vector<2x9x32xf32>
    %257 = tpu.matmul %255, %256, %cst_77 {dimension_numbers = #tpu.dot_dimension_numbers<[2], [0], [0, 1], [1], [0, 0, 0, 1, 1, 1], [], []>} : vector<2x9x8xbf16>, vector<8x32xbf16>, vector<2x9x32xf32> -> vector<2x9x32xf32>
    %258 = arith.addf %238, %257 : vector<2x9x32xf32>
    %259 = vector.extract_strided_slice %187 {offsets = [0, 0, 24], sizes = [2, 9, 8], strides = [1, 1, 1]} : vector<2x9x32xbf16> to vector<2x9x8xbf16>
    %260 = vector.extract_strided_slice %196 {offsets = [0, 0, 24], sizes = [2, 9, 8], strides = [1, 1, 1]} : vector<2x9x32xbf16> to vector<2x9x8xbf16>
    "tpu.trace_start"() <{level = 10 : i32, message = "bqd,bkd->bqk"}> : () -> ()
    %cst_78 = arith.constant dense<0.000000e+00> : vector<2x9x9xf32>
    %261 = tpu.matmul %259, %260, %cst_78 {dimension_numbers = #tpu.dot_dimension_numbers<[2], [2], [1], [1], [0, 0, 0, 1, 1, 1], [0], [0]>} : vector<2x9x8xbf16>, vector<2x9x8xbf16>, vector<2x9x9xf32> -> vector<2x9x9xf32>
    "tpu.trace_stop"() : () -> ()
    %cst_79 = arith.constant dense<0xFF800000> : vector<2x9xf32>
    %262 = vector.multi_reduction <maximumf>, %261, %cst_79 [2] : vector<2x9x9xf32> to vector<2x9xf32>
    %263 = vector.shape_cast %262 : vector<2x9xf32> to vector<2x9x1xf32>
    %264 = vector.broadcast %263 : vector<2x9x1xf32> to vector<2x9x9xf32>
    %265 = arith.subf %261, %264 : vector<2x9x9xf32>
    %266 = math.exp %265 : vector<2x9x9xf32>
    %cst_80 = arith.constant dense<0.000000e+00> : vector<2x9xf32>
    %267 = vector.multi_reduction <add>, %266, %cst_80 [2] : vector<2x9x9xf32> to vector<2x9xf32>
    %268 = vector.shape_cast %267 : vector<2x9xf32> to vector<2x9x1xf32>
    %269 = tpu.reciprocal %268 {approx = true} : vector<2x9x1xf32> -> vector<2x9x1xf32>
    %270 = vector.broadcast %269 : vector<2x9x1xf32> to vector<2x9x9xf32>
    %271 = arith.mulf %266, %270 : vector<2x9x9xf32>
    %272 = arith.truncf %271 : vector<2x9x9xf32> to vector<2x9x9xbf16>
    %273 = vector.extract_strided_slice %197 {offsets = [0, 0, 24], sizes = [2, 9, 8], strides = [1, 1, 1]} : vector<2x9x32xbf16> to vector<2x9x8xbf16>
    "tpu.trace_start"() <{level = 10 : i32, message = "bqk,bkd->bqd"}> : () -> ()
    %cst_81 = arith.constant dense<0.000000e+00> : vector<2x9x8xf32>
    %274 = tpu.matmul %272, %273, %cst_81 {dimension_numbers = #tpu.dot_dimension_numbers<[2], [1], [1], [2], [0, 0, 0, 1, 1, 2], [0], [0]>} : vector<2x9x9xbf16>, vector<2x9x8xbf16>, vector<2x9x8xf32> -> vector<2x9x8xf32>
    "tpu.trace_stop"() : () -> ()
    %275 = arith.truncf %274 : vector<2x9x8xf32> to vector<2x9x8xbf16>
    %276 = vector.extract_strided_slice %199 {offsets = [24, 0], sizes = [8, 32], strides = [1, 1]} : vector<32x32xbf16> to vector<8x32xbf16>
    %cst_82 = arith.constant dense<0.000000e+00> : vector<2x9x32xf32>
    %277 = tpu.matmul %275, %276, %cst_82 {dimension_numbers = #tpu.dot_dimension_numbers<[2], [0], [0, 1], [1], [0, 0, 0, 1, 1, 1], [], []>} : vector<2x9x8xbf16>, vector<8x32xbf16>, vector<2x9x32xf32> -> vector<2x9x32xf32>
    %278 = arith.addf %258, %277 : vector<2x9x32xf32>
    %279 = arith.addf %129, %278 : vector<2x9x32xf32>
    %280 = vector.extract_strided_slice %5 {offsets = [0, 480], sizes = [1, 32], strides = [1, 1]} : vector<1x672xf32> to vector<1x32xf32>
    %281 = vector.shape_cast %280 : vector<1x32xf32> to vector<1x1x32xf32>
    %282 = vector.broadcast %281 : vector<1x1x32xf32> to vector<2x9x32xf32>
    %283 = arith.addf %279, %282 : vector<2x9x32xf32>
    %284 = vector.extract_strided_slice %5 {offsets = [0, 192], sizes = [1, 32], strides = [1, 1]} : vector<1x672xf32> to vector<1x32xf32>
    %285 = vector.extract_strided_slice %5 {offsets = [0, 224], sizes = [1, 32], strides = [1, 1]} : vector<1x672xf32> to vector<1x32xf32>
    %cst_83 = arith.constant dense<0.000000e+00> : vector<2x9xf32>
    %286 = vector.multi_reduction <add>, %283, %cst_83 [2] : vector<2x9x32xf32> to vector<2x9xf32>
    %287 = vector.shape_cast %286 : vector<2x9xf32> to vector<2x9x1xf32>
    %cst_84 = arith.constant 3.200000e+01 : f32
    %288 = vector.broadcast %cst_84 : f32 to vector<2x9x1xf32>
    %289 = arith.divf %287, %288 : vector<2x9x1xf32>
    %290 = vector.broadcast %289 : vector<2x9x1xf32> to vector<2x9x32xf32>
    %291 = arith.subf %283, %290 : vector<2x9x32xf32>
    %292 = arith.mulf %291, %291 : vector<2x9x32xf32>
    %cst_85 = arith.constant dense<0.000000e+00> : vector<2x9xf32>
    %293 = vector.multi_reduction <add>, %292, %cst_85 [2] : vector<2x9x32xf32> to vector<2x9xf32>
    %294 = vector.shape_cast %293 : vector<2x9xf32> to vector<2x9x1xf32>
    %cst_86 = arith.constant 3.200000e+01 : f32
    %295 = vector.broadcast %cst_86 : f32 to vector<2x9x1xf32>
    %296 = arith.divf %294, %295 : vector<2x9x1xf32>
    %cst_87 = arith.constant 9.99999974E-6 : f32
    %297 = vector.broadcast %cst_87 : f32 to vector<2x9x1xf32>
    %298 = arith.addf %296, %297 : vector<2x9x1xf32>
    %299 = math.rsqrt %298 : vector<2x9x1xf32>
    %300 = vector.broadcast %299 : vector<2x9x1xf32> to vector<2x9x32xf32>
    %301 = arith.mulf %291, %300 : vector<2x9x32xf32>
    %302 = vector.shape_cast %284 : vector<1x32xf32> to vector<1x1x32xf32>
    %303 = vector.broadcast %302 : vector<1x1x32xf32> to vector<2x9x32xf32>
    %304 = arith.mulf %301, %303 : vector<2x9x32xf32>
    %305 = vector.shape_cast %285 : vector<1x32xf32> to vector<1x1x32xf32>
    %306 = vector.broadcast %305 : vector<1x1x32xf32> to vector<2x9x32xf32>
    %307 = arith.addf %304, %306 : vector<2x9x32xf32>
    %308 = arith.truncf %307 : vector<2x9x32xf32> to vector<2x9x32xbf16>
    %c0_88 = arith.constant 0 : index
    %c0_89 = arith.constant 0 : index
    %c0_90 = arith.constant 0 : index
    %309 = vector.load %arg14[%c0_88, %c0_89, %c0_90] : memref<1x32x128xbf16, #tpu.memory_space<vmem>>, vector<1x32x128xbf16>
    %310 = vector.shape_cast %309 : vector<1x32x128xbf16> to vector<32x128xbf16>
    %cst_91 = arith.constant dense<0.000000e+00> : vector<2x9x128xf32>
    %311 = tpu.matmul %308, %310, %cst_91 {dimension_numbers = #tpu.dot_dimension_numbers<[2], [0], [0, 1], [1], [0, 0, 0, 1, 1, 1], [], []>} : vector<2x9x32xbf16>, vector<32x128xbf16>, vector<2x9x128xf32> -> vector<2x9x128xf32>
    %312 = vector.extract_strided_slice %5 {offsets = [0, 512], sizes = [1, 128], strides = [1, 1]} : vector<1x672xf32> to vector<1x128xf32>
    %313 = vector.shape_cast %312 : vector<1x128xf32> to vector<1x1x128xf32>
    %314 = vector.broadcast %313 : vector<1x1x128xf32> to vector<2x9x128xf32>
    %315 = arith.addf %311, %314 : vector<2x9x128xf32>
    %316 = arith.mulf %315, %315 : vector<2x9x128xf32>
    %317 = arith.mulf %315, %316 : vector<2x9x128xf32>
    %cst_92 = arith.constant 4.471500e-02 : f32
    %318 = vector.broadcast %cst_92 : f32 to vector<2x9x128xf32>
    %319 = arith.mulf %318, %317 : vector<2x9x128xf32>
    %320 = arith.addf %315, %319 : vector<2x9x128xf32>
    %cst_93 = arith.constant 0.797884583 : f32
    %321 = vector.broadcast %cst_93 : f32 to vector<2x9x128xf32>
    %322 = arith.mulf %321, %320 : vector<2x9x128xf32>
    %323 = math.tanh %322 : vector<2x9x128xf32>
    %cst_94 = arith.constant 1.000000e+00 : f32
    %324 = vector.broadcast %cst_94 : f32 to vector<2x9x128xf32>
    %325 = arith.addf %324, %323 : vector<2x9x128xf32>
    %cst_95 = arith.constant 5.000000e-01 : f32
    %326 = vector.broadcast %cst_95 : f32 to vector<2x9x128xf32>
    %327 = arith.mulf %326, %325 : vector<2x9x128xf32>
    %328 = arith.mulf %315, %327 : vector<2x9x128xf32>
    %329 = arith.truncf %328 : vector<2x9x128xf32> to vector<2x9x128xbf16>
    %c0_96 = arith.constant 0 : index
    %c0_97 = arith.constant 0 : index
    %c0_98 = arith.constant 0 : index
    %330 = vector.load %arg15[%c0_96, %c0_97, %c0_98] : memref<1x128x32xbf16, #tpu.memory_space<vmem>>, vector<1x128x32xbf16>
    %331 = vector.shape_cast %330 : vector<1x128x32xbf16> to vector<128x32xbf16>
    %cst_99 = arith.constant dense<0.000000e+00> : vector<2x9x32xf32>
    %332 = tpu.matmul %329, %331, %cst_99 {dimension_numbers = #tpu.dot_dimension_numbers<[2], [0], [0, 1], [1], [0, 0, 0, 1, 1, 1], [], []>} : vector<2x9x128xbf16>, vector<128x32xbf16>, vector<2x9x32xf32> -> vector<2x9x32xf32>
    %333 = arith.addf %283, %332 : vector<2x9x32xf32>
    %334 = vector.extract_strided_slice %5 {offsets = [0, 640], sizes = [1, 32], strides = [1, 1]} : vector<1x672xf32> to vector<1x32xf32>
    %335 = vector.shape_cast %334 : vector<1x32xf32> to vector<1x1x32xf32>
    %336 = vector.broadcast %335 : vector<1x1x32xf32> to vector<2x9x32xf32>
    %337 = arith.addf %333, %336 : vector<2x9x32xf32>
    %c0_100 = arith.constant 0 : index
    %c0_101 = arith.constant 0 : index
    %c0_102 = arith.constant 0 : index
    %338 = vector.load %arg17[%c0_100, %c0_101, %c0_102] : memref<2x9x32xf32, #tpu.memory_space<vmem>>, vector<2x9x32xf32>
    tpu.vector_store %arg17[%c0_100, %c0_101, %c0_102], %337 {strides = array<i32>} : memref<2x9x32xf32, #tpu.memory_space<vmem>>, vector<2x9x32xf32>,
    %c1_i32 = arith.constant 1 : i32
    %339 = arith.cmpi eq, %arg0, %c1_i32 : i32
    %340 = arith.extui %339 : i1 to i32
    %c0_i32_103 = arith.constant 0 : i32
    %341 = arith.cmpi ne, %340, %c0_i32_103 : i32
    scf.if %341 {
      %342 = vector.extract_strided_slice %0 {offsets = [0, 96], sizes = [1, 32], strides = [1, 1]} : vector<1x160xf32> to vector<1x32xf32>
      %343 = vector.extract_strided_slice %0 {offsets = [0, 128], sizes = [1, 32], strides = [1, 1]} : vector<1x160xf32> to vector<1x32xf32>
      %cst_104 = arith.constant dense<0.000000e+00> : vector<2x9xf32>
      %344 = vector.multi_reduction <add>, %337, %cst_104 [2] : vector<2x9x32xf32> to vector<2x9xf32>
      %345 = vector.shape_cast %344 : vector<2x9xf32> to vector<2x9x1xf32>
      %cst_105 = arith.constant 3.200000e+01 : f32
      %346 = vector.broadcast %cst_105 : f32 to vector<2x9x1xf32>
      %347 = arith.divf %345, %346 : vector<2x9x1xf32>
      %348 = vector.broadcast %347 : vector<2x9x1xf32> to vector<2x9x32xf32>
      %349 = arith.subf %337, %348 : vector<2x9x32xf32>
      %350 = arith.mulf %349, %349 : vector<2x9x32xf32>
      %cst_106 = arith.constant dense<0.000000e+00> : vector<2x9xf32>
      %351 = vector.multi_reduction <add>, %350, %cst_106 [2] : vector<2x9x32xf32> to vector<2x9xf32>
      %352 = vector.shape_cast %351 : vector<2x9xf32> to vector<2x9x1xf32>
      %cst_107 = arith.constant 3.200000e+01 : f32
      %353 = vector.broadcast %cst_107 : f32 to vector<2x9x1xf32>
      %354 = arith.divf %352, %353 : vector<2x9x1xf32>
      %cst_108 = arith.constant 9.99999974E-6 : f32
      %355 = vector.broadcast %cst_108 : f32 to vector<2x9x1xf32>
      %356 = arith.addf %354, %355 : vector<2x9x1xf32>
      %357 = math.rsqrt %356 : vector<2x9x1xf32>
      %358 = vector.broadcast %357 : vector<2x9x1xf32> to vector<2x9x32xf32>
      %359 = arith.mulf %349, %358 : vector<2x9x32xf32>
      %360 = vector.shape_cast %342 : vector<1x32xf32> to vector<1x1x32xf32>
      %361 = vector.broadcast %360 : vector<1x1x32xf32> to vector<2x9x32xf32>
      %362 = arith.mulf %359, %361 : vector<2x9x32xf32>
      %363 = vector.shape_cast %343 : vector<1x32xf32> to vector<1x1x32xf32>
      %364 = vector.broadcast %363 : vector<1x1x32xf32> to vector<2x9x32xf32>
      %365 = arith.addf %362, %364 : vector<2x9x32xf32>
      %c0_109 = arith.constant 0 : index
      %c0_110 = arith.constant 0 : index
      %c0_111 = arith.constant 0 : index
      %366 = vector.load %arg16[%c0_109, %c0_110, %c0_111] : memref<2x9x32xf32, #tpu.memory_space<vmem>>, vector<2x9x32xf32>
      tpu.vector_store %arg16[%c0_109, %c0_110, %c0_111], %365 {strides = array<i32>} : memref<2x9x32xf32, #tpu.memory_space<vmem>>, vector<2x9x32xf32>,
    } else {
    }
    return
  }
  func.func @transform_0(%arg0: i32) -> (i32, i32, i32) {
    %c0_i32 = arith.constant 0 : i32
    %c0_i32_0 = arith.constant 0 : i32
    %c0_i32_1 = arith.constant 0 : i32
    %c0_i32_2 = arith.constant 0 : i32
    return %c0_i32, %c0_i32_0, %c0_i32_1 : i32, i32, i32
  }
  func.func @transform_1(%arg0: i32) -> (i32, i32, i32) {
    %c0_i32 = arith.constant 0 : i32
    %c0_i32_0 = arith.constant 0 : i32
    %c0_i32_1 = arith.constant 0 : i32
    %c0_i32_2 = arith.constant 0 : i32
    return %c0_i32, %c0_i32_0, %c0_i32_1 : i32, i32, i32
  }
  func.func @transform_2(%arg0: i32) -> (i32, i32, i32) {
    %c0_i32 = arith.constant 0 : i32
    %c0_i32_0 = arith.constant 0 : i32
    %c0_i32_1 = arith.constant 0 : i32
    %c0_i32_2 = arith.constant 0 : i32
    return %c0_i32, %c0_i32_0, %c0_i32_1 : i32, i32, i32
  }
  func.func @transform_3(%arg0: i32) -> (i32, i32, i32) {
    %c0_i32 = arith.constant 0 : i32
    %c0_i32_0 = arith.constant 0 : i32
    %c0_i32_1 = arith.constant 0 : i32
    %c0_i32_2 = arith.constant 0 : i32
    return %c0_i32, %c0_i32_0, %c0_i32_1 : i32, i32, i32
  }
  func.func @transform_4(%arg0: i32) -> (i32, i32, i32) {
    %c0_i32 = arith.constant 0 : i32
    %c0_i32_0 = arith.constant 0 : i32
    %c0_i32_1 = arith.constant 0 : i32
    %c0_i32_2 = arith.constant 0 : i32
    return %c0_i32, %c0_i32_0, %c0_i32_1 : i32, i32, i32
  }
  func.func @transform_5(%arg0: i32) -> (i32, i32) {
    %c0_i32 = arith.constant 0 : i32
    %c0_i32_0 = arith.constant 0 : i32
    %c0_i32_1 = arith.constant 0 : i32
    return %c0_i32, %c0_i32_0 : i32, i32
  }
  func.func @transform_6(%arg0: i32) -> (i32, i32) {
    %c0_i32 = arith.constant 0 : i32
    %c0_i32_0 = arith.constant 0 : i32
    %c0_i32_1 = arith.constant 0 : i32
    return %c0_i32, %c0_i32_0 : i32, i32
  }
  func.func @transform_7(%arg0: i32) -> (i32, i32, i32) {
    %c0_i32 = arith.constant 0 : i32
    %c0_i32_0 = arith.constant 0 : i32
    %c0_i32_1 = arith.constant 0 : i32
    return %arg0, %c0_i32, %c0_i32_0 : i32, i32, i32
  }
  func.func @transform_8(%arg0: i32) -> (i32, i32, i32) {
    %c0_i32 = arith.constant 0 : i32
    %c0_i32_0 = arith.constant 0 : i32
    %c0_i32_1 = arith.constant 0 : i32
    return %arg0, %c0_i32, %c0_i32_0 : i32, i32, i32
  }
  func.func @transform_9(%arg0: i32) -> (i32, i32, i32) {
    %c0_i32 = arith.constant 0 : i32
    %c0_i32_0 = arith.constant 0 : i32
    %c0_i32_1 = arith.constant 0 : i32
    return %arg0, %c0_i32, %c0_i32_0 : i32, i32, i32
  }
  func.func @transform_10(%arg0: i32) -> (i32, i32, i32) {
    %c0_i32 = arith.constant 0 : i32
    %c0_i32_0 = arith.constant 0 : i32
    %c0_i32_1 = arith.constant 0 : i32
    return %arg0, %c0_i32, %c0_i32_0 : i32, i32, i32
  }
  func.func @transform_11(%arg0: i32) -> (i32, i32, i32) {
    %c0_i32 = arith.constant 0 : i32
    %c0_i32_0 = arith.constant 0 : i32
    %c0_i32_1 = arith.constant 0 : i32
    return %arg0, %c0_i32, %c0_i32_0 : i32, i32, i32
  }
  func.func @transform_12(%arg0: i32) -> (i32, i32, i32) {
    %c0_i32 = arith.constant 0 : i32
    %c0_i32_0 = arith.constant 0 : i32
    %c0_i32_1 = arith.constant 0 : i32
    return %arg0, %c0_i32, %c0_i32_0 : i32, i32, i32
  }
  func.func @transform_13(%arg0: i32) -> (i32, i32, i32) {
    %c0_i32 = arith.constant 0 : i32
    %c0_i32_0 = arith.constant 0 : i32
    %c0_i32_1 = arith.constant 0 : i32
    return %arg0, %c0_i32, %c0_i32_0 : i32, i32, i32
  }
  func.func @transform_14(%arg0: i32) -> (i32, i32, i32) {
    %c0_i32 = arith.constant 0 : i32
    %c0_i32_0 = arith.constant 0 : i32
    %c0_i32_1 = arith.constant 0 : i32
    return %arg0, %c0_i32, %c0_i32_0 : i32, i32, i32
  }
  func.func @transform_15(%arg0: i32) -> (i32, i32, i32) {
    %c0_i32 = arith.constant 0 : i32
    %c0_i32_0 = arith.constant 0 : i32
    %c0_i32_1 = arith.constant 0 : i32
    %c0_i32_2 = arith.constant 0 : i32
    return %c0_i32, %c0_i32_0, %c0_i32_1 : i32, i32, i32
  }
}

</mosaic_0001>

<bundles_post_ra>
// kernel: cross_decoder_forward.1
= control target key start
LH: loop header
LB: loop body
LE: loop exit
PB: predicated region body
PF: predicated region fallthrough
CT: control target
= control target key end

     0   :  { %s11961_s18 = smov 0   ;;  %s13908_s0 = inlined_call_operand.vmem [shape: f32[2,9,48], index: 0, kind: input, shape index: {}]   ;;  %s13909_s1 = inlined_call_operand.vmem [shape: f32[2,8,32], index: 1, kind: input, shape index: {}]   ;;  %s13910_s2 = inlined_call_operand.vmem [shape: f32[2,8,32], index: 2, kind: input, shape index: {}]   ;;  %s13911_s3 = inlined_call_operand.vmem [shape: f32[2,9,32], index: 3, kind: input, shape index: {}]   ;;  %s13912_s4 = inlined_call_operand.vmem [shape: f32[2,9,32], index: 4, kind: input, shape index: {}]   ;;  %s13913_s5 = inlined_call_operand.vmem [shape: bf16[48,32], index: 5, kind: input, shape index: {}]   ;;  %s13914_s6 = inlined_call_operand.vmem [shape: f32[1,160], index: 6, kind: input, shape index: {}]   ;;  %s13915_s7 = inlined_call_operand.vmem [shape: f32[2,1,672], index: 7, kind: input, shape index: {}]   ;;  %s13916_s8 = inlined_call_operand.vmem [shape: bf16[2,32,96], index: 8, kind: input, shape index: {}]   ;;  %s13917_s9 = inlined_call_operand.vmem [shape: bf16[2,32,32], index: 9, kind: input, shape index: {}]   ;;  %s13918_s10 = inlined_call_operand.vmem [shape: bf16[2,32,32], index: 10, kind: input, shape index: {}]   ;;  %s13919_s11 = inlined_call_operand.vmem [shape: bf16[2,32,64], index: 11, kind: input, shape index: {}]   ;;  %s13920_s12 = inlined_call_operand.vmem [shape: bf16[2,32,32], index: 12, kind: input, shape index: {}]   ;;  %s13921_s13 = inlined_call_operand.vmem [shape: bf16[2,32,128], index: 13, kind: input, shape index: {}]   ;;  %s13922_s14 = inlined_call_operand.vmem [shape: bf16[2,128,32], index: 14, kind: input, shape index: {}]   ;;  %s13923_s15 = inlined_call_operand.vmem [shape: f32[2,9,32], index: 15, kind: output, shape index: {}]  }
   0x1   :  { %13927 = sst [smem:[#allocation5_spill]] %s13911_s3 }
   0x2   :  { %13928 = sst [smem:[#allocation6_spill]] %s13914_s6 }
   0x3   :  { %13929 = sst [smem:[#allocation7_spill]] %s13916_s8 }
   0x4   :  { %13930 = sst [smem:[#allocation8_spill]] %s13917_s9 }
   0x5   :  { %13931 = sst [smem:[#allocation9_spill]] %s13923_s15 }
   0x6 LB: > { %13932 = sst [smem:[#allocation4_spill]] %s11857_s18  ;;  %s11967_s19 = sadd.s32 4294967295, %s11857_s18   ;;  %s11857_s18 = sphi %s11961_s18, %s25_s18  }
   0x7   : > { %p10879_p0 = scmp.ge.s32.totalorder %s11857_s18, 1  ;;  %p501_p1 = scmp.lt.s32.totalorder %s11857_s18, 3 }
   0x9   : > { %p502_p2 = pnand %p10879_p0, %p501_p1 }
   0xa   : > { %p578_p3 = scmp.lt.s32.totalorder (!%p502_p2), %s11967_s19, 1  ;;  %s13933_s6 = sld [smem:[#allocation6_spill]] (!%p502_p2) }
   0xb   : > { %505 = sbr.rel (%p502_p2) target bundleno = 9128 (0x23a8), region = 80  ;;  %s13934_s8 = sld [smem:[#allocation7_spill]] (!%p502_p2) }
   0xc   : > { %s13935_s9 = sld [smem:[#allocation8_spill]] (!%p502_p2)  ;;  %p10894_p4 = scmp.ne.s32.totalorder (!%p502_p2), %s11967_s19, 0 }
  0x10   : > { %v11975_v0 = vld [vmem:[%s13933_s6] sm:$0x3]  ;;  %s579_s22 = scalar_select %p578_p3, %s11967_s19, 1 }
  0x12   : > { %s11581_s23 = smul.u32 6, %s579_s22  ;;  %s11113_s24 = sshll.u32 %s579_s22, 4 }
  0x13   : > { %s11981_s27 = scalar_lea.vmem %s13934_s8, %s11113_s24  ;;  %s11986_s30 = scalar_lea.vmem %s13935_s9, %s11113_s24 }
  0x14   : > { %s11991_s18 = scalar_lea.vmem %s13915_s7, %s11581_s23  ;;  %s11996_s6 = scalar_lea.vmem %s13918_s10, %s11113_s24 }
  0x15   : > { %s12001_s25 = scalar_lea.vmem %s13919_s11, %s11113_s24  ;;  %s12006_s28 = scalar_lea.vmem %s13920_s12, %s11113_s24 }
  0x16   : > { %s12011_s23 = scalar_lea.vmem %s13921_s13, %s11113_s24  ;;  %s11119_s16 = sshll.u32 %s579_s22, 6 }
  0x17   : > { %s12016_s21 = scalar_lea.vmem %s13922_s14, %s11119_s16  ;;  %622 = sbr.rel (%p10894_p4) target bundleno = 753 (0x2f1), region = 84 }
  0x18   : > { %s11862_s8 = smov (!%p10894_p4), 64   ;;  %s13936_s22 = sld [smem:[#allocation5_spill]] (!%p10894_p4) }
  0x19   : > { %s11863_s9 = smov (!%p10894_p4), 96  }
  0x1c   : > { %vm1507_vm0 = vcmask 261120   ;;  %v1519_v1 = vld [vmem:[%s13910_s2] sm:$0xff]  ;;  %v11859_v3 = vmov 0.0   ;;  %vm11860_vm1 = vmmov 0   ;;  %v1520_v5 = vld [vmem:[%s13910_s2 + $0x8] sm:$0xff]  ;;  %v11612_v14 = vld [vmem:[%s13913_s5 + $0x10] sm:$0xff]   ;;  %v636_v16 = vlaneseq }
  0x1d   : > { %v1513_v2 = vld [vmem:[%s13909_s1] sm:$0xff]  ;;  %11257 = vmatprep.subr.bf16.mxu1 %v11859_v3  ;;  %v1521_v4 = vpack.c.bf16 %v1519_v1, %v1519_v1  ;;  %11259 = vmatprep.mubr.msk.bf16.mxu1 %vm11860_vm1, %v11859_v3  ;;  %v1522_v8 = vpack.c.bf16 %v1520_v5, %v1520_v5  ;;  %v1514_v10 = vld [vmem:[%s13909_s1 + $0x8] sm:$0xff]  ;;  %v625_v19 = vld [vmem:[%s13908_s0 + $0x10] sm:$0xff]  ;;  %v11861_v20 = vmov 1966171168   ;;  %vm993_vm2 = vcmask 392192  }
  0x1e   : > { %v1515_v6 = vmul.f32 0.17677669, %v1513_v2  ;;  %v1516_v12 = vmul.f32 0.17677669, %v1514_v10  ;;  %v11613_v15 = vld [vmem:[%s13913_s5 + $0x8] sm:$0xff]   ;;  %v623_v17 = vld [vmem:[%s13908_s0] sm:$0xff]  ;;  %v644_v21 = vunpack.c.l.s4 %v11861_v20  ;;  %11247 = vmatprep.subr.bf16.mxu0 %v11612_v14 }
  0x1f   : > { %v1527_v7 = vsel %vm1507_vm0, %v1521_v4, 0  ;;  %v1573_v11 = vsel %vm1507_vm0, %v1522_v8, 0  ;;  %v624_v18 = vld [vmem:[%s13908_s0 + $0x8] sm:$0x1]  ;;  %v626_v22 = vld [vmem:[%s13908_s0 + $0x18] sm:$0x1]  ;;  %11248 = vmatpush3.bf16.msra.mxu0 %v11612_v14 }
  0x20   : > { %11258 = vmatpush3.bf16.xpose.msra.mxu1 %v1527_v7  ;;  %v1517_v9 = vpack.c.bf16 %v1515_v6, %v1515_v6  ;;  %v1518_v13 = vpack.c.bf16 %v1516_v12, %v1516_v12  ;;  %v12062_v23 = vshrl.u32 %v636_v16, 7  ;;  %v627_v24 = vpack.c.bf16 %v624_v18, %v623_v17  ;;  %11249 = vmatprep.subr.bf16.mxu0 %v11613_v15  ;;  %v11614_v28 = vld [vmem:[%s13913_s5] sm:$0xff]  }
  0x21   : > { %11263 = vmatprep.subr.bf16.mxu1 %v11859_v3  ;;  %v628_v25 = vpack.c.bf16 %v626_v22, %v625_v19  ;;  %v10895_v26 = vpack.c.bf16 %v624_v18, %v624_v18  ;;  %v645_v27 = vunpack.c.0.s8 %v644_v21  ;;  %v10896_v29 = vpack.c.bf16 %v626_v22, %v626_v22 }
  0x22   : > { %vm1615_vm3 = vcmask 64512   ;;  %v12109_v19 = vsub.s32 0, %v12062_v23  ;;  %vm1509_vm4 = vcmask 253952   ;;  %vm1748_vm5 = vcmask 1043456  }
  0x23   : > { %v12068_v30 = vsub.s32 %v645_v27, %v12062_v23  ;;  %11250 = vmatpush3.bf16.msra.mxu0 %v11613_v15  ;;  %vm1900_vm6 = vcmask 1046528  }
  0x24   : > { %11251 = vmatprep.subr.bf16.mxu0 %v11614_v28  ;;  %v12113_v20 = vrot.slane %v11975_v0, %v12109_v19 }
  0x25   : > { %v649_v31 = vrot.slane %v627_v24, %v12068_v30  ;;  %v656_v32 = vrot.slane %v10895_v26, %v12068_v30  ;;  %v688_v33 = vrot.slane %v628_v25, %v12068_v30  ;;  %v695_v34 = vrot.slane %v10896_v29, %v12068_v30 }
  0x26   : > { %v738_v21 = vcombine.high %v12113_v20, %v12113_v20  ;;  %v745_v24 = vrot.slane %v12113_v20, %v12068_v30 }
  0x27   : > { %11260 = vmatmul.mubr.msk.bf16.vlgmr.msra.gmra.mxu1 %vm1507_vm0, %v1517_v9  ;;  %v657_v35 = vcombine.high %v649_v31, %v649_v31  ;;  %v664_v36 = vrot.slane %v649_v31, %v12068_v30  ;;  %v671_v37 = vrot.slane %v656_v32, %v12068_v30  ;;  %v696_v38 = vcombine.high %v688_v33, %v688_v33 }
  0x28   : > { %11264 = vmatpush3.bf16.xpose.msra.mxu1 %v1573_v11  ;;  %11265 = vmatprep.mubr.msk.bf16.mxu1 %vm11860_vm1, %v11859_v3  ;;  %v703_v39 = vrot.slane %v688_v33, %v12068_v30  ;;  %v710_v45 = vrot.slane %v695_v34, %v12068_v30  ;;  %v752_v22 = vrot.slane %v738_v21, %v12068_v30 }
  0x29   : > { %11275 = vmatprep.subr.bf16.mxu1 %v11859_v3  ;;  %11252 = vmatpush3.bf16.msra.mxu0 %v11614_v28  ;;  %v678_v40 = vrot.slane %v657_v35, %v12068_v30  ;;  %v717_v41 = vrot.slane %v696_v38, %v12068_v30  ;;  %v753_v26 = vcombine.high %v745_v24, %v745_v24 }
  0x2a   : > { %v718_v42 = vcombine.high %v703_v39, %v703_v39  ;;  %v730_v43 = vunpack.i.h.s16 %v703_v39  ;;  %v10897_v44 = vpack.i.b16 %v703_v39, %v671_v37  ;;  %11269 = vmatprep.subr.bf16.mxu0 %v11859_v3  ;;  %v754_v25 = vcombine.high %v752_v22, %v752_v22 }
  0x2b   : > { %v719_v46 = vcombine.high %v717_v41, %v717_v41  ;;  %v732_v47 = vunpack.i.h.s16 %v717_v41  ;;  %v796_v48 = vcombine.low %v664_v36, %v678_v40  ;;  %v10902_v49 = vcombine.high %v664_v36, %v678_v40 }
  0x2c   : > { %v734_v50 = vunpack.i.h.s16 %v718_v42  ;;  %v10898_v51 = vpack.i.b16 %v717_v41, %v730_v43  ;;  %v782_v27 = vrot.slane %v754_v25, %v12068_v30  ;;  %v761_v28 = vrot.slane %v745_v24, %v12068_v30 }
  0x2d   : > { %v10899_v52 = vpack.i.b16 %v718_v42, %v732_v47  ;;  %v806_v53 = vrot.slane %v796_v48, %v12068_v30  ;;  %v813_v54 = vrot.slane %v10902_v49, %v12068_v30  ;;  %v736_v55 = vunpack.i.h.s16 %v719_v46  ;;  %v1189_v48 = vld [vmem:[%s13936_s22] sm:$0xff] }
  0x2e   : > { %v10900_v56 = vpack.i.b16 %v719_v46, %v734_v50  ;;  %v798_v57 = vcombine.low %v10897_v44, %v10898_v51  ;;  %v768_v23 = vrot.slane %v752_v22, %v12068_v30  ;;  %v775_v29 = vrot.slane %v753_v26, %v12068_v30 }
  0x2f   : > { %11266 = vmatmul.mubr.msk.bf16.vlgmr.msra.gmra.mxu1 %vm1507_vm0, %v1518_v13  ;;  %v10901_v58 = vpack.i.b16 %v710_v45, %v736_v55  ;;  %v828_v61 = vcombine.low %v806_v53, %v813_v54  ;;  %v783_v35 = vcombine.high %v761_v28, %v761_v28  ;;  %v926_v42 = vcombine.low %v761_v28, %v761_v28  ;;  %v1191_v54 = vld [vmem:[%s13936_s22 + $0x10] sm:$0xff] }
  0x30   : > { %11277 = vmatprep.mubr.msk.bf16.mxu1 %vm11860_vm1, %v11859_v3  ;;  %v799_v59 = vcombine.low %v10899_v52, %v10900_v56  ;;  %v820_v60 = vrot.slane %v798_v57, %v12068_v30  ;;  %v877_v31 = vcombine.low %v761_v28, %v775_v29  ;;  %v10906_v32 = vcombine.high %v761_v28, %v775_v29 }
  0x31   : > { %v851_v63 = vrot.slane %v10901_v58, %v12068_v30  ;;  %v836_v2 = vrot.slane %v828_v61, %v12068_v30  ;;  %v879_v33 = vcombine.low %v768_v23, %v782_v27  ;;  %v10907_v34 = vcombine.high %v768_v23, %v782_v27 }
  0x32   : > { %v827_v62 = vrot.slane %v799_v59, %v12068_v30  ;;  %v784_v36 = vcombine.high %v768_v23, %v768_v23  ;;  %v785_v37 = vcombine.high %v775_v29, %v775_v29  ;;  %v887_v38 = vrot.slane %v877_v31, %v12068_v30 }
  0x33   : > { %v858_v5 = vrot.slane %v851_v63, %v12068_v30  ;;  %v894_v39 = vrot.slane %v10906_v32, %v12068_v30  ;;  %v901_v40 = vrot.slane %v879_v33, %v12068_v30  ;;  %v908_v41 = vrot.slane %v10907_v34, %v12068_v30 }
  0x34   : > { %v829_v1 = vcombine.low %v820_v60, %v827_v62  ;;  %v927_v43 = vcombine.low %v775_v29, %v783_v35  ;;  %v928_v44 = vcombine.low %v785_v37, %v768_v23  ;;  %v929_v45 = vcombine.low %v782_v27, %v784_v36 }
  0x35   : > { %v909_v46 = vcombine.low %v887_v38, %v894_v39  ;;  %v910_v47 = vcombine.low %v901_v40, %v908_v41  ;;  %v936_v49 = vrot.slane %v926_v42, %v12068_v30  ;;  %v786_v53 = vcombine.high %v782_v27, %v782_v27 }
  0x36   : > { %v843_v4 = vrot.slane %v829_v1, %v12068_v30  ;;  %v943_v50 = vrot.slane %v927_v43, %v12068_v30  ;;  %v950_v51 = vrot.slane %v928_v44, %v12068_v30  ;;  %v957_v52 = vrot.slane %v929_v45, %v12068_v30 }
  0x37   : > { %v917_v55 = vrot.slane %v909_v46, %v12068_v30  ;;  %v924_v56 = vrot.slane %v910_v47, %v12068_v30  ;;  %v1197_v57 = vcombine.high %v1189_v48, %v1189_v48  ;;  %v1260_v58 = vcombine.high %v1191_v54, %v1191_v54 }
  0x38   : > { %v844_v6 = vcombine.low %v836_v2, %v843_v4  ;;  %v958_v59 = vcombine.low %v936_v49, %v943_v50  ;;  %v959_v60 = vcombine.low %v950_v51, %v957_v52  ;;  %v975_v61 = vcombine.low %v786_v53, %v761_v28 }
  0x39   : > { %v1204_v62 = vrot.slane %v1189_v48, %v12068_v30  ;;  %v925_v63 = vcombine.low %v917_v55, %v924_v56  ;;  %v1211_v1 = vrot.slane %v1197_v57, %v12068_v30  ;;  %v1267_v2 = vrot.slane %v1191_v54, %v12068_v30 }
  0x3a   : > { %11253 = vmatprep.mubr.msk.bf16.mxu0 %vm993_vm2, %v844_v6  ;;  %v966_v6 = vrot.slane %v958_v59, %v12068_v30 }
  0x3b   : > { %11254 = vmatmul.mubr.msk.bf16.vlgmr.msra.gmra.mxu0 %vm993_vm2, %v858_v5  ;;  %v1274_v5 = vrot.slane %v1260_v58, %v12068_v30  ;;  %v1227_v26 = vrot.slane %v1211_v1, %v12068_v30  ;;  %v12156_v29 = vrot.slane %v1267_v2, %v12068_v30 }
  0x3c   : > { %11271 = vmatprep.mubr.msk.bf16.mxu0 %vm11860_vm1, %v11859_v3  ;;  %v12102_v3 = vld [vmem:[%s13912_s4] sm:$0xff] }
  0x3d   : > { %v1850_v17 = vrot.slane %v12102_v3, %v12068_v30  ;;  %v12152_v27 = vrot.slane %v1274_v5, %v12068_v30  ;;  %v1243_v42 = vcombine.high %v1227_v26, %v1227_v26 }
  0x3f   : > { %v1857_v18 = vrot.slane %v1850_v17, %v12068_v30  ;;  %v1220_v17 = vrot.slane %v1204_v62, %v12068_v30  ;;  %v1306_v59 = vcombine.high %v12152_v27, %v12152_v27 }
  0x41   : > { %v1242_v37 = vcombine.high %v1220_v17, %v1220_v17 }
  0xe7   : > { %v12091_v7 = vpop.f32.mrf.mxu1 }
  0xe8   : > { %v1616_v8 = vsel %vm1615_vm3, %v12091_v7, -inf }
  0xe9   : > { %1617 = vmax.xlane.f32.xlu0 %v1616_v8  ;;  %v11261_v9 = vpop.f32.mrf.mxu1  ;;  %v973_v8 = vrot.slane %v959_v60, %v12068_v30 }
  0xea   : > { %v982_v9 = vrot.slane %v975_v61, %v12068_v30 }
  0xeb   : > { %v1566_v10 = vpop.f32.mrf.mxu1  ;;  %v974_v21 = vcombine.low %v966_v6, %v973_v8 }
  0xec   : > { %v989_v22 = vrot.slane %v982_v9, %v12068_v30 }
  0xed   : > { %v11262_v11 = vpop.f32.mrf.mxu1 }
  0xee   : > { %v1212_v11 = vcombine.high %v1204_v62, %v1204_v62 }
  0xef   : > { %v12095_v12 = vpop.f32.mrf.mxu1 }
  0xf0   : > { %v1619_v13 = vsel %vm1615_vm3, %v12095_v12, -inf  ;;  %v1234_v28 = vrot.slane %v1212_v11, %v12068_v30 }
  0xf1   : > { %1620 = vmax.xlane.f32.xlu0 %v1619_v13  ;;  %v11267_v14 = vpop.f32.mrf.mxu1 }
  0xf2   : > { %v1213_v14 = vcombine.high %v1211_v1, %v1211_v1  ;;  %v1244_v45 = vcombine.high %v1234_v28, %v1234_v28 }
  0xf3   : > { %v1612_v15 = vpop.f32.mrf.mxu1 }
  0xf4   : > { %v1275_v15 = vcombine.high %v1267_v2, %v1267_v2  ;;  %v1241_v33 = vrot.slane %v1213_v14, %v12068_v30 }
  0xf5   : > { %v11268_v16 = vpop.f32.mrf.mxu1 }
  0xf6   : > { %v1276_v16 = vcombine.high %v1274_v5, %v1274_v5  ;;  %v1297_v34 = vrot.slane %v1275_v15, %v12068_v30  ;;  %v1245_v49 = vcombine.high %v1241_v33, %v1241_v33 }
  0xf8   : > { %v1304_v35 = vrot.slane %v1276_v16, %v12068_v30  ;;  %v1307_v9 = vcombine.high %v1297_v34, %v1297_v34 }
  0xfa   : > { %v1308_v60 = vcombine.high %v1304_v35, %v1304_v35 }
  0xfb   : > { %v11255_v4 = vpop.f32.mrf.mxu0 }
  0xfc   : > { %v1043_v39 = vadd.f32 %v11255_v4, %v989_v22 }
  0xfd   : > { %v1034_v10 = vpop.f32.mrf.mxu0 }
  0xfe   : > { %v1035_v13 = vadd.f32 %v1034_v10, %v925_v63  ;;  %v12186_v55 = vrot.slane %v1043_v39, %v12068_v30 }
 0x100   : > { %v1051_v24 = vcombine.high %v1035_v13, %v1035_v13  ;;  %v1058_v25 = vrot.slane %v1035_v13, %v12068_v30  ;;  %v12199_v63 = vrot.slane %v12186_v55, %v12068_v30 }
 0x102   : > { %v1065_v31 = vrot.slane %v1051_v24, %v12068_v30  ;;  %v1066_v32 = vcombine.high %v1058_v25, %v1058_v25  ;;  %v1074_v36 = vrot.slane %v1058_v25, %v12068_v30 }
 0x104   : > { %v1067_v40 = vcombine.high %v1065_v31, %v1065_v31  ;;  %v12164_v41 = vrot.slane %v1065_v31, %v12068_v30  ;;  %v12167_v43 = vrot.slane %v1066_v32, %v12068_v30  ;;  %v12169_v44 = vcombine.high %v1074_v36, %v1074_v36 }
 0x105   : > { %v1341_v46 = vadd.f32 %v1220_v17, %v1074_v36 }
 0x106   : > { %v12172_v47 = vrot.slane %v1067_v40, %v12068_v30  ;;  %v12176_v48 = vcombine.high %v12164_v41, %v12164_v41  ;;  %v12180_v51 = vcombine.high %v12167_v43, %v12167_v43  ;;  %v1342_v52 = vadd.f32 %v1234_v28, %v12167_v43 }
 0x107   : > { %1872 = vrot.lane.b32.xlu0 %v1857_v18, %s11862_s8  ;;  %v11256_v18 = vpop.f32.mrf.mxu0  ;;  %v1343_v53 = vadd.f32 %v1242_v37, %v12169_v44  ;;  %v1345_v54 = vadd.f32 %v1227_v26, %v12164_v41 }
 0x108   : > { %v12190_v56 = vcombine.high %v12172_v47, %v12172_v47  ;;  %v1346_v57 = vadd.f32 %v1241_v33, %v12172_v47  ;;  %v1347_v58 = vadd.f32 %v1243_v42, %v12176_v48  ;;  %v1344_v61 = vadd.f32 %v1244_v45, %v12180_v51 }
 0x109   : > { %v1037_v23 = vpop.f32.mrf.mxu0  ;;  %v1377_v62 = vcombine.low %v1341_v46, %v1342_v52  ;;  %v1305_v18 = vcombine.high %v12156_v29, %v12156_v29 }
 0x10a   : > { %v1038_v38 = vadd.f32 %v1037_v23, %v974_v21  ;;  %v1348_v1 = vadd.f32 %v1245_v49, %v12190_v56  ;;  %v1379_v2 = vcombine.low %v1345_v54, %v1346_v57  ;;  %v1378_v5 = vcombine.low %v1343_v53, %v1344_v61 }
 0x10b   : > { %v1387_v6 = vrot.slane %v1377_v62, %v12068_v30  ;;  %v1357_v21 = vadd.f32 %v1308_v60, %v12199_v63 }
 0x10c   : > { %v1100_v50 = vcombine.high %v1038_v38, %v1038_v38  ;;  %v1107_v4 = vrot.slane %v1038_v38, %v12068_v30  ;;  %v1380_v10 = vcombine.low %v1347_v58, %v1348_v1  ;;  %v1401_v11 = vrot.slane %v1379_v2, %v12068_v30 }
 0x10d   : > { %v1394_v15 = vrot.slane %v1378_v5, %v12068_v30 }
 0x10e   : > { %v1114_v8 = vrot.slane %v1100_v50, %v12068_v30  ;;  %v1115_v13 = vcombine.high %v1107_v4, %v1107_v4  ;;  %v12207_v14 = vrot.slane %v1107_v4, %v12068_v30  ;;  %v1408_v22 = vrot.slane %v1380_v10, %v12068_v30 }
 0x10f   : > { %v1409_v26 = vcombine.low %v1387_v6, %v1394_v15 }
 0x110   : > { %v1116_v16 = vcombine.high %v1114_v8, %v1114_v8  ;;  %v12211_v17 = vrot.slane %v1114_v8, %v12068_v30  ;;  %v12218_v24 = vrot.slane %v1115_v13, %v12068_v30  ;;  %v1145_v25 = vcombine.high %v12207_v14, %v12207_v14  ;;  %v10910_v13 = vld.sshfl [vmem:[%s13936_s22 + $0x8] sm:$0x1 pattern:$0x75316420] }
 0x111   : > { %v1410_v32 = vcombine.low %v1401_v11, %v1408_v22  ;;  %v1417_v38 = vrot.slane %v1409_v26, %v12068_v30  ;;  %v1156_v11 = vcombine.high %v12186_v55, %v12186_v55  ;;  %v1640_v55 = vcombine.low %v12167_v43, %v12169_v44 }
 0x112   : > { %v12223_v28 = vrot.slane %v1116_v16, %v12068_v30  ;;  %v1146_v23 = vcombine.high %v12211_v17, %v12211_v17  ;;  %v1353_v31 = vadd.f32 %v1307_v9, %v12211_v17  ;;  %v1147_v33 = vcombine.high %v12218_v24, %v12218_v24 }
 0x113   : > { %v1350_v36 = vadd.f32 %v12156_v29, %v12218_v24  ;;  %v1351_v37 = vadd.f32 %v1297_v34, %v1145_v25  ;;  %v1424_v45 = vrot.slane %v1410_v32, %v12068_v30  ;;  %v1259_v16 = vrot.slane %v10910_v13, %v12068_v30 }
 0x114   : > { %v1148_v39 = vcombine.high %v12223_v28, %v12223_v28  ;;  %v1354_v40 = vadd.f32 %v12152_v27, %v12223_v28  ;;  %v1355_v42 = vadd.f32 %v1304_v35, %v1146_v23  ;;  %v1352_v46 = vadd.f32 %v1305_v18, %v1147_v33 }
 0x115   : > { %v1440_v49 = vcombine.low %v1350_v36, %v1351_v37  ;;  %v1425_v53 = vcombine.low %v1417_v38, %v1424_v45  ;;  %v1641_v26 = vcombine.low %v12180_v51, %v12164_v41  ;;  %v1642_v23 = vcombine.low %v12172_v47, %v12176_v48 }
 0x116   : > { %v1356_v50 = vadd.f32 %v1306_v59, %v1148_v39  ;;  %v1442_v52 = vcombine.low %v1354_v40, %v1355_v42  ;;  %v1441_v54 = vcombine.low %v1352_v46, %v1353_v31  ;;  %v1643_v31 = vcombine.low %v12190_v56, %v12207_v14 }
 0x117   : > { %v1450_v29 = vrot.slane %v1440_v49, %v12068_v30  ;;  %1508 = vst.msk [vmem:[#allocation3] sm:$0xff] %vm1507_vm0, %v1425_v53  ;;  %v10914_v32 = vcombine.high %v12207_v14, %v12218_v24  ;;  %v1349_v43 = vadd.f32 %v1259_v16, %v12207_v14  ;;  %v1650_v44 = vrot.slane %v1640_v55, %v12068_v30 }
 0x118   : > { %v1443_v34 = vcombine.low %v1356_v50, %v1357_v21  ;;  %v1464_v57 = vrot.slane %v1442_v52, %v12068_v30  ;;  %v1457_v58 = vrot.slane %v1441_v54, %v12068_v30  ;;  %v10915_v33 = vcombine.high %v12211_v17, %v12223_v28 }
 0x119   : > { %v1657_v48 = vrot.slane %v1641_v26, %v12068_v30  ;;  %v1664_v51 = vrot.slane %v1642_v23, %v12068_v30  ;;  %v1671_v56 = vrot.slane %v1643_v31, %v12068_v30  ;;  %v1699_v14 = vrot.slane %v10914_v32, %v12068_v30 }
 0x11a   : > { %v1471_v27 = vrot.slane %v1443_v34, %v12068_v30  ;;  %v1472_v35 = vcombine.low %v1450_v29, %v1457_v58  ;;  %v1713_v36 = vrot.slane %v10915_v33, %v12068_v30  ;;  %v1432_v37 = vrot.slane %v1349_v43, %v12068_v30 }
 0x11b   : > { %v1673_v38 = vcombine.low %v1664_v51, %v1671_v56 }
 0x11c   : > { %v1473_v60 = vcombine.low %v1464_v57, %v1471_v27  ;;  %v1480_v61 = vrot.slane %v1472_v35, %v12068_v30  ;;  %v1439_v42 = vrot.slane %v1432_v37, %v12068_v30 }
 0x11d   : > { %v1687_v46 = vrot.slane %v1673_v38, %v12068_v30 }
 0x11e   : > { %v1487_v59 = vrot.slane %v1473_v60, %v12068_v30  ;;  %1510 = vst.msk [vmem:[#allocation3 + $0x8] sm:$0x1] %vm1509_vm4, %v1439_v42 }
 0x120   : > { %v1488_v2 = vcombine.low %v1480_v61, %v1487_v59 }
 0x122   : > { %1511 = vst.msk [vmem:[#allocation3 + $0x10] sm:$0xff] %vm1507_vm0, %v1488_v2 }
 0x172   : > { %v1618_v62 = vpop.xlane.xlu0 %1617 }
 0x173   : > { %v1622_v1 = vsub.f32 %v12091_v7, %v1618_v62  ;;  %v10911_v7 = vld.sshfl [vmem:[%s13936_s22 + $0x18] sm:$0x1 pattern:$0x75316420] }
 0x174   : > { %v1322_v15 = vrot.slane %v10911_v7, %v12068_v30 }
 0x175   : > { %v1624_v4 = vmul.f32 1.442695, %v1622_v1 }
 0x177   : > { %11617 = vpow2.f32 %v1624_v4 }
 0x17a   : > { %v1621_v5 = vpop.xlane.xlu0 %1620 }
 0x17b   : > { %v1623_v6 = vsub.f32 %v12095_v12, %v1621_v5  ;;  %v1170_v12 = vrot.slane %v1156_v11, %v12068_v30 }
 0x17d   : > { %v1626_v8 = vmul.f32 1.442695, %v1623_v6  ;;  %v1358_v22 = vadd.f32 %v1322_v15, %v1170_v12  ;;  %v1692_v25 = vcombine.low %v12199_v63, %v1170_v12  ;;  %v1690_v63 = vcombine.low %v12211_v17, %v12223_v28  ;;  %v12296_v17 = vld [vmem:[%s13912_s4 + $0x10] sm:$0xff] }
 0x17e   : > { %v1672_v28 = vcombine.low %v1650_v44, %v1657_v48  ;;  %v1864_v50 = vrot.slane %v12296_v17, %v12068_v30  ;;  %v1873_v60 = vpop.permute.xlu0 %1872  ;;  %v1904_v23 = vrot.slane %v12296_v17, 1 }
 0x17f   : > { %11619 = vpow2.f32 %v1626_v8  ;;  %v1495_v41 = vrot.slane %v1358_v22, %v12068_v30  ;;  %v1720_v47 = vrot.slane %v1692_v25, %v12068_v30  ;;  %v1706_v24 = vrot.slane %v1690_v63, %v12068_v30 }
 0x180   : > { %v1680_v45 = vrot.slane %v1672_v28, %v12068_v30  ;;  %v1871_v57 = vrot.slane %v1864_v50, %v12068_v30  ;;  %v1878_v61 = vadd.f32 %v1873_v60, %v11975_v0 }
 0x181   : > { %v1721_v39 = vcombine.low %v1699_v14, %v1706_v24  ;;  %v1722_v40 = vcombine.low %v1713_v36, %v1720_v47  ;;  %v1502_v49 = vrot.slane %v1495_v41, %v12068_v30 }
 0x182   : > { %v1688_v54 = vcombine.low %v1680_v45, %v1687_v46  ;;  %v1885_v62 = vrot.slane %v1878_v61, %v12109_v19 }
 0x183   : > { %v1729_v52 = vrot.slane %v1721_v39, %v12068_v30  ;;  %v1736_v53 = vrot.slane %v1722_v40, %v12068_v30  ;;  %1512 = vst.msk [vmem:[#allocation3 + $0x18] sm:$0x1] %vm1509_vm4, %v1502_v49 }
 0x184   : > { %v12248_v9 = vpop.eup %11617  ;;  %v1740_v34 = vpack.c.bf16 %v1688_v54, %v1688_v54 }
 0x185   : > { %v1628_v10 = vsel %vm1615_vm3, %v12248_v9, 0.0  ;;  %v1737_v29 = vcombine.low %v1729_v52, %v1736_v53 }
 0x186   : > { %1629 = vadd.xlane.f32.xlu1 %v1628_v10  ;;  %v1750_v27 = vsel %vm1748_vm5, %v1740_v34, 0 }
 0x187   : > { %v1741_v58 = vpack.c.bf16 %v1737_v29, %v1737_v29  ;;  %11270 = vmatpush3.bf16.msra.mxu0 %v1750_v27 }
 0x189   : > { %v1796_v35 = vsel %vm1748_vm5, %v1741_v58, 0 }
 0x18a   : > { %11276 = vmatpush3.bf16.msra.mxu1 %v1796_v35 }
 0x18c   : > { %v12263_v18 = vpop.eup %11619 }
 0x18d   : > { %v1631_v21 = vsel %vm1615_vm3, %v12263_v18, 0.0 }
 0x18e   : > { %1632 = vadd.xlane.f32.xlu1 %v1631_v21  ;;  %v1841_v21 = vld [vmem:[%s13912_s4 + $0x18] sm:$0x1] }
 0x18f   : > { %v1905_v31 = vrot.slane %v1841_v21, 1 }
 0x19f   : > { %1874 = vrot.lane.b32.xlu1 %v1871_v57, %s11862_s8 }
 0x1a3   : > { %1742 = vrot.lane.b32.xlu1 %v12113_v20, %s11863_s9 }
 0x1a7   : > { %1890 = vrot.lane.b32.xlu1 %v1885_v62, %s11862_s8 }
 0x20f   : > { %v1630_v59 = vpop.xlane.xlu1 %1629 }
 0x210   : > { %11621 = vrcp.f32 %v1630_v59 }
 0x217   : > { %v1633_v30 = vpop.xlane.xlu1 %1632 }
 0x218   : > { %11623 = vrcp.f32 %v1633_v30 }
 0x21b   : > { %v1875_v1 = vpop.permute.xlu1 %1874 }
 0x21c   : > { %v1879_v2 = vadd.f32 %v1875_v1, %v11975_v0 }
 0x21d   : > { %v11622_v4 = vpop.eup %11621 }
 0x21e   : > { %v1636_v5 = vmul.f32 %v11622_v4, %v12248_v9  ;;  %v1889_v6 = vrot.slane %v1879_v2, %v12109_v19  ;;  %v1839_v19 = vld [vmem:[%s13912_s4 + $0x8] sm:$0x1]  ;;  %v1901_v9 = vrot.slane %v12102_v3, 1  ;;  %v1906_v3 = vsel %vm1900_vm6, %v1904_v23, %v1905_v31 }
 0x21f   : > { %v1743_v7 = vpop.permute.xlu1 %1742  ;;  %v1902_v15 = vrot.slane %v1839_v19, 1 }
 0x220   : > { %v1638_v8 = vpack.c.bf16 %v1636_v5, %v1636_v5  ;;  %1892 = vrot.lane.b32.xlu0 %v1889_v6, %s11862_s8 }
 0x222   : > { %11272 = vmatmul.mubr.msk.bf16.vlgmr.msra.gmra.mxu0 %vm1615_vm3, %v1638_v8 }
 0x223   : > { %v1891_v13 = vpop.permute.xlu1 %1890 }
 0x224   : > { %1896 = vst.msk [vmem:[#allocation2] sm:$0x1] %vm1509_vm4, %v1891_v13 }
 0x225   : > { %v11624_v20 = vpop.eup %11623 }
 0x226   : > { %v1637_v10 = vmul.f32 %v11624_v20, %v12263_v18  ;;  %v1903_v18 = vsel %vm1900_vm6, %v1901_v9, %v1902_v15 }
 0x228   : > { %v1639_v11 = vpack.c.bf16 %v1637_v10, %v1637_v10 }
 0x22a   : > { %11278 = vmatmul.mubr.msk.bf16.vlgmr.msra.gmra.mxu1 %vm1615_vm3, %v1639_v11 }
 0x292   : > { %v1893_v12 = vpop.permute.xlu0 %1892 }
 0x293   : > { %1897 = vst.msk [vmem:[#allocation2 + $0x10] sm:$0x1] %vm1509_vm4, %v1893_v12 }
 0x2e2   : > { %v1786_v16 = vpop.f32.mrf.mxu0 }
 0x2e3   : > { %v1787_v55 = vadd.f32 %v1786_v16, %v1743_v7 }
 0x2e4   : > { %v11273_v22 = vpop.f32.mrf.mxu0 }
 0x2e5   : > { %v1909_v25 = vadd.f32 %v1903_v18, %v1787_v55 }
 0x2e6   : > { %v1789_v26 = vpop.f32.mrf.mxu0 }
 0x2e7   : > { %1911 = vst.msk [vmem:[#allocation2 + $0x1] sm:$0xff] %vm1507_vm0, %v1909_v25 }
 0x2e8   : > { %v11274_v32 = vpop.f32.mrf.mxu0 }
 0x2ea   : > { %v1832_v43 = vpop.f32.mrf.mxu1 }
 0x2eb   : > { %v1833_v44 = vadd.f32 %v1832_v43, %v1743_v7 }
 0x2ec   : > { %v11279_v63 = vpop.f32.mrf.mxu1 }
 0x2ed   : > { %v1910_v33 = vadd.f32 %v1906_v3, %v1833_v44 }
 0x2ee   : > { %v1835_v41 = vpop.f32.mrf.mxu1 }
 0x2ef   : > { %1912 = vst.msk [vmem:[#allocation2 + $0x11] sm:$0xff] %vm1507_vm0, %v1910_v33 }
 0x2f0   : > { %v11280_v47 = vpop.f32.mrf.mxu1 }
 0x2f1 PF: > { %vm1922_vm7 = vcmask 261120   ;;  %vm1926_vm8 = vcmask 253952   ;;  %v1914_v56 = vld [vmem:[#allocation2] sm:$0xff]  ;;  %v1915_v36 = vld [vmem:[#allocation2 + $0x8] sm:$0x1]  ;;  %v1978_v62 = vlaneseq  ;;  %s11864_s17 = smov 96  }
 0x2f2   : > { %v1923_v24 = vsel %vm1922_vm7, %v1914_v56, 0.0  ;;  %v1927_v17 = vsel %vm1926_vm8, %v1915_v36, 0.0  ;;  %v12344_v1 = vld [vmem:[%s11991_s18] sm:$0x3f]  ;;  %v11625_v4 = vld [vmem:[%s11981_s27 + $0x8] sm:$0xff]   ;;  %vm11867_vm9 = vmmov 0  }
 0x2f3   : > { %1924 = vadd.xlane.f32.xlu1 %v1923_v24  ;;  %v1979_v59 = vshrl.u32 %v1978_v62, 7  ;;  %v11626_v5 = vld [vmem:[%s11981_s27] sm:$0xff]   ;;  %11281 = vmatprep.subr.bf16.mxu1 %v11625_v4  ;;  %v11865_v55 = vmov 1966171168   ;;  %vm2668_vm10 = vcmask 64512   ;;  %vm2766_vm11 = vcmask 72704  }
 0x2f4   : > { %11282 = vmatpush3.bf16.msra.mxu1 %v11625_v4  ;;  %v2009_v21 = vunpack.c.l.s4 %v11865_v55  ;;  %vm2770_vm12 = vcmask 65536   ;;  %s11868_s27 = smov 64   ;;  %vm2819_vm13 = vcmask 1043456   ;;  %vm2820_vm14 = vcmask 1044480   ;;  %s11870_s20 = smov 88  }
 0x2f5   : > { %v12341_v30 = vsub.s32 0, %v1979_v59  ;;  %11283 = vmatprep.subr.bf16.mxu1 %v11626_v5  ;;  %s11871_s3 = smov 120   ;;  %s11872_s15 = smov 56  }
 0x2f6   : > { %v1916_v48 = vld [vmem:[#allocation2 + $0x10] sm:$0xff]  ;;  %v1917_v51 = vld [vmem:[#allocation2 + $0x18] sm:$0x1]  ;;  %v2010_v31 = vunpack.c.0.s8 %v2009_v21  ;;  %s11873_s26 = smov 80   ;;  %s11874_s9 = smov 112  }
 0x2f7   : > { %v1930_v14 = vsel %vm1922_vm7, %v1916_v48, 0.0  ;;  %v1933_v37 = vsel %vm1926_vm8, %v1917_v51, 0.0  ;;  %1928 = vadd.xlane.f32.xlu1 %v1927_v17  ;;  %v12348_v2 = vrot.slane %v12344_v1, %v12341_v30  ;;  %s11875_s24 = smov 48   ;;  %s11876_s29 = smov 72  }
 0x2f8   : > { %1931 = vadd.xlane.f32.xlu0 %v1930_v14  ;;  %11284 = vmatpush3.bf16.msra.mxu1 %v11626_v5  ;;  %v12357_v47 = vsub.s32 %v2010_v31, %v1979_v59  ;;  %s11877_s8 = smov 104   ;;  %s11878_s16 = smov 40  }
 0x2f9   : > { %p11110_p5 = scmp.ne.s32.totalorder %s11967_s19, 1 }
 0x2fc   : > { %1934 = vadd.xlane.f32.xlu0 %v1933_v37 }
 0x37c   : > { %v1925_v38 = vpop.xlane.xlu1 %1924 }
 0x37d   : > { %v1937_v40 = vmul.f32 0.03125, %v1925_v38 }
 0x37f   : > { %v1941_v45 = vsub.f32 %v1914_v56, %v1937_v40 }
 0x380   : > { %v1929_v49 = vpop.xlane.xlu1 %1928 }
 0x381   : > { %v1932_v28 = vpop.xlane.xlu0 %1931  ;;  %v1938_v53 = vmul.f32 0.03125, %v1929_v49  ;;  %v1945_v54 = vmul.f32 %v1941_v45, %v1941_v45 }
 0x382   : > { %v1939_v39 = vmul.f32 0.03125, %v1932_v28 }
 0x383   : > { %v1942_v57 = vsub.f32 %v1915_v36, %v1938_v53  ;;  %v1949_v27 = vsel %vm1922_vm7, %v1945_v54, 0.0 }
 0x384   : > { %v1943_v42 = vsub.f32 %v1916_v48, %v1939_v39 }
 0x385   : > { %v1935_v46 = vpop.xlane.xlu0 %1934  ;;  %v1946_v35 = vmul.f32 %v1942_v57, %v1942_v57 }
 0x386   : > { %v1940_v50 = vmul.f32 0.03125, %v1935_v46  ;;  %v1947_v52 = vmul.f32 %v1943_v42, %v1943_v42 }
 0x387   : > { %v1952_v61 = vsel %vm1926_vm8, %v1946_v35, 0.0 }
 0x388   : > { %v1944_v29 = vsub.f32 %v1917_v51, %v1940_v50  ;;  %v1955_v34 = vsel %vm1922_vm7, %v1947_v52, 0.0 }
 0x389   : > { %1956 = vadd.xlane.f32.xlu0 %v1955_v34 }
 0x38a   : > { %v1948_v58 = vmul.f32 %v1944_v29, %v1944_v29 }
 0x38c   : > { %v1958_v60 = vsel %vm1926_vm8, %v1948_v58, 0.0 }
 0x38d   : > { %1959 = vadd.xlane.f32.xlu1 %v1958_v60  ;;  %1950 = vadd.xlane.f32.xlu0 %v1949_v27 }
 0x391   : > { %1953 = vadd.xlane.f32.xlu1 %v1952_v61 }
 0x3a3   : > { %1987 = vrot.lane.b32.xlu0 %v12348_v2, %s11864_s17 }
 0x412   : > { %v1957_v6 = vpop.xlane.xlu0 %1956 }
 0x413   : > { %v1963_v8 = vmul.f32 0.03125, %v1957_v6 }
 0x415   : > { %v1967_v20 = vadd.f32 1e-05, %v1963_v8 }
 0x416   : > { %v1951_v10 = vpop.xlane.xlu0 %1950  ;;  %v1960_v11 = vpop.xlane.xlu1 %1959 }
 0x417   : > { %11641 = vrsqrt.f32 %v1967_v20  ;;  %v1961_v7 = vmul.f32 0.03125, %v1951_v10  ;;  %v1964_v13 = vmul.f32 0.03125, %v1960_v11 }
 0x419   : > { %v1965_v12 = vadd.f32 1e-05, %v1961_v7  ;;  %v1968_v19 = vadd.f32 1e-05, %v1964_v13 }
 0x41a   : > { %v1954_v9 = vpop.xlane.xlu1 %1953  ;;  %v1988_v3 = vpop.permute.xlu0 %1987 }
 0x41b   : > { %11643 = vrsqrt.f32 %v1965_v12  ;;  %v1962_v15 = vmul.f32 0.03125, %v1954_v9 }
 0x41c   : > { %11645 = vrsqrt.f32 %v1968_v19 }
 0x41d   : > { %v1966_v16 = vadd.f32 1e-05, %v1962_v15 }
 0x41f   : > { %11647 = vrsqrt.f32 %v1966_v16 }
 0x424   : > { %v11642_v18 = vpop.eup %11641 }
 0x425   : > { %v1975_v22 = vmul.f32 %v11642_v18, %v1943_v42 }
 0x427   : > { %v1985_v43 = vmul.f32 %v12348_v2, %v1975_v22  ;;  %v2000_v22 = vrot.slane %v12344_v1, 2 }
 0x428   : > { %v11644_v25 = vpop.eup %11643 }
 0x429   : > { %v11646_v26 = vpop.eup %11645  ;;  %v1973_v23 = vmul.f32 %v11644_v25, %v1941_v45  ;;  %v1992_v48 = vadd.f32 %v1988_v3, %v1985_v43  ;;  %v2004_v25 = vrot.slane %v2000_v22, %v12341_v30 }
 0x42a   : > { %v1976_v32 = vmul.f32 %v11646_v26, %v1944_v29 }
 0x42b   : > { %v1983_v41 = vmul.f32 %v12348_v2, %v1973_v23  ;;  %v2103_v26 = vcombine.high %v2004_v25, %v2004_v25  ;;  %v2110_v23 = vrot.slane %v2004_v25, %v12357_v47 }
 0x42c   : > { %v11648_v44 = vpop.eup %11647  ;;  %v1986_v63 = vmul.f32 %v12348_v2, %v1976_v32 }
 0x42d   : > { %v1974_v33 = vmul.f32 %v11648_v44, %v1942_v57  ;;  %v1990_v24 = vadd.f32 %v1988_v3, %v1983_v41  ;;  %v2117_v31 = vrot.slane %v2103_v26, %v12357_v47  ;;  %v2118_v43 = vcombine.high %v2110_v23, %v2110_v23 }
 0x42e   : > { %v1993_v51 = vadd.f32 %v1988_v3, %v1986_v63 }
 0x42f   : > { %v1984_v56 = vmul.f32 %v12348_v2, %v1974_v33  ;;  %v2119_v32 = vcombine.high %v2117_v31, %v2117_v31  ;;  %v2133_v63 = vrot.slane %v2117_v31, %v12357_v47  ;;  %v2140_v33 = vrot.slane %v2118_v43, %v12357_v47 }
 0x430   : > { %v1995_v14 = vpack.c.bf16 %v1993_v51, %v1992_v48  ;;  %v10919_v38 = vpack.c.bf16 %v1993_v51, %v1993_v51 }
 0x431   : > { %v1991_v36 = vadd.f32 %v1988_v3, %v1984_v56  ;;  %v2126_v3 = vrot.slane %v2110_v23, %v12357_v47  ;;  %v2147_v44 = vrot.slane %v2119_v32, %v12357_v47 }
 0x432   : > { %v2053_v37 = vrot.slane %v1995_v14, %v12357_v47  ;;  %v2060_v52 = vrot.slane %v10919_v38, %v12357_v47  ;;  %v2149_v14 = vcombine.high %v2133_v63, %v2133_v63 }
 0x433   : > { %v1994_v17 = vpack.c.bf16 %v1991_v36, %v1990_v24  ;;  %v10918_v28 = vpack.c.bf16 %v1991_v36, %v1991_v36  ;;  %v2236_v41 = vcombine.low %v2126_v3, %v2140_v33  ;;  %v10928_v48 = vcombine.high %v2126_v3, %v2140_v33 }
 0x434   : > { %v2061_v39 = vcombine.high %v2053_v37, %v2053_v37  ;;  %v2068_v40 = vrot.slane %v2053_v37, %v12357_v47  ;;  %v2075_v8 = vrot.slane %v2060_v52, %v12357_v47  ;;  %v2238_v1 = vcombine.low %v2133_v63, %v2147_v44 }
 0x435   : > { %v2014_v42 = vrot.slane %v1994_v17, %v12357_v47  ;;  %v2021_v45 = vrot.slane %v10918_v28, %v12357_v47  ;;  %v10929_v51 = vcombine.high %v2133_v63, %v2147_v44  ;;  %v2148_v56 = vcombine.high %v2126_v3, %v2126_v3 }
 0x436   : > { %v2082_v46 = vrot.slane %v2061_v39, %v12357_v47  ;;  %v2083_v49 = vcombine.high %v2068_v40, %v2068_v40  ;;  %v2095_v50 = vunpack.i.h.s16 %v2068_v40  ;;  %v2150_v24 = vcombine.high %v2140_v33, %v2140_v33 }
 0x437   : > { %v2022_v53 = vcombine.high %v2014_v42, %v2014_v42  ;;  %v2036_v54 = vrot.slane %v2021_v45, %v12357_v47  ;;  %v2029_v58 = vrot.slane %v2014_v42, %v12357_v47  ;;  %v2246_v36 = vrot.slane %v2236_v41, %v12357_v47 }
 0x438   : > { %v2084_v29 = vcombine.high %v2082_v46, %v2082_v46  ;;  %v2097_v34 = vunpack.i.h.s16 %v2082_v46  ;;  %v2099_v57 = vunpack.i.h.s16 %v2083_v49  ;;  %v10921_v60 = vpack.i.b16 %v2082_v46, %v2095_v50 }
 0x439   : > { %v2043_v27 = vrot.slane %v2022_v53, %v12357_v47  ;;  %v10920_v35 = vpack.i.b16 %v2068_v40, %v2036_v54  ;;  %v2253_v37 = vrot.slane %v10928_v48, %v12357_v47  ;;  %v2260_v17 = vrot.slane %v2238_v1, %v12357_v47 }
 0x43a   : > { %v10922_v61 = vpack.i.b16 %v2083_v49, %v2097_v34  ;;  %v10923_v62 = vpack.i.b16 %v2084_v29, %v2099_v57  ;;  %v2101_v59 = vunpack.i.h.s16 %v2084_v29  ;;  %v2267_v28 = vrot.slane %v10929_v51, %v12357_v47 }
 0x43b   : > { %v2161_v4 = vcombine.low %v2029_v58, %v2043_v27  ;;  %v10925_v5 = vcombine.high %v2029_v58, %v2043_v27  ;;  %v2163_v6 = vcombine.low %v10920_v35, %v10921_v60  ;;  %v2285_v38 = vcombine.low %v2126_v3, %v2126_v3 }
 0x43c   : > { %v2164_v20 = vcombine.low %v10922_v61, %v10923_v62  ;;  %v10924_v13 = vpack.i.b16 %v2075_v8, %v2101_v59  ;;  %v2286_v39 = vcombine.low %v2140_v33, %v2148_v56  ;;  %v2287_v40 = vcombine.low %v2150_v24, %v2133_v63 }
 0x43d   : > { %v2171_v10 = vrot.slane %v2161_v4, %v12357_v47  ;;  %v2178_v11 = vrot.slane %v10925_v5, %v12357_v47  ;;  %v2185_v7 = vrot.slane %v2163_v6, %v12357_v47  ;;  %v2288_v42 = vcombine.low %v2147_v44, %v2149_v14 }
 0x43e   : > { %v2192_v12 = vrot.slane %v2164_v20, %v12357_v47  ;;  %v2216_v16 = vrot.slane %v10924_v13, %v12357_v47  ;;  %v2151_v45 = vcombine.high %v2147_v44, %v2147_v44  ;;  %v2268_v46 = vcombine.low %v2246_v36, %v2253_v37 }
 0x43f   : > { %v2193_v19 = vcombine.low %v2171_v10, %v2178_v11  ;;  %v2269_v49 = vcombine.low %v2260_v17, %v2267_v28  ;;  %v2295_v50 = vrot.slane %v2285_v38, %v12357_v47  ;;  %v2302_v52 = vrot.slane %v2286_v39, %v12357_v47 }
 0x440   : > { %v2194_v9 = vcombine.low %v2185_v7, %v2192_v12  ;;  %v2223_v21 = vrot.slane %v2216_v16, %v12357_v47  ;;  %v2309_v53 = vrot.slane %v2287_v40, %v12357_v47  ;;  %v2316_v54 = vrot.slane %v2288_v42, %v12357_v47 }
 0x441   : > { %v2201_v15 = vrot.slane %v2193_v19, %v12357_v47  ;;  %v2334_v29 = vcombine.low %v2151_v45, %v2126_v3  ;;  %v2276_v34 = vrot.slane %v2268_v46, %v12357_v47  ;;  %v2283_v57 = vrot.slane %v2269_v49, %v12357_v47 }
 0x442   : > { %v2208_v18 = vrot.slane %v2194_v9, %v12357_v47  ;;  %v2317_v58 = vcombine.low %v2295_v50, %v2302_v52  ;;  %v2318_v27 = vcombine.low %v2309_v53, %v2316_v54  ;;  %v11866_v48 = vmov 0.0  }
 0x443   : > { %v2341_v35 = vrot.slane %v2334_v29, %v12357_v47  ;;  %v2284_v60 = vcombine.low %v2276_v34, %v2283_v57  ;;  %11289 = vmatprep.subr.bf16.mxu1 %v11866_v48  ;;  %11307 = vmatprep.subr.bf16.mxu0 %v11866_v48 }
 0x444   : > { %v2209_v55 = vcombine.low %v2201_v15, %v2208_v18  ;;  %v2325_v62 = vrot.slane %v2317_v58, %v12357_v47  ;;  %v2332_v59 = vrot.slane %v2318_v27, %v12357_v47  ;;  %11309 = vmatprep.mubr.msk.bf16.mxu0 %vm11867_vm9, %v11866_v48 }
 0x445   : > { %v2348_v4 = vrot.slane %v2341_v35, %v12357_v47 }
 0x446   : > { %11285 = vmatprep.mubr.msk.bf16.mxu1 %vm1922_vm7, %v2209_v55  ;;  %v2333_v20 = vcombine.low %v2325_v62, %v2332_v59 }
 0x447   : > { %11286 = vmatmul.mubr.msk.bf16.vlgmr.msra.gmra.mxu1 %vm1922_vm7, %v2223_v21 }
 0x448   : > { %11291 = vmatprep.mubr.msk.bf16.mxu1 %vm11867_vm9, %v11866_v48 }
 0x507   : > { %v11287_v61 = vpop.f32.mrf.mxu1 }
 0x508   : > { %v2401_v7 = vadd.f32 %v11287_v61, %v2348_v4 }
 0x509   : > { %v2392_v5 = vpop.f32.mrf.mxu1 }
 0x50a   : > { %v2393_v6 = vadd.f32 %v2392_v5, %v2284_v60  ;;  %v2513_v55 = vrot.slane %v2401_v7, %v12357_v47 }
 0x50b   : > { %v11288_v8 = vpop.f32.mrf.mxu1 }
 0x50c   : > { %v2409_v10 = vcombine.high %v2393_v6, %v2393_v6  ;;  %v2416_v11 = vrot.slane %v2393_v6, %v12357_v47  ;;  %v2514_v24 = vcombine.high %v2513_v55, %v2513_v55  ;;  %v2521_v46 = vrot.slane %v2513_v55, %v12357_v47 }
 0x50d   : > { %v2395_v13 = vpop.f32.mrf.mxu1 }
 0x50e   : > { %v2423_v12 = vrot.slane %v2409_v10, %v12357_v47  ;;  %v2424_v19 = vcombine.high %v2416_v11, %v2416_v11  ;;  %v2396_v9 = vadd.f32 %v2395_v13, %v2333_v20  ;;  %v2432_v16 = vrot.slane %v2416_v11, %v12357_v47 }
 0x50f   : > { %v2528_v53 = vrot.slane %v2514_v24, %v12357_v47 }
 0x510   : > { %v2425_v15 = vcombine.high %v2423_v12, %v2423_v12  ;;  %v2446_v18 = vrot.slane %v2424_v19, %v12357_v47  ;;  %v2458_v21 = vcombine.high %v2396_v9, %v2396_v9  ;;  %v2465_v22 = vrot.slane %v2396_v9, %v12357_v47 }
 0x511   : > { %v2439_v25 = vrot.slane %v2423_v12, %v12357_v47  ;;  %v2647_v4 = vrot.slane %v2528_v53, %v12357_v47 }
 0x512   : > { %v2453_v26 = vrot.slane %v2425_v15, %v12357_v47  ;;  %v2529_v23 = vcombine.low %v2432_v16, %v2446_v18  ;;  %v10932_v31 = vcombine.high %v2432_v16, %v2446_v18  ;;  %v2472_v32 = vrot.slane %v2458_v21, %v12357_v47 }
 0x513   : > { %v2473_v43 = vcombine.high %v2465_v22, %v2465_v22  ;;  %v2481_v3 = vrot.slane %v2465_v22, %v12357_v47  ;;  %v2654_v20 = vrot.slane %v2647_v4, %v12357_v47 }
 0x514   : > { %v2531_v44 = vcombine.low %v2439_v25, %v2453_v26  ;;  %v10933_v63 = vcombine.high %v2439_v25, %v2453_v26  ;;  %v2539_v33 = vrot.slane %v2529_v23, %v12357_v47  ;;  %v2546_v41 = vrot.slane %v10932_v31, %v12357_v47 }
 0x515   : > { %v2474_v1 = vcombine.high %v2472_v32, %v2472_v32  ;;  %v2488_v51 = vrot.slane %v2472_v32, %v12357_v47  ;;  %v2495_v56 = vrot.slane %v2473_v43, %v12357_v47  ;;  %v2503_v14 = vcombine.high %v2481_v3, %v2481_v3 }
 0x516   : > { %v2553_v36 = vrot.slane %v2531_v44, %v12357_v47  ;;  %v2560_v37 = vrot.slane %v10933_v63, %v12357_v47  ;;  %v2561_v17 = vcombine.low %v2539_v33, %v2546_v41  ;;  %v2584_v45 = vrot.slane %v2481_v3, %v12357_v47 }
 0x517   : > { %v2502_v28 = vrot.slane %v2474_v1, %v12357_v47  ;;  %v2504_v38 = vcombine.high %v2488_v51, %v2488_v51  ;;  %v2505_v39 = vcombine.high %v2495_v56, %v2495_v56  ;;  %v2592_v40 = vcombine.low %v2495_v56, %v2503_v14 }
 0x518   : > { %v2562_v42 = vcombine.low %v2553_v36, %v2560_v37  ;;  %v2569_v54 = vrot.slane %v2561_v17, %v12357_v47  ;;  %v2591_v35 = vrot.slane %v2584_v45, %v12357_v47  ;;  %v11869_v63 = vmov 65535  }
 0x519   : > { %v2506_v49 = vcombine.high %v2502_v28, %v2502_v28  ;;  %v2593_v50 = vcombine.low %v2505_v39, %v2488_v51  ;;  %v2594_v52 = vcombine.low %v2502_v28, %v2504_v38  ;;  %v2602_v57 = vrot.slane %v2592_v40, %v12357_v47 }
 0x51a   : > { %v2576_v29 = vrot.slane %v2562_v42, %v12357_v47  ;;  %v2821_v33 = vsel %vm2819_vm13, 4294967295, %v11869_v63 }
 0x51b   : > { %v2595_v34 = vcombine.low %v2506_v49, %v2521_v46  ;;  %v2609_v58 = vrot.slane %v2593_v50, %v12357_v47  ;;  %v2616_v60 = vrot.slane %v2594_v52, %v12357_v47  ;;  %v12466_v51 = vsel %vm2820_vm14, %v2821_v33, 0 }
 0x51c   : > { %v2577_v27 = vcombine.low %v2569_v54, %v2576_v29 }
 0x51d   : > { %v2623_v61 = vrot.slane %v2595_v34, %v12357_v47  ;;  %v2624_v62 = vcombine.low %v2602_v57, %v2609_v58 }
 0x51e   : > { %v12435_v59 = vpack.c.bf16 %v2591_v35, %v2577_v27 }
 0x51f   : > { %v2625_v5 = vcombine.low %v2616_v60, %v2623_v61  ;;  %v2632_v6 = vrot.slane %v2624_v62, %v12357_v47 }
 0x520   : > { %2666 = vrot.lane.b32.xlu1 %v12435_v59, %s11864_s17 }
 0x521   : > { %v2639_v8 = vrot.slane %v2625_v5, %v12357_v47 }
 0x523   : > { %v2640_v10 = vcombine.low %v2632_v6, %v2639_v8 }
 0x525   : > { %v12443_v11 = vpack.c.bf16 %v2654_v20, %v2640_v10 }
 0x527   : > { %2717 = vrot.lane.b32.xlu1 %v12443_v11, %s11864_s17 }
 0x592   : > { %v2667_v7 = vpop.permute.xlu1 %2666 }
 0x593   : > { %v2673_v13 = vsel %vm2668_vm10, %v2667_v7, 0 }
 0x594   : > { %11290 = vmatpush3.bf16.xpose.msra.mxu1 %v2673_v13 }
 0x595   : > { %11295 = vmatprep.subr.bf16.mxu1 %v11866_v48 }
 0x599   : > { %v2718_v12 = vpop.permute.xlu1 %2717 }
 0x59a   : > { %v2723_v19 = vsel %vm2668_vm10, %v2718_v12, 0 }
 0x59b   : > { %11292 = vmatmul.mubr.msk.bf16.vlgmr.msra.gmra.mxu1 %vm2668_vm10, %v12435_v59 }
 0x59c   : > { %11296 = vmatpush3.bf16.xpose.msra.mxu1 %v2723_v19  ;;  %11297 = vmatprep.mubr.msk.bf16.mxu1 %vm11867_vm9, %v11866_v48 }
 0x59d   : > { %11301 = vmatprep.subr.bf16.mxu1 %v11866_v48 }
 0x5a3   : > { %11298 = vmatmul.mubr.msk.bf16.vlgmr.msra.gmra.mxu1 %vm2668_vm10, %v12443_v11 }
 0x5a4   : > { %11303 = vmatprep.mubr.msk.bf16.mxu1 %vm11867_vm9, %v11866_v48 }
 0x65b   : > { %v2709_v9 = vpop.f32.mrf.mxu1 }
 0x65c   : > { %v2767_v15 = vsel %vm2766_vm11, %v2709_v9, -inf }
 0x65d   : > { %2768 = vmax.xlane.f32.xlu0 %v2767_v15  ;;  %v11293_v16 = vpop.f32.mrf.mxu1 }
 0x65f   : > { %v2712_v18 = vpop.f32.mrf.mxu1 }
 0x660   : > { %v2771_v32 = vsel %vm2770_vm12, %v2712_v18, -inf }
 0x661   : > { %v11294_v55 = vpop.f32.mrf.mxu1 }
 0x663   : > { %v2759_v21 = vpop.f32.mrf.mxu1 }
 0x664   : > { %v2774_v22 = vsel %vm2766_vm11, %v2759_v21, -inf }
 0x665   : > { %2775 = vmax.xlane.f32.xlu1 %v2774_v22  ;;  %v11299_v25 = vpop.f32.mrf.mxu1 }
 0x667   : > { %v2762_v26 = vpop.f32.mrf.mxu1 }
 0x668   : > { %v2777_v23 = vsel %vm2770_vm12, %v2762_v26, -inf }
 0x669   : > { %2778 = vmax.xlane.f32.xlu0 %v2777_v23  ;;  %v11300_v31 = vpop.f32.mrf.mxu1 }
 0x66d   : > { %2772 = vmax.xlane.f32.xlu0 %v2771_v32 }
 0x676   : > { %2867 = vrot.lane.b32.xlu1 %v12443_v11, %s11868_s27 }
 0x6e6   : > { %v2769_v43 = vpop.xlane.xlu0 %2768 }
 0x6e7   : > { %v2780_v3 = vsub.f32 %v2709_v9, %v2769_v43 }
 0x6e9   : > { %v2784_v44 = vmul.f32 1.442695, %v2780_v3 }
 0x6eb   : > { %11649 = vpow2.f32 %v2784_v44 }
 0x6ee   : > { %v2776_v41 = vpop.xlane.xlu1 %2775 }
 0x6ef   : > { %v2782_v1 = vsub.f32 %v2759_v21, %v2776_v41 }
 0x6f1   : > { %v2788_v56 = vmul.f32 1.442695, %v2782_v1 }
 0x6f2   : > { %v2868_v14 = vpop.permute.xlu1 %2867  ;;  %v2779_v24 = vpop.xlane.xlu0 %2778 }
 0x6f3   : > { %11651 = vpow2.f32 %v2788_v56  ;;  %v2873_v36 = vand.u32 %v2868_v14, %v12466_v51  ;;  %v2783_v37 = vsub.f32 %v2762_v26, %v2779_v24 }
 0x6f5   : > { %11308 = vmatpush3.bf16.msra.mxu0 %v2873_v36  ;;  %v2790_v39 = vmul.f32 1.442695, %v2783_v37 }
 0x6f6   : > { %v2773_v17 = vpop.xlane.xlu0 %2772  ;;  %11319 = vmatprep.subr.bf16.mxu0 %v11866_v48 }
 0x6f7   : > { %v2781_v28 = vsub.f32 %v2712_v18, %v2773_v17 }
 0x6f8   : > { %v11650_v38 = vpop.eup %11649 }
 0x6f9   : > { %v2786_v40 = vmul.f32 1.442695, %v2781_v28  ;;  %v2792_v42 = vsel %vm2766_vm11, %v11650_v38, 0.0 }
 0x6fa   : > { %2793 = vadd.xlane.f32.xlu1 %v2792_v42 }
 0x6fb   : > { %11653 = vpow2.f32 %v2786_v40 }
 0x6fc   : > { %11655 = vpow2.f32 %v2790_v39 }
 0x700   : > { %v11652_v45 = vpop.eup %11651 }
 0x701   : > { %v2798_v46 = vsel %vm2766_vm11, %v11652_v45, 0.0 }
 0x702   : > { %2799 = vadd.xlane.f32.xlu1 %v2798_v46 }
 0x708   : > { %v11654_v49 = vpop.eup %11653 }
 0x709   : > { %v2795_v50 = vsel %vm2770_vm12, %v11654_v49, 0.0  ;;  %v11656_v52 = vpop.eup %11655 }
 0x70a   : > { %2796 = vadd.xlane.f32.xlu0 %v2795_v50  ;;  %v2801_v53 = vsel %vm2770_vm12, %v11656_v52, 0.0 }
 0x70e   : > { %2802 = vadd.xlane.f32.xlu0 %v2801_v53 }
 0x713   : > { %2971 = vrot.lane.b32.xlu1 %v12443_v11, %s11870_s20 }
 0x717   : > { %2920 = vrot.lane.b32.xlu1 %v12435_v59, %s11870_s20 }
 0x71b   : > { %2969 = vrot.lane.b32.xlu1 %v12443_v11, %s11871_s3 }
 0x724   : > { %2814 = vrot.lane.b32.xlu0 %v12435_v59, %s11868_s27 }
 0x728   : > { %2918 = vrot.lane.b32.xlu0 %v12435_v59, %s11871_s3 }
 0x783   : > { %v2794_v54 = vpop.xlane.xlu1 %2793 }
 0x784   : > { %11657 = vrcp.f32 %v2794_v54 }
 0x78b   : > { %v2800_v29 = vpop.xlane.xlu1 %2799 }
 0x78f   : > { %v2972_v35 = vpop.permute.xlu1 %2971 }
 0x790   : > { %v2977_v19 = vsel %vm2668_vm10, %v2972_v35, 0 }
 0x791   : > { %v11658_v60 = vpop.eup %11657 }
 0x792   : > { %v2808_v62 = vmul.f32 %v11658_v60, %v11650_v38 }
 0x793   : > { %v2797_v34 = vpop.xlane.xlu0 %2796  ;;  %v2921_v6 = vpop.permute.xlu1 %2920 }
 0x794   : > { %11659 = vrcp.f32 %v2797_v34  ;;  %v2926_v10 = vsel %vm2668_vm10, %v2921_v6, 0 }
 0x795   : > { %11661 = vrcp.f32 %v2800_v29 }
 0x797   : > { %v2803_v57 = vpop.xlane.xlu0 %2802  ;;  %v2970_v15 = vpop.permute.xlu1 %2969 }
 0x798   : > { %11663 = vrcp.f32 %v2803_v57 }
 0x79b   : > { %v2815_v58 = vpop.permute.xlu0 %2814 }
 0x79c   : > { %v2824_v27 = vand.u32 %v12466_v51, %v2815_v58 }
 0x79e   : > { %11302 = vmatpush3.bf16.msra.mxu1 %v2824_v27 }
 0x79f   : > { %11313 = vmatprep.subr.bf16.mxu1 %v11866_v48  ;;  %v2919_v9 = vpop.permute.xlu0 %2918 }
 0x7a1   : > { %v11660_v61 = vpop.eup %11659 }
 0x7a2   : > { %v2809_v4 = vmul.f32 %v11660_v61, %v11654_v49  ;;  %v11662_v5 = vpop.eup %11661 }
 0x7a3   : > { %v2810_v7 = vmul.f32 %v11662_v5, %v11652_v45 }
 0x7a4   : > { %v2812_v8 = vpack.c.bf16 %v2809_v4, %v2808_v62 }
 0x7a5   : > { %v11664_v20 = vpop.eup %11663 }
 0x7a6   : > { %11304 = vmatmul.mubr.msk.bf16.vlgmr.msra.gmra.mxu1 %vm2766_vm11, %v2812_v8  ;;  %v2811_v13 = vmul.f32 %v11664_v20, %v11656_v52 }
 0x7a7   : > { %11314 = vmatpush3.bf16.xpose.msra.mxu1 %v2926_v10  ;;  %11315 = vmatprep.mubr.msk.bf16.mxu1 %vm11867_vm9, %v11866_v48 }
 0x7a8   : > { %v2813_v12 = vpack.c.bf16 %v2811_v13, %v2810_v7  ;;  %11325 = vmatprep.subr.bf16.mxu1 %v11866_v48 }
 0x7aa   : > { %11310 = vmatmul.mubr.msk.bf16.vlgmr.msra.gmra.mxu0 %vm2766_vm11, %v2813_v12 }
 0x7ab   : > { %11320 = vmatpush3.bf16.xpose.msra.mxu0 %v2977_v19  ;;  %11321 = vmatprep.mubr.msk.bf16.mxu0 %vm11867_vm9, %v11866_v48 }
 0x7ac   : > { %11331 = vmatprep.subr.bf16.mxu0 %v11866_v48 }
 0x7ae   : > { %11316 = vmatmul.mubr.msk.bf16.vlgmr.msra.gmra.mxu1 %vm2668_vm10, %v2919_v9 }
 0x7af   : > { %11327 = vmatprep.mubr.msk.bf16.mxu1 %vm11867_vm9, %v11866_v48 }
 0x7b2   : > { %11322 = vmatmul.mubr.msk.bf16.vlgmr.msra.gmra.mxu0 %vm2668_vm10, %v2970_v15 }
 0x7b3   : > { %11333 = vmatprep.mubr.msk.bf16.mxu0 %vm11867_vm9, %v11866_v48 }
 0x866   : > { %v2860_v16 = vpop.f32.mrf.mxu1 }
 0x868   : > { %v11305_v18 = vpop.f32.mrf.mxu1 }
 0x86a   : > { %v2863_v55 = vpop.f32.mrf.mxu1  ;;  %v2909_v21 = vpop.f32.mrf.mxu0 }
 0x86b   : > { %v2916_v22 = vpack.c.bf16 %v2863_v55, %v2860_v16  ;;  %v10952_v25 = vpack.c.bf16 %v2863_v55, %v2863_v55 }
 0x86c   : > { %v11306_v26 = vpop.f32.mrf.mxu1  ;;  %v11311_v23 = vpop.f32.mrf.mxu0 }
 0x86d   : > { %v3402_v31 = vrot.slane %v2916_v22, %v12357_v47  ;;  %v3409_v63 = vrot.slane %v10952_v25, %v12357_v47 }
 0x86e   : > { %v2912_v32 = vpop.f32.mrf.mxu0  ;;  %v2962_v43 = vpop.f32.mrf.mxu1 }
 0x86f   : > { %v3410_v3 = vcombine.high %v3402_v31, %v3402_v31  ;;  %v2917_v44 = vpack.c.bf16 %v2912_v32, %v2909_v21  ;;  %v10953_v33 = vpack.c.bf16 %v2912_v32, %v2912_v32  ;;  %v3020_v1 = vsel %vm2766_vm11, %v2962_v43, -inf }
 0x870   : > { %v11312_v41 = vpop.f32.mrf.mxu0  ;;  %v11317_v56 = vpop.f32.mrf.mxu1  ;;  %3021 = vmax.xlane.f32.xlu0 %v3020_v1  ;;  %v3417_v36 = vrot.slane %v3402_v31, %v12357_v47  ;;  %v3424_v39 = vrot.slane %v3409_v63, %v12357_v47 }
 0x871   : > { %v3431_v14 = vrot.slane %v3410_v3, %v12357_v47  ;;  %v3441_v24 = vrot.slane %v2917_v44, %v12357_v47  ;;  %v3448_v42 = vrot.slane %v10953_v33, %v12357_v47 }
 0x872   : > { %v2965_v37 = vpop.f32.mrf.mxu1  ;;  %v3013_v17 = vpop.f32.mrf.mxu0 }
 0x873   : > { %v3449_v28 = vcombine.high %v3441_v24, %v3441_v24  ;;  %v3456_v38 = vrot.slane %v3441_v24, %v12357_v47  ;;  %v3500_v40 = vcombine.low %v3417_v36, %v3431_v14  ;;  %v3026_v45 = vsel %vm2766_vm11, %v3013_v17, -inf }
 0x874   : > { %v11318_v46 = vpop.f32.mrf.mxu1  ;;  %v11323_v49 = vpop.f32.mrf.mxu0  ;;  %v10959_v50 = vcombine.high %v3417_v36, %v3431_v14  ;;  %3027 = vmax.xlane.f32.xlu1 %v3026_v45  ;;  %v3463_v61 = vrot.slane %v3448_v42, %v12357_v47  ;;  %v3023_v12 = vsel %vm2770_vm12, %v2965_v37, -inf  ;;  %v2661_v45 = vld [vmem:[%s11986_s30] sm:$0xf] }
 0x875   : > { %v3470_v52 = vrot.slane %v3449_v28, %v12357_v47  ;;  %v3471_v53 = vcombine.high %v3456_v38, %v3456_v38  ;;  %v3483_v54 = vunpack.i.h.s16 %v3456_v38  ;;  %v10954_v29 = vpack.i.b16 %v3456_v38, %v3424_v39 }
 0x876   : > { %v3016_v34 = vpop.f32.mrf.mxu0  ;;  %v3510_v60 = vrot.slane %v3500_v40, %v12357_v47  ;;  %v3517_v5 = vrot.slane %v10959_v50, %v12357_v47 }
 0x877   : > { %v3472_v57 = vcombine.high %v3470_v52, %v3470_v52  ;;  %v3485_v58 = vunpack.i.h.s16 %v3470_v52  ;;  %v3487_v27 = vunpack.i.h.s16 %v3471_v53  ;;  %v3029_v35 = vsel %vm2770_vm12, %v3016_v34, -inf }
 0x878   : > { %v10955_v62 = vpack.i.b16 %v3470_v52, %v3483_v54  ;;  %v11324_v4 = vpop.f32.mrf.mxu0  ;;  %3030 = vmax.xlane.f32.xlu0 %v3029_v35  ;;  %v3532_v15 = vcombine.low %v3510_v60, %v3517_v5 }
 0x879   : > { %v3489_v6 = vunpack.i.h.s16 %v3472_v57  ;;  %v10956_v8 = vpack.i.b16 %v3471_v53, %v3485_v58  ;;  %v10957_v20 = vpack.i.b16 %v3472_v57, %v3487_v27 }
 0x87a   : > { %v3502_v10 = vcombine.low %v10954_v29, %v10955_v62  ;;  %v12523_v18 = vrot.slane %v3532_v15, %v12357_v47  ;;  %v3570_v62 = vsel %vm2819_vm13, %v2661_v45, 0 }
 0x87b   : > { %v12517_v7 = vpack.i.b16 %v3463_v61, %v3489_v6  ;;  %v3503_v13 = vcombine.low %v10956_v8, %v10957_v20 }
 0x87c   : > { %3024 = vmax.xlane.f32.xlu0 %v3023_v12  ;;  %v3524_v19 = vrot.slane %v3502_v10, %v12357_v47 }
 0x87d   : > { %v3531_v9 = vrot.slane %v3503_v13, %v12357_v47  ;;  %v3555_v4 = vrot.slane %v12517_v7, %v12357_v47  ;;  %v2662_v7 = vld [vmem:[%s11986_s30 + $0x4] sm:$0xf] }
 0x87e   : > { %v3343_v13 = vsel %vm2819_vm13, %v2662_v7, 0 }
 0x87f   : > { %v3533_v16 = vcombine.low %v3524_v19, %v3531_v9  ;;  %v3562_v6 = vrot.slane %v3555_v4, %v12357_v47 }
 0x881   : > { %v12526_v55 = vrot.slane %v3533_v16, %v12357_v47 }
 0x883   : > { %v3548_v21 = vcombine.low %v12523_v18, %v12526_v55 }
 0x8f9   : > { %v3022_v22 = vpop.xlane.xlu0 %3021 }
 0x8fa   : > { %v3032_v25 = vsub.f32 %v2962_v43, %v3022_v22 }
 0x8fc   : > { %v3036_v26 = vmul.f32 1.442695, %v3032_v25 }
 0x8fd   : > { %v3028_v23 = vpop.xlane.xlu1 %3027 }
 0x8fe   : > { %11665 = vpow2.f32 %v3036_v26  ;;  %v3034_v31 = vsub.f32 %v3013_v17, %v3028_v23 }
 0x900   : > { %v3040_v32 = vmul.f32 1.442695, %v3034_v31 }
 0x901   : > { %v3031_v3 = vpop.xlane.xlu0 %3030 }
 0x902   : > { %11667 = vpow2.f32 %v3040_v32  ;;  %v3035_v44 = vsub.f32 %v3016_v34, %v3031_v3 }
 0x904   : > { %v3042_v41 = vmul.f32 1.442695, %v3035_v44 }
 0x905   : > { %v3025_v63 = vpop.xlane.xlu0 %3024 }
 0x906   : > { %v3033_v33 = vsub.f32 %v2965_v37, %v3025_v63 }
 0x908   : > { %v3038_v1 = vmul.f32 1.442695, %v3033_v33 }
 0x90a   : > { %11669 = vpow2.f32 %v3038_v1 }
 0x90b   : > { %v11666_v56 = vpop.eup %11665  ;;  %11671 = vpow2.f32 %v3042_v41 }
 0x90c   : > { %v3044_v14 = vsel %vm2766_vm11, %v11666_v56, 0.0 }
 0x90d   : > { %3045 = vadd.xlane.f32.xlu1 %v3044_v14 }
 0x90f   : > { %v11668_v24 = vpop.eup %11667 }
 0x910   : > { %v3050_v43 = vsel %vm2766_vm11, %v11668_v24, 0.0 }
 0x911   : > { %3051 = vadd.xlane.f32.xlu1 %v3050_v43 }
 0x917   : > { %v11670_v36 = vpop.eup %11669 }
 0x918   : > { %v3047_v17 = vsel %vm2770_vm12, %v11670_v36, 0.0  ;;  %v11672_v28 = vpop.eup %11671 }
 0x919   : > { %3048 = vadd.xlane.f32.xlu0 %v3047_v17  ;;  %v3053_v37 = vsel %vm2770_vm12, %v11672_v28, 0.0 }
 0x91d   : > { %3054 = vadd.xlane.f32.xlu0 %v3053_v37 }
 0x922   : > { %3115 = vrot.lane.b32.xlu1 %v12443_v11, %s11872_s15 }
 0x926   : > { %3814 = vrot.lane.b32.xlu1 %v12443_v11, %s11873_s26 }
 0x92a   : > { %3763 = vrot.lane.b32.xlu1 %v12435_v59, %s11873_s26 }
 0x92e   : > { %3812 = vrot.lane.b32.xlu1 %v12443_v11, %s11874_s9 }
 0x933   : > { %3066 = vrot.lane.b32.xlu0 %v12435_v59, %s11872_s15  ;;  %s11879_s15 = smov 32  }
 0x937   : > { %3761 = vrot.lane.b32.xlu0 %v12435_v59, %s11874_s9 }
 0x996   : > { %v3046_v38 = vpop.xlane.xlu1 %3045 }
 0x997   : > { %11673 = vrcp.f32 %v3046_v38 }
 0x99a   : > { %v3052_v39 = vpop.xlane.xlu1 %3051 }
 0x99e   : > { %v3116_v40 = vpop.permute.xlu1 %3115 }
 0x99f   : > { %v3121_v42 = vand.u32 %v3116_v40, %v12466_v51 }
 0x9a1   : > { %11332 = vmatpush3.bf16.msra.mxu0 %v3121_v42 }
 0x9a2   : > { %v3049_v46 = vpop.xlane.xlu0 %3048  ;;  %11574 = vmatprep.subr.msk.bf16.mxu0 %vm2819_vm13, %v2661_v45  ;;  %v3815_v5 = vpop.permute.xlu1 %3814 }
 0x9a3   : > { %11675 = vrcp.f32 %v3049_v46  ;;  %v3820_v8 = vsel %vm2668_vm10, %v3815_v5, 0 }
 0x9a4   : > { %11677 = vrcp.f32 %v3052_v39  ;;  %v11674_v53 = vpop.eup %11673 }
 0x9a5   : > { %v3060_v29 = vmul.f32 %v11674_v53, %v11666_v56 }
 0x9a6   : > { %v3055_v49 = vpop.xlane.xlu0 %3054  ;;  %v12561_v20 = vpop.permute.xlu1 %3763 }
 0x9a7   : > { %11679 = vrcp.f32 %v3055_v49 }
 0x9aa   : > { %v3067_v50 = vpop.permute.xlu0 %3066  ;;  %v3813_v10 = vpop.permute.xlu1 %3812 }
 0x9ab   : > { %v3072_v52 = vand.u32 %v3067_v50, %v12466_v51 }
 0x9ad   : > { %11326 = vmatpush3.bf16.msra.mxu1 %v3072_v52 }
 0x9ae   : > { %11573 = vmatprep.subr.msk.bf16.mxu1 %vm2819_vm13, %v2662_v7 }
 0x9b0   : > { %v11676_v54 = vpop.eup %11675 }
 0x9b1   : > { %v3061_v34 = vmul.f32 %v11676_v54, %v11670_v36  ;;  %v11678_v57 = vpop.eup %11677 }
 0x9b2   : > { %v3062_v35 = vmul.f32 %v11678_v57, %v11668_v24 }
 0x9b3   : > { %v3064_v58 = vpack.c.bf16 %v3061_v34, %v3060_v29 }
 0x9b4   : > { %v11680_v27 = vpop.eup %11679 }
 0x9b5   : > { %11328 = vmatmul.mubr.msk.bf16.vlgmr.msra.gmra.mxu1 %vm2766_vm11, %v3064_v58  ;;  %v3063_v60 = vmul.f32 %v11680_v27, %v11672_v28 }
 0x9b6   : > { %11338 = vmatpush3.bf16.msra.mxu1 %v3343_v13 }
 0x9b7   : > { %v3065_v61 = vpack.c.bf16 %v3063_v60, %v3062_v35  ;;  %11349 = vmatprep.subr.bf16.mxu1 %v11866_v48 }
 0x9b9   : > { %11334 = vmatmul.mubr.msk.bf16.vlgmr.msra.gmra.mxu0 %vm2766_vm11, %v3065_v61 }
 0x9ba   : > { %11345 = vmatprep.mubr.msk.bf16.mxu0 %vm2668_vm10, %v3548_v21  ;;  %11344 = vmatpush3.bf16.msra.mxu0 %v3570_v62 }
 0x9bb   : > { %11355 = vmatprep.subr.bf16.mxu0 %v11866_v48 }
 0x9c1   : > { %11346 = vmatmul.mubr.msk.bf16.vlgmr.msra.gmra.mxu0 %vm2668_vm10, %v3562_v6 }
 0x9c2   : > { %11356 = vmatpush3.bf16.xpose.msra.mxu0 %v3820_v8  ;;  %11357 = vmatprep.mubr.msk.bf16.mxu0 %vm11867_vm9, %v11866_v48 }
 0x9c3   : > { %11367 = vmatprep.subr.bf16.mxu0 %v11866_v48 }
 0x9c9   : > { %11358 = vmatmul.mubr.msk.bf16.vlgmr.msra.gmra.mxu0 %vm2668_vm10, %v3813_v10 }
 0x9ca   : > { %11369 = vmatprep.mubr.msk.bf16.mxu0 %vm11867_vm9, %v11866_v48 }
 0xa75   : > { %v3108_v12 = vpop.f32.mrf.mxu1 }
 0xa77   : > { %v11329_v19 = vpop.f32.mrf.mxu1 }
 0xa79   : > { %v3111_v9 = vpop.f32.mrf.mxu1  ;;  %v3157_v15 = vpop.f32.mrf.mxu0 }
 0xa7a   : > { %v3164_v16 = vpack.c.bf16 %v3111_v9, %v3108_v12  ;;  %v10942_v22 = vpack.c.bf16 %v3111_v9, %v3111_v9 }
 0xa7b   : > { %v11330_v18 = vpop.f32.mrf.mxu1  ;;  %v11335_v55 = vpop.f32.mrf.mxu0 }
 0xa7c   : > { %v3175_v21 = vrot.slane %v3164_v16, %v12357_v47  ;;  %v3182_v44 = vrot.slane %v10942_v22, %v12357_v47  ;;  %v3769_v18 = vsel %vm2668_vm10, %v12561_v20, 0  ;;  %v3762_v55 = vpop.permute.xlu0 %3761 }
 0xa7d   : > { %v3160_v25 = vpop.f32.mrf.mxu0 }
 0xa7e   : > { %v3183_v26 = vcombine.high %v3175_v21, %v3175_v21  ;;  %v3165_v23 = vpack.c.bf16 %v3160_v25, %v3157_v15  ;;  %v3190_v63 = vrot.slane %v3175_v21, %v12357_v47  ;;  %v10943_v33 = vpack.c.bf16 %v3160_v25, %v3160_v25 }
 0xa7f   : > { %v11336_v31 = vpop.f32.mrf.mxu0  ;;  %v3197_v28 = vrot.slane %v3182_v44, %v12357_v47 }
 0xa80   : > { %v3204_v32 = vrot.slane %v3183_v26, %v12357_v47  ;;  %v3214_v3 = vrot.slane %v3165_v23, %v12357_v47  ;;  %v3221_v37 = vrot.slane %v10943_v33, %v12357_v47 }
 0xa81   : > { %v12578_v41 = vpop.f32.mrf.mxu0 }
 0xa82   : > { %v3222_v1 = vcombine.high %v3214_v3, %v3214_v3  ;;  %v3229_v56 = vrot.slane %v3214_v3, %v12357_v47  ;;  %v3273_v14 = vcombine.low %v3190_v63, %v3204_v32  ;;  %v10949_v43 = vcombine.high %v3190_v63, %v3204_v32 }
 0xa83   : > { %v12581_v24 = vpop.f32.mrf.mxu0  ;;  %v3236_v57 = vrot.slane %v3221_v37, %v12357_v47 }
 0xa84   : > { %v3243_v36 = vrot.slane %v3222_v1, %v12357_v47  ;;  %v3244_v17 = vcombine.high %v3229_v56, %v3229_v56  ;;  %v3256_v38 = vunpack.i.h.s16 %v3229_v56  ;;  %v3283_v46 = vrot.slane %v3273_v14, %v12357_v47 }
 0xa85   : > { %v11348_v39 = vpop.f32.mrf.mxu0  ;;  %v10944_v49 = vpack.i.b16 %v3229_v56, %v3197_v28  ;;  %v3290_v53 = vrot.slane %v10949_v43, %v12357_v47 }
 0xa86   : > { %v3245_v40 = vcombine.high %v3243_v36, %v3243_v36  ;;  %v3258_v42 = vunpack.i.h.s16 %v3243_v36  ;;  %v3260_v45 = vunpack.i.h.s16 %v3244_v17  ;;  %v10945_v50 = vpack.i.b16 %v3243_v36, %v3256_v38 }
 0xa87   : > { %v12587_v52 = vpop.f32.mrf.mxu0  ;;  %v3305_v6 = vcombine.low %v3283_v46, %v3290_v53 }
 0xa88   : > { %v3262_v54 = vunpack.i.h.s16 %v3245_v40  ;;  %v10946_v29 = vpack.i.b16 %v3244_v17, %v3258_v42  ;;  %v10947_v34 = vpack.i.b16 %v3245_v40, %v3260_v45  ;;  %v3275_v58 = vcombine.low %v10944_v49, %v10945_v50 }
 0xa89   : > { %v3856_v27 = vpop.f32.mrf.mxu0  ;;  %v3313_v19 = vrot.slane %v3305_v6, %v12357_v47 }
 0xa8a   : > { %v3276_v35 = vcombine.low %v10946_v29, %v10947_v34  ;;  %v3869_v60 = vsel %vm2766_vm11, %v3856_v27, -inf  ;;  %v10948_v61 = vpack.i.b16 %v3236_v57, %v3262_v54  ;;  %v3297_v4 = vrot.slane %v3275_v58, %v12357_v47 }
 0xa8b   : > { %3870 = vmax.xlane.f32.xlu1 %v3869_v60  ;;  %v11359_v62 = vpop.f32.mrf.mxu0 }
 0xa8c   : > { %v3304_v5 = vrot.slane %v3276_v35, %v12357_v47  ;;  %v3328_v13 = vrot.slane %v10948_v61, %v12357_v47 }
 0xa8d   : > { %v3859_v8 = vpop.f32.mrf.mxu0 }
 0xa8e   : > { %v3872_v10 = vsel %vm2770_vm12, %v3859_v8, -inf  ;;  %v3306_v7 = vcombine.low %v3297_v4, %v3304_v5  ;;  %v3335_v16 = vrot.slane %v3328_v13, %v12357_v47 }
 0xa8f   : > { %3873 = vmax.xlane.f32.xlu0 %v3872_v10  ;;  %v11360_v12 = vpop.f32.mrf.mxu0 }
 0xa90   : > { %v3320_v9 = vrot.slane %v3306_v7, %v12357_v47 }
 0xa92   : > { %v3321_v15 = vcombine.low %v3313_v19, %v3320_v9 }
 0xa94   : > { %11339 = vmatprep.mubr.msk.bf16.mxu1 %vm2668_vm10, %v3321_v15 }
 0xa95   : > { %11340 = vmatmul.mubr.msk.bf16.vlgmr.msra.gmra.mxu1 %vm2668_vm10, %v3335_v16 }
 0xa96   : > { %11350 = vmatpush3.bf16.xpose.msra.mxu1 %v3769_v18  ;;  %11351 = vmatprep.mubr.msk.bf16.mxu1 %vm11867_vm9, %v11866_v48 }
 0xa97   : > { %11361 = vmatprep.subr.bf16.mxu1 %v11866_v48 }
 0xa9d   : > { %11352 = vmatmul.mubr.msk.bf16.vlgmr.msra.gmra.mxu1 %vm2668_vm10, %v3762_v55  ;;  %v2663_v55 = vld [vmem:[%s11986_s30 + $0x8] sm:$0xf] }
 0xa9e   : > { %11363 = vmatprep.mubr.msk.bf16.mxu1 %vm11867_vm9, %v11866_v48 }
 0xb14   : > { %v3871_v21 = vpop.xlane.xlu1 %3870 }
 0xb15   : > { %v3877_v22 = vsub.f32 %v3856_v27, %v3871_v21  ;;  %v4186_v21 = vsel %vm2819_vm13, %v2663_v55, 0 }
 0xb17   : > { %v3883_v25 = vmul.f32 1.442695, %v3877_v22 }
 0xb18   : > { %v3874_v23 = vpop.xlane.xlu0 %3873 }
 0xb19   : > { %11681 = vpow2.f32 %v3883_v25  ;;  %v3878_v31 = vsub.f32 %v3859_v8, %v3874_v23 }
 0xb1b   : > { %v3885_v32 = vmul.f32 1.442695, %v3878_v31 }
 0xb1d   : > { %11683 = vpow2.f32 %v3885_v32 }
 0xb26   : > { %v11682_v26 = vpop.eup %11681 }
 0xb27   : > { %v3893_v20 = vsel %vm2766_vm11, %v11682_v26, 0.0 }
 0xb28   : > { %3894 = vadd.xlane.f32.xlu1 %v3893_v20 }
 0xb2a   : > { %v11684_v28 = vpop.eup %11683 }
 0xb2b   : > { %v3896_v37 = vsel %vm2770_vm12, %v11684_v28, 0.0 }
 0xb55   : > { %v12610_v3 = vpop.f32.mrf.mxu1 }
 0xb57   : > { %v12612_v44 = vpop.f32.mrf.mxu1 }
 0xb59   : > { %v11342_v63 = vpop.f32.mrf.mxu1 }
 0xb5b   : > { %v12614_v33 = vpop.f32.mrf.mxu1 }
 0xb5d   : > { %v3805_v1 = vpop.f32.mrf.mxu1 }
 0xb5e   : > { %v3863_v56 = vsel %vm2766_vm11, %v3805_v1, -inf }
 0xb5f   : > { %v11353_v14 = vpop.f32.mrf.mxu1  ;;  %3864 = vmax.xlane.f32.xlu0 %v3863_v56 }
 0xb61   : > { %v3808_v43 = vpop.f32.mrf.mxu1 }
 0xb62   : > { %v3866_v36 = vsel %vm2770_vm12, %v3808_v43, -inf }
 0xb63   : > { %v11354_v17 = vpop.f32.mrf.mxu1  ;;  %3867 = vmax.xlane.f32.xlu0 %v3866_v36 }
 0xb67   : > { %3897 = vadd.xlane.f32.xlu0 %v3896_v37 }
 0xbb1   : > { %v3895_v34 = vpop.xlane.xlu1 %3894 }
 0xbe8   : > { %v3865_v38 = vpop.xlane.xlu0 %3864 }
 0xbe9   : > { %v3875_v39 = vsub.f32 %v3805_v1, %v3865_v38 }
 0xbeb   : > { %v3879_v40 = vmul.f32 1.442695, %v3875_v39 }
 0xbec   : > { %v3868_v42 = vpop.xlane.xlu0 %3867 }
 0xbed   : > { %11685 = vpow2.f32 %v3879_v40  ;;  %v3876_v45 = vsub.f32 %v3808_v43, %v3868_v42 }
 0xbef   : > { %v3881_v46 = vmul.f32 1.442695, %v3876_v45 }
 0xbf0   : > { %v3898_v29 = vpop.xlane.xlu0 %3897 }
 0xbf1   : > { %11687 = vpow2.f32 %v3881_v46 }
 0xbf2   : > { %11689 = vrcp.f32 %v3898_v29 }
 0xbf3   : > { %11691 = vrcp.f32 %v3895_v34 }
 0xbfa   : > { %v11686_v49 = vpop.eup %11685 }
 0xbfb   : > { %v3887_v50 = vsel %vm2766_vm11, %v11686_v49, 0.0 }
 0xbfc   : > { %3888 = vadd.xlane.f32.xlu1 %v3887_v50 }
 0xbfe   : > { %v11688_v53 = vpop.eup %11687 }
 0xbff   : > { %v3890_v54 = vsel %vm2770_vm12, %v11688_v53, 0.0  ;;  %v11690_v58 = vpop.eup %11689 }
 0xc00   : > { %3891 = vadd.xlane.f32.xlu0 %v3890_v54  ;;  %v11692_v27 = vpop.eup %11691  ;;  %v3906_v61 = vmul.f32 %v11690_v58, %v11684_v28 }
 0xc01   : > { %v3905_v4 = vmul.f32 %v11692_v27, %v11682_v26 }
 0xc03   : > { %v3908_v8 = vpack.c.bf16 %v3906_v61, %v3905_v4 }
 0xc0d   : > { %3958 = vrot.lane.b32.xlu1 %v12443_v11, %s11875_s24 }
 0xc11   : > { %4448 = vrot.lane.b32.xlu1 %v12443_v11, %s11876_s29 }
 0xc15   : > { %4397 = vrot.lane.b32.xlu1 %v12435_v59, %s11876_s29 }
 0xc16   : > { %3909 = vrot.lane.b32.xlu0 %v12435_v59, %s11875_s24 }
 0xc19   : > { %4446 = vrot.lane.b32.xlu1 %v12443_v11, %s11877_s8 }
 0xc1a   : > { %4395 = vrot.lane.b32.xlu0 %v12435_v59, %s11877_s8 }
 0xc85   : > { %v3889_v57 = vpop.xlane.xlu1 %3888 }
 0xc86   : > { %11693 = vrcp.f32 %v3889_v57 }
 0xc89   : > { %v3959_v35 = vpop.permute.xlu1 %3958  ;;  %v3892_v60 = vpop.xlane.xlu0 %3891 }
 0xc8a   : > { %v3964_v62 = vand.u32 %v3959_v35, %v12466_v51  ;;  %11695 = vrcp.f32 %v3892_v60 }
 0xc8c   : > { %11368 = vmatpush3.bf16.msra.mxu0 %v3964_v62 }
 0xc8d   : > { %v12632_v5 = vpop.permute.xlu1 %4448  ;;  %v3910_v6 = vpop.permute.xlu0 %3909  ;;  %11379 = vmatprep.subr.bf16.mxu0 %v11866_v48 }
 0xc8e   : > { %v3915_v10 = vand.u32 %v3910_v6, %v12466_v51 }
 0xc8f   : > { %11370 = vmatmul.mubr.msk.bf16.vlgmr.msra.gmra.mxu0 %vm2766_vm11, %v3908_v8 }
 0xc90   : > { %11362 = vmatpush3.bf16.msra.mxu1 %v3915_v10  ;;  %11381 = vmatprep.mubr.msk.bf16.mxu0 %vm11867_vm9, %v11866_v48 }
 0xc91   : > { %v4398_v7 = vpop.permute.xlu1 %4397  ;;  %v4396_v16 = vpop.permute.xlu0 %4395  ;;  %11575 = vmatprep.subr.msk.bf16.mxu1 %vm2819_vm13, %v2663_v55 }
 0xc92   : > { %v4403_v13 = vsel %vm2668_vm10, %v4398_v7, 0 }
 0xc93   : > { %11380 = vmatpush3.bf16.xpose.msra.mxu0 %v4403_v13  ;;  %v11694_v12 = vpop.eup %11693 }
 0xc94   : > { %11391 = vmatprep.subr.bf16.mxu0 %v11866_v48  ;;  %v3903_v9 = vmul.f32 %v11694_v12, %v11686_v49 }
 0xc97   : > { %v11696_v19 = vpop.eup %11695 }
 0xc98   : > { %v3904_v15 = vmul.f32 %v11696_v19, %v11688_v53 }
 0xc9a   : > { %11382 = vmatmul.mubr.msk.bf16.vlgmr.msra.gmra.mxu0 %vm2668_vm10, %v4396_v16  ;;  %v3907_v18 = vpack.c.bf16 %v3904_v15, %v3903_v9 }
 0xc9b   : > { %11393 = vmatprep.mubr.msk.bf16.mxu0 %vm11867_vm9, %v11866_v48 }
 0xc9c   : > { %11364 = vmatmul.mubr.msk.bf16.vlgmr.msra.gmra.mxu1 %vm2766_vm11, %v3907_v18 }
 0xc9d   : > { %11374 = vmatpush3.bf16.msra.mxu1 %v4186_v21 }
 0xc9e   : > { %11385 = vmatprep.subr.bf16.mxu1 %v11866_v48 }
 0xd4f   : > { %v4000_v22 = vpop.f32.mrf.mxu0 }
 0xd51   : > { %v11371_v25 = vpop.f32.mrf.mxu0 }
 0xd53   : > { %v4003_v26 = vpop.f32.mrf.mxu0 }
 0xd54   : > { %v4008_v20 = vpack.c.bf16 %v4003_v26, %v4000_v22  ;;  %v10967_v42 = vpack.c.bf16 %v4003_v26, %v4003_v26 }
 0xd55   : > { %v11372_v23 = vpop.f32.mrf.mxu0 }
 0xd56   : > { %v4057_v31 = vrot.slane %v4008_v20, %v12357_v47  ;;  %v4064_v27 = vrot.slane %v10967_v42, %v12357_v47 }
 0xd58   : > { %v4065_v32 = vcombine.high %v4057_v31, %v4057_v31  ;;  %v4072_v63 = vrot.slane %v4057_v31, %v12357_v47  ;;  %v4079_v7 = vrot.slane %v4064_v27, %v12357_v47 }
 0xd5a   : > { %v12651_v1 = vpop.f32.mrf.mxu0  ;;  %v4086_v56 = vrot.slane %v4065_v32, %v12357_v47  ;;  %v4087_v14 = vcombine.high %v4072_v63, %v4072_v63  ;;  %v4099_v53 = vunpack.i.h.s16 %v4072_v63  ;;  %v4454_v32 = vsel %vm2668_vm10, %v12632_v5, 0 }
 0xd5b   : > { %v4497_v43 = vsel %vm2766_vm11, %v12651_v1, -inf  ;;  %v3615_v5 = vadd.f32 %v12578_v41, %v12610_v3 }
 0xd5c   : > { %4498 = vmax.xlane.f32.xlu0 %v4497_v43  ;;  %v3951_v36 = vpop.f32.mrf.mxu1  ;;  %v11383_v17 = vpop.f32.mrf.mxu0  ;;  %v4088_v38 = vcombine.high %v4086_v56, %v4086_v56  ;;  %v4101_v39 = vunpack.i.h.s16 %v4086_v56  ;;  %v4103_v40 = vunpack.i.h.s16 %v4087_v14  ;;  %v10969_v62 = vpack.i.b16 %v4086_v56, %v4099_v53 }
 0xd5d   : > { %v3607_v56 = vadd.f32 %v12581_v24, %v12612_v44  ;;  %v3610_v43 = vadd.f32 %v12587_v52, %v12614_v33 }
 0xd5e   : > { %v11365_v28 = vpop.f32.mrf.mxu1  ;;  %v12656_v37 = vpop.f32.mrf.mxu0  ;;  %v10970_v29 = vpack.i.b16 %v4087_v14, %v4101_v39  ;;  %v10971_v34 = vpack.i.b16 %v4088_v38, %v4103_v40  ;;  %v4105_v61 = vunpack.i.h.s16 %v4088_v38  ;;  %v3727_v38 = vrot.slane %v3615_v5, %v12357_v47 }
 0xd5f   : > { %v3623_v14 = vcombine.high %v3607_v56, %v3607_v56  ;;  %v3630_v17 = vrot.slane %v3607_v56, %v12357_v47  ;;  %v3672_v40 = vcombine.high %v3610_v43, %v3610_v43  ;;  %v3679_v24 = vrot.slane %v3610_v43, %v12357_v47 }
 0xd60   : > { %v3954_v45 = vpop.f32.mrf.mxu1  ;;  %v11384_v46 = vpop.f32.mrf.mxu0  ;;  %v4119_v4 = vcombine.low %v10970_v29, %v10971_v34  ;;  %v10972_v9 = vpack.i.b16 %v4079_v7, %v4105_v61  ;;  %v3728_v44 = vcombine.high %v3727_v38, %v3727_v38 }
 0xd61   : > { %v4007_v49 = vpack.c.bf16 %v3954_v45, %v3951_v36  ;;  %v10966_v50 = vpack.c.bf16 %v3954_v45, %v3954_v45  ;;  %v3637_v28 = vrot.slane %v3623_v14, %v12357_v47  ;;  %v3638_v42 = vcombine.high %v3630_v17, %v3630_v17 }
 0xd62   : > { %v11366_v54 = vpop.f32.mrf.mxu1  ;;  %v4147_v55 = vrot.slane %v4119_v4, %v12357_v47  ;;  %v4171_v25 = vrot.slane %v10972_v9, %v12357_v47  ;;  %v3646_v41 = vrot.slane %v3630_v17, %v12357_v47  ;;  %v3686_v52 = vrot.slane %v3672_v40, %v12357_v47 }
 0xd63   : > { %v4018_v57 = vrot.slane %v4007_v49, %v12357_v47  ;;  %v4025_v58 = vrot.slane %v10966_v50, %v12357_v47  ;;  %v3639_v45 = vcombine.high %v3637_v28, %v3637_v28  ;;  %v3653_v3 = vrot.slane %v3637_v28, %v12357_v47 }
 0xd64   : > { %v4178_v31 = vrot.slane %v4171_v25, %v12357_v47  ;;  %v3660_v33 = vrot.slane %v3638_v42, %v12357_v47  ;;  %v3687_v50 = vcombine.high %v3679_v24, %v3679_v24  ;;  %v3742_v54 = vrot.slane %v3728_v44, %v12357_v47 }
 0xd65   : > { %v4026_v35 = vcombine.high %v4018_v57, %v4018_v57  ;;  %v4040_v60 = vrot.slane %v4025_v58, %v12357_v47  ;;  %v4033_v6 = vrot.slane %v4018_v57, %v12357_v47  ;;  %v3667_v49 = vrot.slane %v3639_v45, %v12357_v47 }
 0xd66   : > { %v3668_v34 = vcombine.high %v3646_v41, %v3646_v41  ;;  %v3688_v57 = vcombine.high %v3686_v52, %v3686_v52  ;;  %v12703_v58 = vrot.slane %v3679_v24, %v12357_v47  ;;  %v12706_v27 = vrot.slane %v3686_v52, %v12357_v47 }
 0xd67   : > { %v4047_v8 = vrot.slane %v4026_v35, %v12357_v47  ;;  %v10968_v10 = vpack.i.b16 %v4072_v63, %v4040_v60  ;;  %v4447_v63 = vpop.permute.xlu1 %4446  ;;  %v3709_v7 = vrot.slane %v3687_v50, %v12357_v47 }
 0xd69   : > { %v4116_v13 = vcombine.low %v4033_v6, %v4047_v8  ;;  %v10973_v12 = vcombine.high %v4033_v6, %v4047_v8  ;;  %v4118_v19 = vcombine.low %v10968_v10, %v10969_v62  ;;  %v3669_v6 = vcombine.high %v3653_v3, %v3653_v3 }
 0xd6a   : > { %v3670_v8 = vcombine.high %v3660_v33, %v3660_v33  ;;  %v3671_v10 = vcombine.high %v3667_v49, %v3667_v49 }
 0xd6b   : > { %v4126_v15 = vrot.slane %v4116_v13, %v12357_v47  ;;  %v4133_v16 = vrot.slane %v10973_v12, %v12357_v47  ;;  %v4140_v18 = vrot.slane %v4118_v19, %v12357_v47 }
 0xd6d   : > { %v4148_v21 = vcombine.low %v4126_v15, %v4133_v16  ;;  %v4149_v22 = vcombine.low %v4140_v18, %v4147_v55  ;;  %v3716_v16 = vrot.slane %v3688_v57, %v12357_v47  ;;  %v3717_v18 = vcombine.high %v12703_v58, %v12703_v58 }
 0xd6e   : > { %v3718_v55 = vcombine.high %v12706_v27, %v12706_v27 }
 0xd6f   : > { %v4156_v26 = vrot.slane %v4148_v21, %v12357_v47  ;;  %v4163_v20 = vrot.slane %v4149_v22, %v12357_v47 }
 0xd71   : > { %v4164_v23 = vcombine.low %v4156_v26, %v4163_v20 }
 0xd73   : > { %11375 = vmatprep.mubr.msk.bf16.mxu1 %vm2668_vm10, %v4164_v23 }
 0xd74   : > { %11376 = vmatmul.mubr.msk.bf16.vlgmr.msra.gmra.mxu1 %vm2668_vm10, %v4178_v31 }
 0xd75   : > { %11386 = vmatpush3.bf16.xpose.msra.mxu1 %v4454_v32  ;;  %11387 = vmatprep.mubr.msk.bf16.mxu1 %vm11867_vm9, %v11866_v48 }
 0xd76   : > { %11397 = vmatprep.subr.bf16.mxu1 %v11866_v48 }
 0xd7c   : > { %11388 = vmatmul.mubr.msk.bf16.vlgmr.msra.gmra.mxu1 %vm2668_vm10, %v4447_v63 }
 0xd7d   : > { %11399 = vmatprep.mubr.msk.bf16.mxu1 %vm11867_vm9, %v11866_v48 }
 0xde5   : > { %v4499_v36 = vpop.xlane.xlu0 %4498 }
 0xde6   : > { %v4509_v39 = vsub.f32 %v12651_v1, %v4499_v36  ;;  %v3735_v1 = vrot.slane %v3727_v38, %v12357_v47 }
 0xde8   : > { %v4513_v46 = vmul.f32 1.442695, %v4509_v39 }
 0xdea   : > { %11697 = vpow2.f32 %v4513_v46 }
 0xe34   : > { %v11377_v53 = vpop.f32.mrf.mxu1 }
 0xe35   : > { %v4343_v29 = vrot.slane %v11377_v53, %v12357_v47  ;;  %v3719_v53 = vcombine.high %v3709_v7, %v3709_v7 }
 0xe36   : > { %v4222_v35 = vpop.f32.mrf.mxu1 }
 0xe37   : > { %v4344_v60 = vcombine.high %v4343_v29, %v4343_v29  ;;  %v4351_v61 = vrot.slane %v4343_v29, %v12357_v47  ;;  %v4239_v62 = vcombine.high %v4222_v35, %v4222_v35  ;;  %v4246_v4 = vrot.slane %v4222_v35, %v12357_v47 }
 0xe38   : > { %v11378_v13 = vpop.f32.mrf.mxu1 }
 0xe39   : > { %v4358_v12 = vrot.slane %v4344_v60, %v12357_v47  ;;  %v12712_v19 = vadd.f32 %v4351_v61, %v3735_v1  ;;  %v4253_v9 = vrot.slane %v4239_v62, %v12357_v47  ;;  %v4254_v15 = vcombine.high %v4246_v4, %v4246_v4 }
 0xe3a   : > { %v4262_v21 = vrot.slane %v4246_v4, %v12357_v47  ;;  %v4225_v22 = vpop.f32.mrf.mxu1  ;;  %v3720_v62 = vcombine.high %v3716_v16, %v3716_v16 }
 0xe3b   : > { %v12721_v25 = vadd.f32 %v4358_v12, %v3742_v54  ;;  %v4255_v26 = vcombine.high %v4253_v9, %v4253_v9  ;;  %v4269_v20 = vrot.slane %v4253_v9, %v12357_v47  ;;  %v4276_v23 = vrot.slane %v4254_v15, %v12357_v47 }
 0xe3c   : > { %v4284_v31 = vcombine.high %v4262_v21, %v4262_v21  ;;  %v12725_v32 = vadd.f32 %v4262_v21, %v3646_v41  ;;  %v4288_v63 = vcombine.high %v4225_v22, %v4225_v22  ;;  %v4295_v56 = vrot.slane %v4225_v22, %v12357_v47  ;;  %v4490_v14 = vpop.f32.mrf.mxu1 }
 0xe3d   : > { %v4283_v5 = vrot.slane %v4255_v26, %v12357_v47  ;;  %v4285_v43 = vcombine.high %v4269_v20, %v4269_v20  ;;  %v4286_v36 = vcombine.high %v4276_v23, %v4276_v23  ;;  %v12729_v17 = vadd.f32 %v4276_v23, %v3660_v33 }
 0xe3e   : > { %v12731_v28 = vadd.f32 %v4284_v31, %v3668_v34  ;;  %v12733_v38 = vadd.f32 %v4269_v20, %v3653_v3  ;;  %v4302_v39 = vrot.slane %v4288_v63, %v12357_v47  ;;  %v4303_v40 = vcombine.high %v4295_v56, %v4295_v56  ;;  %v11389_v42 = vpop.f32.mrf.mxu1  ;;  %v11698_v34 = vpop.eup %11697 }
 0xe3f   : > { %v4287_v45 = vcombine.high %v4283_v5, %v4283_v5  ;;  %v12736_v24 = vadd.f32 %v4286_v36, %v3670_v8  ;;  %v12738_v44 = vadd.f32 %v4283_v5, %v3667_v49  ;;  %v12740_v46 = vadd.f32 %v4285_v43, %v3669_v6 }
 0xe40   : > { %v4304_v41 = vcombine.high %v4302_v39, %v4302_v39  ;;  %v4311_v52 = vrot.slane %v4295_v56, %v12357_v47  ;;  %v4318_v33 = vrot.slane %v4302_v39, %v12357_v47  ;;  %v4325_v50 = vrot.slane %v4303_v40, %v12357_v47  ;;  %v4493_v3 = vpop.f32.mrf.mxu1 }
 0xe41   : > { %v12745_v1 = vadd.f32 %v4287_v45, %v3671_v10  ;;  %v4503_v54 = vsel %vm2766_vm11, %v4490_v14, -inf  ;;  %v4506_v29 = vsel %vm2770_vm12, %v4493_v3, -inf  ;;  %v4521_v21 = vsel %vm2766_vm11, %v11698_v34, 0.0 }
 0xe42   : > { %v4332_v49 = vrot.slane %v4304_v41, %v12357_v47  ;;  %v4333_v57 = vcombine.high %v4311_v52, %v4311_v52  ;;  %v4334_v35 = vcombine.high %v4318_v33, %v4318_v33  ;;  %v4335_v60 = vcombine.high %v4325_v50, %v4325_v50  ;;  %4504 = vmax.xlane.f32.xlu1 %v4503_v54  ;;  %v11390_v61 = vpop.f32.mrf.mxu1 }
 0xe43   : > { %v12751_v4 = vadd.f32 %v4311_v52, %v12703_v58  ;;  %v12753_v6 = vadd.f32 %v4325_v50, %v3709_v7  ;;  %v12756_v8 = vadd.f32 %v4318_v33, %v12706_v27  ;;  %4507 = vmax.xlane.f32.xlu0 %v4506_v29  ;;  %v4500_v58 = vsel %vm2770_vm12, %v12656_v37, -inf }
 0xe44   : > { %v4336_v10 = vcombine.high %v4332_v49, %v4332_v49  ;;  %v12758_v13 = vadd.f32 %v4333_v57, %v3717_v18  ;;  %v12760_v12 = vadd.f32 %v4335_v60, %v3719_v53  ;;  %v12762_v9 = vadd.f32 %v4332_v49, %v3716_v16  ;;  %v2664_v60 = vld [vmem:[%s11986_s30 + $0xc] sm:$0xf]  ;;  %s13937_s30 = sld [smem:[#allocation9_spill]] (!%p11110_p5) }
 0xe45   : > { %v12764_v15 = vadd.f32 %v4334_v35, %v3718_v55  ;;  %v4820_v61 = vsel %vm2819_vm13, %v2664_v60, 0 }
 0xe46   : > { %v12767_v22 = vadd.f32 %v4336_v10, %v3720_v62  ;;  %4522 = vadd.xlane.f32.xlu1 %v4521_v21  ;;  %v12784_v62 = vld [vmem:[#allocation3 + $0x18] sm:$0x1]  ;;  %v12793_v21 = vld [vmem:[#allocation3] sm:$0xff] }
 0xe47   : > { %4501 = vmax.xlane.f32.xlu0 %v4500_v58  ;;  %v5270_v10 = vsel %vm1926_vm8, %v12784_v62, 0.0  ;;  %v5261_v58 = vsel %vm1922_vm7, %v12793_v21, 0.0 }
 0xecb   : > { %v4505_v27 = vpop.xlane.xlu1 %4504 }
 0xecc   : > { %v4511_v7 = vsub.f32 %v4490_v14, %v4505_v27  ;;  %v4508_v26 = vpop.xlane.xlu0 %4507  ;;  %v12797_v27 = vld [vmem:[#allocation3 + $0x10] sm:$0xff] }
 0xecd   : > { %v4512_v20 = vsub.f32 %v4493_v3, %v4508_v26  ;;  %v12801_v26 = vld [vmem:[#allocation3 + $0x8] sm:$0x1] }
 0xece   : > { %v4517_v18 = vmul.f32 1.442695, %v4511_v7  ;;  %v5267_v7 = vsel %vm1922_vm7, %v12797_v27, 0.0 }
 0xecf   : > { %v4519_v55 = vmul.f32 1.442695, %v4512_v20 }
 0xed0   : > { %11699 = vpow2.f32 %v4517_v18  ;;  %v4502_v23 = vpop.xlane.xlu0 %4501  ;;  %v5264_v18 = vsel %vm1926_vm8, %v12801_v26, 0.0 }
 0xed1   : > { %v4510_v16 = vsub.f32 %v12656_v37, %v4502_v23  ;;  %v4523_v37 = vpop.xlane.xlu1 %4522 }
 0xed3   : > { %v4515_v31 = vmul.f32 1.442695, %v4510_v16 }
 0xed5   : > { %11701 = vpow2.f32 %v4515_v31 }
 0xed6   : > { %11703 = vpow2.f32 %v4519_v55 }
 0xed7   : > { %11705 = vrcp.f32 %v4523_v37 }
 0xedd   : > { %v11700_v63 = vpop.eup %11699 }
 0xede   : > { %v4527_v56 = vsel %vm2766_vm11, %v11700_v63, 0.0 }
 0xedf   : > { %4528 = vadd.xlane.f32.xlu1 %v4527_v56 }
 0xee2   : > { %v11702_v5 = vpop.eup %11701 }
 0xee3   : > { %v4524_v43 = vsel %vm2770_vm12, %v11702_v5, 0.0  ;;  %v11704_v36 = vpop.eup %11703 }
 0xee4   : > { %4525 = vadd.xlane.f32.xlu0 %v4524_v43  ;;  %v4530_v14 = vsel %vm2770_vm12, %v11704_v36, 0.0 }
 0xee8   : > { %4531 = vadd.xlane.f32.xlu0 %v4530_v14 }
 0xef0   : > { %4592 = vrot.lane.b32.xlu1 %v12443_v11, %s11878_s16  ;;  %v11706_v11 = vpop.eup %11705 }
 0xefe   : > { %4543 = vrot.lane.b32.xlu0 %v12435_v59, %s11878_s16  ;;  %v4537_v59 = vmul.f32 %v11706_v11, %v11698_v34  ;;  %v12787_v34 = vld [vmem:[%s11991_s18] sm:$0x3f] }
 0xeff   : > { %5181 = vrot.lane.b32.xlu1 %v12787_v34, %s11879_s15 }
 0xf1d   : > { %5271 = vadd.xlane.f32.xlu0 %v5270_v10 }
 0xf21   : > { %5262 = vadd.xlane.f32.xlu0 %v5261_v58 }
 0xf23   : > { %5268 = vadd.xlane.f32.xlu1 %v5267_v7 }
 0xf27   : > { %5265 = vadd.xlane.f32.xlu1 %v5264_v18 }
 0xf68   : > { %v4529_v39 = vpop.xlane.xlu1 %4528 }
 0xf6c   : > { %v4593_v40 = vpop.permute.xlu1 %4592 }
 0xf6d   : > { %v4598_v42 = vand.u32 %v4593_v40, %v12466_v51  ;;  %v4526_v45 = vpop.xlane.xlu0 %4525 }
 0xf6e   : > { %11707 = vrcp.f32 %v4526_v45 }
 0xf6f   : > { %11398 = vmatpush3.bf16.msra.mxu1 %v4598_v42  ;;  %11709 = vrcp.f32 %v4529_v39 }
 0xf71   : > { %v4532_v41 = vpop.xlane.xlu0 %4531 }
 0xf72   : > { %11711 = vrcp.f32 %v4532_v41 }
 0xf75   : > { %v4544_v52 = vpop.permute.xlu0 %4543 }
 0xf76   : > { %v4549_v33 = vand.u32 %v4544_v52, %v12466_v51 }
 0xf78   : > { %11392 = vmatpush3.bf16.msra.mxu0 %v4549_v33 }
 0xf79   : > { %11576 = vmatprep.subr.msk.bf16.mxu0 %vm2819_vm13, %v2664_v60 }
 0xf7b   : > { %v11708_v50 = vpop.eup %11707 }
 0xf7c   : > { %v4538_v3 = vmul.f32 %v11708_v50, %v11702_v5  ;;  %v11710_v53 = vpop.eup %11709 }
 0xf7d   : > { %v4539_v49 = vmul.f32 %v11710_v53, %v11700_v63 }
 0xf7e   : > { %v4541_v54 = vpack.c.bf16 %v4538_v3, %v4537_v59 }
 0xf7f   : > { %v11712_v29 = vpop.eup %11711 }
 0xf80   : > { %11394 = vmatmul.mubr.msk.bf16.vlgmr.msra.gmra.mxu0 %vm2766_vm11, %v4541_v54  ;;  %v4540_v57 = vmul.f32 %v11712_v29, %v11704_v36 }
 0xf81   : > { %11404 = vmatpush3.bf16.msra.mxu0 %v4820_v61 }
 0xf82   : > { %v4542_v35 = vpack.c.bf16 %v4540_v57, %v4539_v49 }
 0xf84   : > { %11400 = vmatmul.mubr.msk.bf16.vlgmr.msra.gmra.mxu1 %vm2766_vm11, %v4542_v35 }
0x1040   : > { %v4585_v20 = vpop.f32.mrf.mxu0 }
0x1042   : > { %v11395_v23 = vpop.f32.mrf.mxu0 }
0x1044   : > { %v4588_v16 = vpop.f32.mrf.mxu0  ;;  %v4634_v55 = vpop.f32.mrf.mxu1 }
0x1045   : > { %v4641_v31 = vpack.c.bf16 %v4588_v16, %v4585_v20  ;;  %v10980_v43 = vpack.c.bf16 %v4588_v16, %v4588_v16 }
0x1046   : > { %v11396_v63 = vpop.f32.mrf.mxu0  ;;  %v11401_v56 = vpop.f32.mrf.mxu1 }
0x1047   : > { %v4652_v5 = vrot.slane %v4641_v31, %v12357_v47  ;;  %v4659_v45 = vrot.slane %v10980_v43, %v12357_v47 }
0x1048   : > { %v4637_v36 = vpop.f32.mrf.mxu1 }
0x1049   : > { %v4660_v14 = vcombine.high %v4652_v5, %v4652_v5  ;;  %v4642_v37 = vpack.c.bf16 %v4637_v36, %v4634_v55  ;;  %v4667_v41 = vrot.slane %v4652_v5, %v12357_v47  ;;  %v10981_v52 = vpack.c.bf16 %v4637_v36, %v4637_v36 }
0x104a   : > { %v11402_v39 = vpop.f32.mrf.mxu1  ;;  %v4674_v54 = vrot.slane %v4659_v45, %v12357_v47  ;;  %v12825_v45 = vpop.permute.xlu1 %5181 }
0x104b   : > { %v4681_v40 = vrot.slane %v4660_v14, %v12357_v47  ;;  %v4691_v42 = vrot.slane %v4642_v37, %v12357_v47  ;;  %v4698_v29 = vrot.slane %v10981_v52, %v12357_v47 }
0x104d   : > { %v4699_v33 = vcombine.high %v4691_v42, %v4691_v42  ;;  %v4706_v11 = vrot.slane %v4691_v42, %v12357_v47  ;;  %v4750_v50 = vcombine.low %v4667_v41, %v4681_v40  ;;  %v10987_v59 = vcombine.high %v4667_v41, %v4681_v40 }
0x104e   : > { %v4713_v16 = vrot.slane %v4698_v29, %v12357_v47 }
0x104f   : > { %v4720_v3 = vrot.slane %v4699_v33, %v12357_v47  ;;  %v4721_v53 = vcombine.high %v4706_v11, %v4706_v11  ;;  %v4733_v49 = vunpack.i.h.s16 %v4706_v11  ;;  %v4760_v61 = vrot.slane %v4750_v50, %v12357_v47 }
0x1050   : > { %v10982_v10 = vpack.i.b16 %v4706_v11, %v4674_v54  ;;  %v4767_v7 = vrot.slane %v10987_v59, %v12357_v47  ;;  %v5183_v11 = vrot.slane %v12825_v45, 2  ;;  %v5272_v54 = vpop.xlane.xlu0 %5271 }
0x1051   : > { %v4722_v57 = vcombine.high %v4720_v3, %v4720_v3  ;;  %v4735_v35 = vunpack.i.h.s16 %v4720_v3  ;;  %v4737_v60 = vunpack.i.h.s16 %v4721_v53  ;;  %v10983_v58 = vpack.i.b16 %v4720_v3, %v4733_v49 }
0x1052   : > { %v4782_v43 = vcombine.low %v4760_v61, %v4767_v7  ;;  %v5276_v7 = vmul.f32 0.03125, %v5272_v54  ;;  %v5269_v54 = vpop.xlane.xlu1 %5268 }
0x1053   : > { %v4739_v18 = vunpack.i.h.s16 %v4722_v57  ;;  %v10984_v20 = vpack.i.b16 %v4721_v53, %v4735_v35  ;;  %v10985_v23 = vpack.i.b16 %v4722_v57, %v4737_v60  ;;  %v4752_v55 = vcombine.low %v10982_v10, %v10983_v58 }
0x1054   : > { %v4790_v37 = vrot.slane %v4782_v43, %v12357_v47  ;;  %v12838_v58 = vrot.slane %v5183_v11, %v12341_v30 }
0x1055   : > { %v4753_v31 = vcombine.low %v10984_v20, %v10985_v23  ;;  %v10986_v63 = vpack.i.b16 %v4713_v16, %v4739_v18  ;;  %v4774_v56 = vrot.slane %v4752_v55, %v12357_v47 }
0x1057   : > { %v4781_v5 = vrot.slane %v4753_v31, %v12357_v47  ;;  %v4805_v14 = vrot.slane %v10986_v63, %v12357_v47 }
0x1059   : > { %v4783_v36 = vcombine.low %v4774_v56, %v4781_v5  ;;  %v4812_v42 = vrot.slane %v4805_v14, %v12357_v47 }
0x105b   : > { %v4797_v39 = vrot.slane %v4783_v36, %v12357_v47 }
0x105d   : > { %v4798_v40 = vcombine.low %v4790_v37, %v4797_v39 }
0x105f   : > { %11405 = vmatprep.mubr.msk.bf16.mxu0 %vm2668_vm10, %v4798_v40 }
0x1060   : > { %11406 = vmatmul.mubr.msk.bf16.vlgmr.msra.gmra.mxu0 %vm2668_vm10, %v4812_v42 }
0x1120   : > { %v11407_v41 = vpop.f32.mrf.mxu0 }
0x1121   : > { %v4977_v52 = vrot.slane %v11407_v41, %v12357_v47 }
0x1122   : > { %v4856_v33 = vpop.f32.mrf.mxu0 }
0x1123   : > { %v4978_v50 = vcombine.high %v4977_v52, %v4977_v52  ;;  %v4985_v59 = vrot.slane %v4977_v52, %v12357_v47  ;;  %v4873_v3 = vcombine.high %v4856_v33, %v4856_v33  ;;  %v4880_v53 = vrot.slane %v4856_v33, %v12357_v47 }
0x1124   : > { %v11408_v29 = vpop.f32.mrf.mxu0 }
0x1125   : > { %v4992_v49 = vrot.slane %v4978_v50, %v12357_v47  ;;  %v4887_v57 = vrot.slane %v4873_v3, %v12357_v47  ;;  %v4888_v35 = vcombine.high %v4880_v53, %v4880_v53  ;;  %v12834_v60 = vadd.f32 %v4985_v59, %v12712_v19 }
0x1126   : > { %v4896_v61 = vrot.slane %v4880_v53, %v12357_v47  ;;  %v4859_v10 = vpop.f32.mrf.mxu0 }
0x1127   : > { %v5028_v18 = vadd.f32 %v4992_v49, %v12721_v25  ;;  %v4889_v20 = vcombine.high %v4887_v57, %v4887_v57  ;;  %v4903_v23 = vrot.slane %v4887_v57, %v12357_v47  ;;  %v4910_v16 = vrot.slane %v4888_v35, %v12357_v47 }
0x1128   : > { %v4918_v55 = vcombine.high %v4896_v61, %v4896_v61  ;;  %v5011_v31 = vadd.f32 %v4896_v61, %v12725_v32  ;;  %v4922_v63 = vcombine.high %v4859_v10, %v4859_v10  ;;  %v4929_v19 = vrot.slane %v4859_v10, %v12357_v47 }
0x1129   : > { %v5165_v56 = vrot.slane %v5028_v18, %v12357_v47  ;;  %v4917_v5 = vrot.slane %v4889_v20, %v12357_v47  ;;  %v4919_v43 = vcombine.high %v4903_v23, %v4903_v23  ;;  %v4920_v36 = vcombine.high %v4910_v16, %v4910_v16 }
0x112a   : > { %v5012_v14 = vadd.f32 %v4910_v16, %v12729_v17  ;;  %v5013_v25 = vadd.f32 %v4918_v55, %v12731_v28  ;;  %v5015_v37 = vadd.f32 %v4903_v23, %v12733_v38  ;;  %v4936_v39 = vrot.slane %v4922_v63, %v12357_v47 }
0x112b   : > { %v4921_v40 = vcombine.high %v4917_v5, %v4917_v5  ;;  %v5014_v32 = vadd.f32 %v4920_v36, %v12736_v24  ;;  %v5016_v42 = vadd.f32 %v4917_v5, %v12738_v44  ;;  %v5017_v41 = vadd.f32 %v4919_v43, %v12740_v46 }
0x112c   : > { %v5047_v52 = vcombine.low %v5011_v31, %v5012_v14  ;;  %v4937_v33 = vcombine.high %v4929_v19, %v4929_v19  ;;  %v4938_v11 = vcombine.high %v4936_v39, %v4936_v39  ;;  %v4945_v50 = vrot.slane %v4929_v19, %v12357_v47 }
0x112d   : > { %v5018_v17 = vadd.f32 %v4921_v40, %v12745_v1  ;;  %v5048_v59 = vcombine.low %v5013_v25, %v5014_v32  ;;  %v5049_v28 = vcombine.low %v5015_v37, %v5016_v42  ;;  %v4952_v38 = vrot.slane %v4936_v39, %v12357_v47  ;;  %v11838_v25 = vld [vmem:[#allocation2 + $0x18] sm:$0x1]  ;;  %v11839_v32 = vld [vmem:[#allocation2 + $0x8] sm:$0x1] }
0x112e   : > { %v5057_v3 = vrot.slane %v5047_v52, %v12357_v47  ;;  %v4959_v53 = vrot.slane %v4937_v33, %v12357_v47  ;;  %v4966_v24 = vrot.slane %v4938_v11, %v12357_v47  ;;  %v4967_v44 = vcombine.high %v4945_v50, %v4945_v50 }
0x112f   : > { %v5050_v46 = vcombine.low %v5017_v41, %v5018_v17  ;;  %v5064_v29 = vrot.slane %v5048_v59, %v12357_v47  ;;  %v5071_v49 = vrot.slane %v5049_v28, %v12357_v47  ;;  %v4968_v57 = vcombine.high %v4952_v38, %v4952_v38 }
0x1130   : > { %v4969_v35 = vcombine.high %v4959_v53, %v4959_v53  ;;  %v4970_v1 = vcombine.high %v4966_v24, %v4966_v24  ;;  %v5019_v61 = vadd.f32 %v4945_v50, %v12751_v4  ;;  %v5020_v10 = vadd.f32 %v4959_v53, %v12753_v6 }
0x1131   : > { %v5078_v18 = vrot.slane %v5050_v46, %v12357_v47  ;;  %v5079_v20 = vcombine.low %v5057_v3, %v5064_v29  ;;  %v5021_v23 = vadd.f32 %v4967_v44, %v12758_v13  ;;  %v5023_v16 = vadd.f32 %v4952_v38, %v12756_v8  ;;  %v5263_v44 = vpop.xlane.xlu0 %5262  ;;  %v11840_v46 = vld [vmem:[#allocation2 + $0x10] sm:$0xff] }
0x1132   : > { %v5022_v55 = vadd.f32 %v4969_v35, %v12760_v12  ;;  %v5024_v31 = vadd.f32 %v4966_v24, %v12762_v9  ;;  %v5025_v63 = vadd.f32 %v4968_v57, %v12764_v15  ;;  %v5026_v19 = vadd.f32 %v4970_v1, %v12767_v22  ;;  %v5266_v12 = vpop.xlane.xlu1 %5265 }
0x1133   : > { %v5102_v5 = vrot.slane %v5019_v61, %v12357_v47  ;;  %v5110_v4 = vcombine.low %v5020_v10, %v5021_v23  ;;  %v5172_v6 = vrot.slane %v5165_v56, %v12357_v47  ;;  %v5080_v43 = vcombine.low %v5071_v49, %v5078_v18  ;;  %v11841_v49 = vld [vmem:[#allocation2] sm:$0xff] }
0x1134   : > { %v5111_v36 = vcombine.low %v5022_v55, %v5023_v16  ;;  %v5112_v14 = vcombine.low %v5024_v31, %v5025_v63  ;;  %v5113_v13 = vcombine.low %v5026_v19, %v12834_v60  ;;  %v12875_v8 = vsub.f32 %v12784_v62, %v5276_v7 }
0x1135   : > { %v5180_v9 = vadd.f32 %v11838_v25, %v5172_v6  ;;  %v5109_v15 = vrot.slane %v5102_v5, %v12357_v47  ;;  %v5087_v22 = vrot.slane %v5079_v20, %v12357_v47  ;;  %v5094_v37 = vrot.slane %v5080_v43, %v12357_v47 }
0x1136   : > { %v5120_v39 = vrot.slane %v5110_v4, %v12357_v47  ;;  %v5127_v56 = vrot.slane %v5111_v36, %v12357_v47  ;;  %v5134_v40 = vrot.slane %v5112_v14, %v12357_v47  ;;  %v5141_v60 = vrot.slane %v5113_v13, %v12357_v47 }
0x1137   : > { %v12885_v62 = vadd.f32 %v12838_v58, %v5180_v9  ;;  %v5274_v7 = vmul.f32 0.03125, %v5266_v12  ;;  %v5178_v42 = vadd.f32 %v11839_v32, %v5109_v15  ;;  %v5095_v41 = vcombine.low %v5087_v22, %v5094_v37  ;;  %v11628_v32 = vld [vmem:[%s12001_s25] sm:$0xff]  }
0x1138   : > { %v5142_v52 = vcombine.low %v5120_v39, %v5127_v56  ;;  %v5143_v33 = vcombine.low %v5134_v40, %v5141_v60  ;;  %v5284_v3 = vmul.f32 %v12875_v8, %v12875_v8  ;;  %v5275_v53 = vmul.f32 0.03125, %v5269_v54 }
0x1139   : > { %v5202_v11 = vsel %vm1926_vm8, %v12885_v62, 0.0  ;;  %v12890_v50 = vadd.f32 %v12838_v58, %v5178_v42  ;;  %v12895_v28 = vsub.f32 %v12801_v26, %v5274_v7  ;;  %v5177_v57 = vadd.f32 %v11841_v49, %v5095_v41  ;;  %v11627_v7 = vld [vmem:[%s12001_s25 + $0x8] sm:$0xff]   ;;  %v11630_v41 = vld [vmem:[%s11996_s6] sm:$0xff]  }
0x113a   : > { %5203 = vadd.xlane.f32.xlu1 %v5202_v11  ;;  %v5150_v17 = vrot.slane %v5142_v52, %v12357_v47  ;;  %v5157_v59 = vrot.slane %v5143_v33, %v12357_v47  ;;  %v5294_v35 = vsel %vm1926_vm8, %v5284_v3, 0.0  ;;  %v12905_v1 = vsub.f32 %v12797_v27, %v5275_v53  ;;  %11417 = vmatprep.subr.bf16.mxu0 %v11627_v7  ;;  %v11629_v42 = vld [vmem:[%s11996_s6 + $0x8] sm:$0xff]   ;;  %s11880_s6 = smov (!%p11110_p5), 32  }
0x113b   : > { %v5196_v38 = vsel %vm1926_vm8, %v12890_v50, 0.0  ;;  %v5282_v26 = vmul.f32 %v12895_v28, %v12895_v28  ;;  %v5273_v10 = vmul.f32 0.03125, %v5263_v44  ;;  %v12913_v18 = vadd.f32 %v12838_v58, %v5177_v57  ;;  %11418 = vmatpush3.bf16.msra.mxu0 %v11627_v7  ;;  %11409 = vmatprep.subr.bf16.mxu1 %v11629_v42 }
0x113c   : > { %v5158_v24 = vcombine.low %v5150_v17, %v5157_v59  ;;  %v5283_v27 = vmul.f32 %v12905_v1, %v12905_v1  ;;  %11419 = vmatprep.subr.bf16.mxu0 %v11628_v32  ;;  %11410 = vmatpush3.bf16.msra.mxu1 %v11629_v42 }
0x113d   : > { %v5288_v20 = vsel %vm1926_vm8, %v5282_v26, 0.0  ;;  %v12917_v23 = vsub.f32 %v12793_v21, %v5273_v10  ;;  %v5193_v16 = vsel %vm1922_vm7, %v12913_v18, 0.0  ;;  %11411 = vmatprep.subr.bf16.mxu1 %v11630_v41 }
0x113e   : > { %5197 = vadd.xlane.f32.xlu1 %v5196_v38  ;;  %v5179_v29 = vadd.f32 %v11840_v46, %v5158_v24  ;;  %v5291_v55 = vsel %vm1922_vm7, %v5283_v27, 0.0 }
0x113f   : > { %11420 = vmatpush3.bf16.msra.mxu0 %v11628_v32 }
0x1140   : > { %v12908_v61 = vadd.f32 %v12838_v58, %v5179_v29  ;;  %v5281_v58 = vmul.f32 %v12917_v23, %v12917_v23  ;;  %11431 = vmatprep.subr.bf16.mxu0 %v11866_v48  ;;  %11412 = vmatpush3.bf16.msra.mxu1 %v11630_v41 }
0x1141   : > { %11425 = vmatprep.subr.bf16.mxu1 %v11866_v48 }
0x1142   : > { %5295 = vadd.xlane.f32.xlu1 %v5294_v35  ;;  %v5199_v54 = vsel %vm1922_vm7, %v12908_v61, 0.0  ;;  %v5285_v31 = vsel %vm1922_vm7, %v5281_v58, 0.0 }
0x1143   : > { %5200 = vadd.xlane.f32.xlu0 %v5199_v54 }
0x1146   : > { %5289 = vadd.xlane.f32.xlu1 %v5288_v20 }
0x1147   : > { %5194 = vadd.xlane.f32.xlu0 %v5193_v16 }
0x114b   : > { %5292 = vadd.xlane.f32.xlu0 %v5291_v55  ;;  %v5313_v55 = vrot.slane %v12787_v34, 1 }
0x114f   : > { %5286 = vadd.xlane.f32.xlu0 %v5285_v31 }
0x11c3   : > { %v5204_v63 = vpop.xlane.xlu1 %5203 }
0x11c4   : > { %v5208_v21 = vmul.f32 0.03125, %v5204_v63 }
0x11c6   : > { %v12928_v19 = vsub.f32 %v12885_v62, %v5208_v21 }
0x11c7   : > { %v5198_v5 = vpop.xlane.xlu1 %5197 }
0x11c8   : > { %v5206_v4 = vmul.f32 0.03125, %v5198_v5  ;;  %v5216_v6 = vmul.f32 %v12928_v19, %v12928_v19 }
0x11ca   : > { %v12933_v43 = vsub.f32 %v12890_v50, %v5206_v4  ;;  %v5226_v36 = vsel %vm1926_vm8, %v5216_v6, 0.0  ;;  %v5317_v6 = vrot.slane %v5313_v55, %v12341_v30 }
0x11cb   : > { %5227 = vadd.xlane.f32.xlu1 %v5226_v36 }
0x11cc   : > { %v5214_v14 = vmul.f32 %v12933_v43, %v12933_v43  ;;  %v5201_v13 = vpop.xlane.xlu0 %5200 }
0x11cd   : > { %v5207_v25 = vmul.f32 0.03125, %v5201_v13 }
0x11ce   : > { %v5220_v12 = vsel %vm1926_vm8, %v5214_v14, 0.0 }
0x11cf   : > { %5221 = vadd.xlane.f32.xlu1 %v5220_v12  ;;  %v12940_v22 = vsub.f32 %v12908_v61, %v5207_v25 }
0x11d0   : > { %v5195_v9 = vpop.xlane.xlu0 %5194 }
0x11d1   : > { %v5205_v15 = vmul.f32 0.03125, %v5195_v9  ;;  %v5215_v40 = vmul.f32 %v12940_v22, %v12940_v22 }
0x11d3   : > { %v12943_v37 = vsub.f32 %v12913_v18, %v5205_v15  ;;  %v5223_v60 = vsel %vm1922_vm7, %v5215_v40, 0.0 }
0x11d4   : > { %v5293_v52 = vpop.xlane.xlu0 %5292 }
0x11d5   : > { %v5213_v39 = vmul.f32 %v12943_v37, %v12943_v37  ;;  %v5299_v38 = vmul.f32 0.03125, %v5293_v52 }
0x11d7   : > { %v5217_v56 = vsel %vm1922_vm7, %v5213_v39, 0.0  ;;  %v5303_v44 = vadd.f32 1e-05, %v5299_v38 }
0x11d8   : > { %5218 = vadd.xlane.f32.xlu0 %v5217_v56  ;;  %v5287_v17 = vpop.xlane.xlu0 %5286 }
0x11d9   : > { %v5297_v3 = vmul.f32 0.03125, %v5287_v17 }
0x11db   : > { %v5301_v46 = vadd.f32 1e-05, %v5297_v3 }
0x11dc   : > { %5224 = vadd.xlane.f32.xlu0 %v5223_v60 }
0x11e0   : > { %5245 = vrot.lane.b32.xlu1 %v12348_v2, %s11868_s27 }
0x11e4   : > { %5252 = vrot.lane.b32.xlu1 %v12348_v2, %s11879_s15  ;;  %v5296_v2 = vpop.xlane.xlu1 %5295 }
0x11e5   : > { %v5300_v11 = vmul.f32 0.03125, %v5296_v2 }
0x11e7   : > { %v5304_v53 = vadd.f32 1e-05, %v5300_v11 }
0x11e8   : > { %v5290_v33 = vpop.xlane.xlu1 %5289 }
0x11e9   : > { %v5298_v59 = vmul.f32 0.03125, %v5290_v33  ;;  %11713 = vrsqrt.f32 %v5304_v53 }
0x11eb   : > { %v5302_v24 = vadd.f32 1e-05, %v5298_v59 }
0x11ed   : > { %11715 = vrsqrt.f32 %v5302_v24 }
0x11ee   : > { %11717 = vrsqrt.f32 %v5303_v44 }
0x11ef   : > { %11719 = vrsqrt.f32 %v5301_v46 }
0x11f2   : > { %5323 = vrot.lane.b32.xlu0 %v12787_v34, %s11864_s17 }
0x11f6   : > { %v11714_v20 = vpop.eup %11713 }
0x11f7   : > { %v5312_v4 = vmul.f32 %v11714_v20, %v12875_v8 }
0x11f9   : > { %v5322_v40 = vmul.f32 %v5317_v6, %v5312_v4 }
0x11fa   : > { %v11716_v16 = vpop.eup %11715 }
0x11fb   : > { %v11718_v58 = vpop.eup %11717  ;;  %v5310_v36 = vmul.f32 %v11716_v16, %v12895_v28 }
0x11fc   : > { %v11720_v63 = vpop.eup %11719  ;;  %v5311_v14 = vmul.f32 %v11718_v58, %v12905_v1 }
0x11fd   : > { %v5309_v13 = vmul.f32 %v11720_v63, %v12917_v23  ;;  %v5320_v60 = vmul.f32 %v5317_v6, %v5310_v36 }
0x11fe   : > { %v5321_v7 = vmul.f32 %v5317_v6, %v5311_v14 }
0x11ff   : > { %v5319_v8 = vmul.f32 %v5317_v6, %v5309_v13 }
0x1254   : > { %v5228_v29 = vpop.xlane.xlu1 %5227 }
0x1255   : > { %v5232_v57 = vmul.f32 0.03125, %v5228_v29 }
0x1257   : > { %v5236_v10 = vadd.f32 1e-05, %v5232_v57 }
0x1258   : > { %v5222_v49 = vpop.xlane.xlu1 %5221 }
0x1259   : > { %v5230_v35 = vmul.f32 0.03125, %v5222_v49 }
0x125b   : > { %v5234_v26 = vadd.f32 1e-05, %v5230_v35 }
0x125c   : > { %v5246_v15 = vpop.permute.xlu1 %5245 }
0x125d   : > { %11721 = vrsqrt.f32 %v5234_v26 }
0x125e   : > { %11723 = vrsqrt.f32 %v5236_v10 }
0x1260   : > { %v5253_v52 = vpop.permute.xlu1 %5252 }
0x1261   : > { %v5219_v54 = vpop.xlane.xlu0 %5218 }
0x1262   : > { %v5229_v27 = vmul.f32 0.03125, %v5219_v54 }
0x1264   : > { %v5233_v31 = vadd.f32 1e-05, %v5229_v27 }
0x1265   : > { %v5225_v21 = vpop.xlane.xlu0 %5224 }
0x1266   : > { %11725 = vrsqrt.f32 %v5233_v31  ;;  %v5231_v5 = vmul.f32 0.03125, %v5225_v21 }
0x1268   : > { %v5235_v12 = vadd.f32 1e-05, %v5231_v5 }
0x1269   : > { %v12969_v25 = vpop.permute.xlu0 %5323 }
0x126a   : > { %v11722_v9 = vpop.eup %11721  ;;  %11727 = vrsqrt.f32 %v5235_v12  ;;  %v5325_v39 = vrot.slane %v12969_v25, 1 }
0x126b   : > { %v5242_v56 = vmul.f32 %v11722_v9, %v12933_v43  ;;  %v11724_v1 = vpop.eup %11723 }
0x126c   : > { %v5329_v28 = vrot.slane %v5325_v39, %v12341_v30  ;;  %v5244_v38 = vmul.f32 %v11724_v1, %v12928_v19 }
0x126d   : > { %v5249_v32 = vmul.f32 %v5246_v15, %v5242_v56 }
0x126e   : > { %v5331_v42 = vadd.f32 %v5329_v28, %v5319_v8  ;;  %v5332_v23 = vadd.f32 %v5329_v28, %v5320_v60  ;;  %v5333_v41 = vadd.f32 %v5329_v28, %v5321_v7  ;;  %v5334_v2 = vadd.f32 %v5329_v28, %v5322_v40 }
0x126f   : > { %v5256_v43 = vadd.f32 %v5253_v52, %v5249_v32  ;;  %v5251_v26 = vmul.f32 %v5246_v15, %v5244_v38 }
0x1270   : > { %v5335_v33 = vpack.c.bf16 %v5332_v23, %v5331_v42  ;;  %v5336_v11 = vpack.c.bf16 %v5334_v2, %v5333_v41  ;;  %v11006_v17 = vpack.c.bf16 %v5332_v23, %v5332_v23  ;;  %v11007_v59 = vpack.c.bf16 %v5334_v2, %v5334_v2 }
0x1271   : > { %v10990_v10 = vpack.c.bf16 %v5256_v43, %v5256_v43  ;;  %v5258_v32 = vadd.f32 %v5253_v52, %v5251_v26 }
0x1272   : > { %v6020_v3 = vrot.slane %v5335_v33, %v12357_v47  ;;  %v6027_v53 = vrot.slane %v11006_v17, %v12357_v47  ;;  %v6059_v24 = vrot.slane %v5336_v11, %v12357_v47  ;;  %v6066_v44 = vrot.slane %v11007_v59, %v12357_v47 }
0x1273   : > { %v11726_v46 = vpop.eup %11725  ;;  %v5362_v41 = vrot.slane %v10990_v10, %v12357_v47 }
0x1274   : > { %v5241_v29 = vmul.f32 %v11726_v46, %v12943_v37  ;;  %v6028_v49 = vcombine.high %v6020_v3, %v6020_v3  ;;  %v6042_v57 = vrot.slane %v6027_v53, %v12357_v47  ;;  %v6067_v35 = vcombine.high %v6059_v24, %v6059_v24 }
0x1275   : > { %v6074_v19 = vrot.slane %v6059_v24, %v12357_v47  ;;  %v6081_v20 = vrot.slane %v6066_v44, %v12357_v47  ;;  %v6035_v16 = vrot.slane %v6020_v3, %v12357_v47  ;;  %v10991_v3 = vpack.c.bf16 %v5258_v32, %v5258_v32 }
0x1276   : > { %v5248_v54 = vmul.f32 %v5246_v15, %v5241_v29  ;;  %v6088_v27 = vrot.slane %v6067_v35, %v12357_v47  ;;  %v6049_v58 = vrot.slane %v6028_v49, %v12357_v47  ;;  %v5377_v24 = vrot.slane %v5362_v41, %v12357_v47 }
0x1277   : > { %v11728_v55 = vpop.eup %11727  ;;  %v6089_v31 = vcombine.high %v6074_v19, %v6074_v19  ;;  %v6101_v37 = vunpack.i.h.s16 %v6074_v19  ;;  %v11008_v63 = vpack.i.b16 %v6074_v19, %v6042_v57 }
0x1278   : > { %v5255_v21 = vadd.f32 %v5253_v52, %v5248_v54  ;;  %v5243_v5 = vmul.f32 %v11728_v55, %v12940_v22  ;;  %v6090_v4 = vcombine.high %v6088_v27, %v6088_v27  ;;  %v6103_v6 = vunpack.i.h.s16 %v6088_v27 }
0x1279   : > { %v6105_v36 = vunpack.i.h.s16 %v6089_v31  ;;  %v11009_v14 = vpack.i.b16 %v6088_v27, %v6101_v37  ;;  %v6167_v13 = vcombine.low %v6035_v16, %v6049_v58  ;;  %v11013_v12 = vcombine.high %v6035_v16, %v6049_v58 }
0x127a   : > { %v5259_v9 = vpack.c.bf16 %v5256_v43, %v5255_v21  ;;  %v5250_v39 = vmul.f32 %v5246_v15, %v5243_v5  ;;  %v11010_v56 = vpack.i.b16 %v6089_v31, %v6103_v6  ;;  %v6107_v40 = vunpack.i.h.s16 %v6090_v4 }
0x127b   : > { %v11011_v8 = vpack.i.b16 %v6090_v4, %v6105_v36  ;;  %v6169_v60 = vcombine.low %v11008_v63, %v11009_v14  ;;  %v6177_v7 = vrot.slane %v6167_v13, %v12357_v47  ;;  %v6184_v28 = vrot.slane %v11013_v12, %v12357_v47 }
0x127c   : > { %v5355_v1 = vrot.slane %v5259_v9, %v12357_v47  ;;  %v5257_v22 = vadd.f32 %v5253_v52, %v5250_v39  ;;  %v11012_v23 = vpack.i.b16 %v6081_v20, %v6107_v40  ;;  %v5401_v54 = vrot.slane %v10991_v3, %v12357_v47 }
0x127d   : > { %v6170_v42 = vcombine.low %v11010_v56, %v11011_v8  ;;  %v6191_v15 = vrot.slane %v6169_v60, %v12357_v47  ;;  %v6199_v17 = vcombine.low %v6177_v7, %v6184_v28 }
0x127e   : > { %v5363_v2 = vcombine.high %v5355_v1, %v5355_v1  ;;  %v5260_v33 = vpack.c.bf16 %v5258_v32, %v5257_v22  ;;  %v5370_v43 = vrot.slane %v5355_v1, %v12357_v47  ;;  %v6222_v52 = vrot.slane %v11012_v23, %v12357_v47 }
0x127f   : > { %v6198_v11 = vrot.slane %v6170_v42, %v12357_v47  ;;  %v6207_v57 = vrot.slane %v6199_v17, %v12357_v47  ;;  %v5416_v14 = vrot.slane %v5401_v54, %v12357_v47  ;;  %v6006_v1 = vrot.slane %v12969_v25, 3 }
0x1280   : > { %v5384_v59 = vrot.slane %v5363_v2, %v12357_v47  ;;  %v5394_v38 = vrot.slane %v5260_v33, %v12357_v47  ;;  %v6229_v27 = vrot.slane %v6222_v52, %v12357_v47  ;;  %v5341_v23 = vrot.slane %v12787_v34, 3 }
0x1281   : > { %v6200_v53 = vcombine.low %v6191_v15, %v6198_v11  ;;  %v6010_v22 = vrot.slane %v6006_v1, %v12341_v30 }
0x1282   : > { %v5402_v44 = vcombine.high %v5394_v38, %v5394_v38  ;;  %v5409_v46 = vrot.slane %v5394_v38, %v12357_v47  ;;  %v5502_v29 = vcombine.low %v5370_v43, %v5384_v59  ;;  %v10997_v49 = vcombine.high %v5370_v43, %v5384_v59 }
0x1283   : > { %v6214_v35 = vrot.slane %v6200_v53, %v12357_v47  ;;  %v6109_v42 = vcombine.high %v6010_v22, %v6010_v22  ;;  %v6116_v41 = vrot.slane %v6010_v22, %v12357_v47  ;;  %v5345_v33 = vrot.slane %v5341_v23, %v12341_v30 }
0x1284   : > { %v5423_v26 = vrot.slane %v5402_v44, %v12357_v47  ;;  %v5424_v10 = vcombine.high %v5409_v46, %v5409_v46  ;;  %v5436_v19 = vunpack.i.h.s16 %v5409_v46  ;;  %v10992_v16 = vpack.i.b16 %v5409_v46, %v5377_v24 }
0x1285   : > { %v6215_v20 = vcombine.low %v6207_v57, %v6214_v35  ;;  %v5512_v63 = vrot.slane %v5502_v29, %v12357_v47  ;;  %v5519_v21 = vrot.slane %v10997_v49, %v12357_v47  ;;  %v6123_v2 = vrot.slane %v6109_v42, %v12357_v47 }
0x1286   : > { %v5425_v55 = vcombine.high %v5423_v26, %v5423_v26  ;;  %v5438_v58 = vunpack.i.h.s16 %v5423_v26  ;;  %v5440_v31 = vunpack.i.h.s16 %v5424_v10  ;;  %v10993_v37 = vpack.i.b16 %v5423_v26, %v5436_v19 }
0x1287   : > { %11421 = vmatprep.mubr.msk.bf16.mxu0 %vm1922_vm7, %v6215_v20  ;;  %v5534_v56 = vcombine.low %v5512_v63, %v5519_v21  ;;  %v6124_v15 = vcombine.high %v6116_v41, %v6116_v41  ;;  %v6125_v11 = vcombine.high %v6123_v2, %v6123_v2  ;;  %v5444_v17 = vcombine.high %v5345_v33, %v5345_v33 }
0x1288   : > { %11422 = vmatmul.mubr.msk.bf16.vlgmr.msra.gmra.mxu0 %vm1922_vm7, %v6229_v27  ;;  %v10994_v5 = vpack.i.b16 %v5424_v10, %v5438_v58  ;;  %v10995_v4 = vpack.i.b16 %v5425_v55, %v5440_v31  ;;  %v5504_v6 = vcombine.low %v10992_v16, %v10993_v37  ;;  %v5442_v36 = vunpack.i.h.s16 %v5425_v55 }
0x1289   : > { %11433 = vmatprep.mubr.msk.bf16.mxu0 %vm11867_vm9, %v11866_v48  ;;  %v5542_v60 = vrot.slane %v5534_v56, %v12357_v47  ;;  %v6132_v59 = vrot.slane %v6116_v41, %v12357_v47  ;;  %v6139_v38 = vrot.slane %v6123_v2, %v12357_v47  ;;  %v6146_v25 = vrot.slane %v6124_v15, %v12357_v47 }
0x128a   : > { %v5505_v13 = vcombine.low %v10994_v5, %v10995_v4  ;;  %v10996_v12 = vpack.i.b16 %v5416_v14, %v5442_v36  ;;  %v5526_v9 = vrot.slane %v5504_v6, %v12357_v47  ;;  %v6153_v43 = vrot.slane %v6125_v11, %v12357_v47 }
0x128b   : > { %v5451_v3 = vrot.slane %v5345_v33, %v12357_v47  ;;  %v5458_v34 = vrot.slane %v5444_v17, %v12357_v47  ;;  %v6242_v53 = vcombine.low %v6132_v59, %v6146_v25  ;;  %v11016_v52 = vcombine.high %v6132_v59, %v6146_v25 }
0x128c   : > { %v5533_v39 = vrot.slane %v5505_v13, %v12357_v47  ;;  %v5557_v8 = vrot.slane %v10996_v12, %v12357_v47  ;;  %v6244_v24 = vcombine.low %v6139_v38, %v6153_v43  ;;  %v11017_v44 = vcombine.high %v6139_v38, %v6153_v43 }
0x128d   : > { %v6154_v46 = vcombine.high %v6132_v59, %v6132_v59  ;;  %v6155_v29 = vcombine.high %v6139_v38, %v6139_v38  ;;  %v6156_v49 = vcombine.high %v6146_v25, %v6146_v25  ;;  %v5459_v57 = vcombine.high %v5451_v3, %v5451_v3 }
0x128e   : > { %v5535_v40 = vcombine.low %v5526_v9, %v5533_v39  ;;  %v5564_v32 = vrot.slane %v5557_v8, %v12357_v47  ;;  %v5460_v35 = vcombine.high %v5458_v34, %v5458_v34  ;;  %v6157_v26 = vcombine.high %v6153_v43, %v6153_v43 }
0x128f   : > { %v6252_v10 = vrot.slane %v6242_v53, %v12357_v47  ;;  %v6259_v19 = vrot.slane %v11016_v52, %v12357_v47  ;;  %v6266_v54 = vrot.slane %v6244_v24, %v12357_v47  ;;  %v6273_v20 = vrot.slane %v11017_v44, %v12357_v47 }
0x1290   : > { %v5549_v7 = vrot.slane %v5535_v40, %v12357_v47  ;;  %v6291_v27 = vcombine.low %v6132_v59, %v6132_v59  ;;  %v6292_v16 = vcombine.low %v6146_v25, %v6154_v46  ;;  %v6294_v55 = vcombine.low %v6153_v43, %v6155_v29 }
0x1291   : > { %v6293_v58 = vcombine.low %v6156_v49, %v6139_v38  ;;  %v5467_v31 = vrot.slane %v5451_v3, %v12357_v47  ;;  %v5474_v37 = vrot.slane %v5458_v34, %v12357_v47  ;;  %v5481_v63 = vrot.slane %v5459_v57, %v12357_v47 }
0x1292   : > { %v5550_v28 = vcombine.low %v5542_v60, %v5549_v7  ;;  %v5488_v21 = vrot.slane %v5460_v35, %v12357_v47  ;;  %v6340_v36 = vcombine.low %v6157_v26, %v6132_v59  ;;  %v6274_v14 = vcombine.low %v6252_v10, %v6259_v19 }
0x1293   : > { %v5489_v5 = vcombine.high %v5467_v31, %v5467_v31  ;;  %v5490_v4 = vcombine.high %v5474_v37, %v5474_v37  ;;  %v5491_v6 = vcombine.high %v5481_v63, %v5481_v63  ;;  %v6275_v13 = vcombine.low %v6266_v54, %v6273_v20 }
0x1294   : > { %11413 = vmatprep.mubr.msk.bf16.mxu1 %vm1922_vm7, %v5550_v28  ;;  %v6301_v12 = vrot.slane %v6291_v27, %v12357_v47  ;;  %v6308_v9 = vrot.slane %v6292_v16, %v12357_v47  ;;  %v6315_v39 = vrot.slane %v6293_v58, %v12357_v47  ;;  %v6322_v56 = vrot.slane %v6294_v55, %v12357_v47 }
0x1295   : > { %11414 = vmatmul.mubr.msk.bf16.vlgmr.msra.gmra.mxu1 %vm1922_vm7, %v5564_v32  ;;  %v5577_v40 = vcombine.low %v5467_v31, %v5481_v63  ;;  %v11000_v8 = vcombine.high %v5467_v31, %v5481_v63  ;;  %v5579_v60 = vcombine.low %v5474_v37, %v5488_v21  ;;  %v11001_v7 = vcombine.high %v5474_v37, %v5488_v21 }
0x1296   : > { %11427 = vmatprep.mubr.msk.bf16.mxu1 %vm11867_vm9, %v11866_v48  ;;  %v5626_v28 = vcombine.low %v5467_v31, %v5467_v31  ;;  %v5627_v32 = vcombine.low %v5481_v63, %v5489_v5  ;;  %v5628_v1 = vcombine.low %v5491_v6, %v5474_v37  ;;  %v5629_v22 = vcombine.low %v5488_v21, %v5490_v4 }
0x1297   : > { %v6347_v42 = vrot.slane %v6340_v36, %v12357_v47  ;;  %v6282_v23 = vrot.slane %v6274_v14, %v12357_v47  ;;  %v6289_v41 = vrot.slane %v6275_v13, %v12357_v47  ;;  %v6323_v2 = vcombine.low %v6301_v12, %v6308_v9 }
0x1298   : > { %v6324_v33 = vcombine.low %v6315_v39, %v6322_v56  ;;  %v5492_v15 = vcombine.high %v5488_v21, %v5488_v21  ;;  %v5587_v11 = vrot.slane %v5577_v40, %v12357_v47  ;;  %v5594_v17 = vrot.slane %v11000_v8, %v12357_v47 }
0x1299   : > { %v5601_v59 = vrot.slane %v5579_v60, %v12357_v47  ;;  %v5608_v38 = vrot.slane %v11001_v7, %v12357_v47  ;;  %v5636_v25 = vrot.slane %v5626_v28, %v12357_v47  ;;  %v5643_v43 = vrot.slane %v5627_v32, %v12357_v47 }
0x129a   : > { %v5650_v3 = vrot.slane %v5628_v1, %v12357_v47  ;;  %v5657_v34 = vrot.slane %v5629_v22, %v12357_v47  ;;  %v6354_v53 = vrot.slane %v6347_v42, %v12357_v47  ;;  %v6290_v24 = vcombine.low %v6282_v23, %v6289_v41 }
0x129b   : > { %v6331_v46 = vrot.slane %v6323_v2, %v12357_v47  ;;  %v6338_v29 = vrot.slane %v6324_v33, %v12357_v47  ;;  %v5675_v49 = vcombine.low %v5492_v15, %v5467_v31  ;;  %v5609_v35 = vcombine.low %v5587_v11, %v5594_v17 }
0x129c   : > { %v5610_v26 = vcombine.low %v5601_v59, %v5608_v38  ;;  %v5658_v10 = vcombine.low %v5636_v25, %v5643_v43  ;;  %v5659_v19 = vcombine.low %v5650_v3, %v5657_v34 }
0x129d   : > { %v6339_v58 = vcombine.low %v6331_v46, %v6338_v29  ;;  %v5682_v37 = vrot.slane %v5675_v49, %v12357_v47  ;;  %v5617_v21 = vrot.slane %v5609_v35, %v12357_v47 }
0x129e   : > { %v5624_v31 = vrot.slane %v5610_v26, %v12357_v47  ;;  %v5666_v5 = vrot.slane %v5658_v10, %v12357_v47  ;;  %v5673_v4 = vrot.slane %v5659_v19, %v12357_v47 }
0x129f   : > { %v5689_v56 = vrot.slane %v5682_v37, %v12357_v47 }
0x12a0   : > { %v5625_v60 = vcombine.low %v5617_v21, %v5624_v31  ;;  %v5674_v7 = vcombine.low %v5666_v5, %v5673_v4 }
0x1348   : > { %v11423_v52 = vpop.f32.mrf.mxu0 }
0x1349   : > { %v6407_v44 = vadd.f32 %v11423_v52, %v6354_v53 }
0x134a   : > { %v6398_v57 = vpop.f32.mrf.mxu0 }
0x134b   : > { %v6399_v54 = vadd.f32 %v6398_v57, %v6290_v24  ;;  %v13060_v20 = vrot.slane %v6407_v44, %v12357_v47 }
0x134c   : > { %v11424_v27 = vpop.f32.mrf.mxu0 }
0x134d   : > { %v6415_v16 = vcombine.high %v6399_v54, %v6399_v54  ;;  %v6422_v55 = vrot.slane %v6399_v54, %v12357_v47  ;;  %v6520_v14 = vcombine.high %v13060_v20, %v13060_v20  ;;  %v6527_v35 = vrot.slane %v13060_v20, %v12357_v47 }
0x134e   : > { %v6401_v63 = vpop.f32.mrf.mxu0 }
0x134f   : > { %v6429_v6 = vrot.slane %v6415_v16, %v12357_v47  ;;  %v6430_v36 = vcombine.high %v6422_v55, %v6422_v55  ;;  %v6402_v13 = vadd.f32 %v6401_v63, %v6339_v58  ;;  %v6438_v9 = vrot.slane %v6422_v55, %v12357_v47 }
0x1350   : > { %v6534_v42 = vrot.slane %v6520_v14, %v12357_v47 }
0x1351   : > { %v6431_v12 = vcombine.high %v6429_v6, %v6429_v6  ;;  %v6452_v39 = vrot.slane %v6430_v36, %v12357_v47  ;;  %v6464_v40 = vcombine.high %v6402_v13, %v6402_v13  ;;  %v6471_v8 = vrot.slane %v6402_v13, %v12357_v47 }
0x1352   : > { %v6445_v28 = vrot.slane %v6429_v6, %v12357_v47  ;;  %v6653_v26 = vrot.slane %v6534_v42, %v12357_v47 }
0x1353   : > { %v6459_v32 = vrot.slane %v6431_v12, %v12357_v47  ;;  %v6535_v1 = vcombine.low %v6438_v9, %v6452_v39  ;;  %v11020_v22 = vcombine.high %v6438_v9, %v6452_v39  ;;  %v6478_v23 = vrot.slane %v6464_v40, %v12357_v47 }
0x1354   : > { %v6479_v41 = vcombine.high %v6471_v8, %v6471_v8  ;;  %v6487_v2 = vrot.slane %v6471_v8, %v12357_v47 }
0x1355   : > { %v6537_v33 = vcombine.low %v6445_v28, %v6459_v32  ;;  %v11021_v15 = vcombine.high %v6445_v28, %v6459_v32  ;;  %v6545_v11 = vrot.slane %v6535_v1, %v12357_v47  ;;  %v6552_v17 = vrot.slane %v11020_v22, %v12357_v47  ;;  %v11415_v59 = vpop.f32.mrf.mxu1 }
0x1356   : > { %v6480_v38 = vcombine.high %v6478_v23, %v6478_v23  ;;  %v6494_v25 = vrot.slane %v6478_v23, %v12357_v47  ;;  %v6501_v43 = vrot.slane %v6479_v41, %v12357_v47  ;;  %v6509_v3 = vcombine.high %v6487_v2, %v6487_v2 }
0x1357   : > { %v6559_v34 = vrot.slane %v6537_v33, %v12357_v47  ;;  %v6566_v53 = vrot.slane %v11021_v15, %v12357_v47  ;;  %v6567_v52 = vcombine.low %v6545_v11, %v6552_v17  ;;  %v6590_v24 = vrot.slane %v6487_v2, %v12357_v47  ;;  %v5733_v44 = vpop.f32.mrf.mxu1 }
0x1358   : > { %v6508_v46 = vrot.slane %v6480_v38, %v12357_v47  ;;  %v6510_v29 = vcombine.high %v6494_v25, %v6494_v25  ;;  %v6511_v49 = vcombine.high %v6501_v43, %v6501_v43  ;;  %v6598_v57 = vcombine.low %v6501_v43, %v6509_v3 }
0x1359   : > { %v6568_v10 = vcombine.low %v6559_v34, %v6566_v53  ;;  %v5742_v19 = vadd.f32 %v11415_v59, %v5689_v56  ;;  %v11416_v54 = vpop.f32.mrf.mxu1  ;;  %v6575_v27 = vrot.slane %v6567_v52, %v12357_v47  ;;  %v6597_v63 = vrot.slane %v6590_v24, %v12357_v47 }
0x135a   : > { %v6512_v16 = vcombine.high %v6508_v46, %v6508_v46  ;;  %v6599_v55 = vcombine.low %v6511_v49, %v6494_v25  ;;  %v6600_v58 = vcombine.low %v6508_v46, %v6510_v29  ;;  %v5734_v31 = vadd.f32 %v5733_v44, %v5625_v60 }
0x135b   : > { %v6582_v37 = vrot.slane %v6568_v10, %v12357_v47  ;;  %v5854_v21 = vrot.slane %v5742_v19, %v12357_v47  ;;  %v5736_v5 = vpop.f32.mrf.mxu1  ;;  %v6608_v20 = vrot.slane %v6598_v57, %v12357_v47  ;;  %v6660_v60 = vrot.slane %v6653_v26, %v12357_v47 }
0x135c   : > { %v6601_v4 = vcombine.low %v6512_v16, %v6527_v35  ;;  %v6615_v6 = vrot.slane %v6599_v55, %v12357_v47  ;;  %v5737_v36 = vadd.f32 %v5736_v5, %v5674_v7  ;;  %v6622_v13 = vrot.slane %v6600_v58, %v12357_v47 }
0x135d   : > { %v6583_v14 = vcombine.low %v6575_v27, %v6582_v37  ;;  %v5855_v12 = vcombine.high %v5854_v21, %v5854_v21  ;;  %v5750_v9 = vcombine.high %v5734_v31, %v5734_v31  ;;  %v5757_v40 = vrot.slane %v5734_v31, %v12357_v47 }
0x135e   : > { %v6629_v39 = vrot.slane %v6601_v4, %v12357_v47  ;;  %v6630_v56 = vcombine.low %v6608_v20, %v6615_v6  ;;  %v5799_v8 = vcombine.high %v5737_v36, %v5737_v36  ;;  %v5862_v28 = vrot.slane %v5854_v21, %v12357_v47 }
0x135f   : > { %v5764_v32 = vrot.slane %v5750_v9, %v12357_v47  ;;  %v5806_v1 = vrot.slane %v5737_v36, %v12357_v47  ;;  %v13104_v22 = vpack.c.bf16 %v6597_v63, %v6583_v14  ;;  %v5869_v42 = vrot.slane %v5855_v12, %v12357_v47 }
0x1360   : > { %v6631_v7 = vcombine.low %v6622_v13, %v6629_v39  ;;  %v5765_v23 = vcombine.high %v5757_v40, %v5757_v40  ;;  %v6638_v41 = vrot.slane %v6630_v56, %v12357_v47  ;;  %v5773_v33 = vrot.slane %v5757_v40, %v12357_v47 }
0x1361   : > { %v5766_v2 = vcombine.high %v5764_v32, %v5764_v32  ;;  %v5813_v15 = vrot.slane %v5799_v8, %v12357_v47  ;;  %v5814_v59 = vcombine.high %v5806_v1, %v5806_v1  ;;  %v5822_v38 = vrot.slane %v5806_v1, %v12357_v47 }
0x1362   : > { %v6645_v11 = vrot.slane %v6631_v7, %v12357_v47  ;;  %v5787_v17 = vrot.slane %v5765_v23, %v12357_v47  ;;  %v5780_v25 = vrot.slane %v5764_v32, %v12357_v47  ;;  %v6675_v20 = vsel %vm2668_vm10, %v13104_v22, 0 }
0x1363   : > { %v5794_v43 = vrot.slane %v5766_v2, %v12357_v47  ;;  %v5815_v3 = vcombine.high %v5813_v15, %v5813_v15  ;;  %v5829_v34 = vrot.slane %v5813_v15, %v12357_v47  ;;  %v5836_v44 = vrot.slane %v5814_v59, %v12357_v47  ;;  %11426 = vmatpush3.bf16.xpose.msra.mxu1 %v6675_v20 }
0x1364   : > { %v6646_v53 = vcombine.low %v6638_v41, %v6645_v11  ;;  %v5870_v52 = vcombine.low %v5773_v33, %v5787_v17  ;;  %v11004_v24 = vcombine.high %v5773_v33, %v5787_v17  ;;  %v5844_v57 = vcombine.high %v5822_v38, %v5822_v38  ;;  %11437 = vmatprep.subr.bf16.mxu1 %v11866_v48 }
0x1365   : > { %v5872_v46 = vcombine.low %v5780_v25, %v5794_v43  ;;  %v11005_v29 = vcombine.high %v5780_v25, %v5794_v43  ;;  %v5843_v49 = vrot.slane %v5815_v3, %v12357_v47  ;;  %v5845_v19 = vcombine.high %v5829_v34, %v5829_v34 }
0x1366   : > { %v13118_v35 = vpack.c.bf16 %v6660_v60, %v6646_v53  ;;  %v5880_v26 = vrot.slane %v5870_v52, %v12357_v47  ;;  %v5887_v10 = vrot.slane %v11004_v24, %v12357_v47  ;;  %v5846_v16 = vcombine.high %v5836_v44, %v5836_v44 }
0x1367   : > { %v5894_v54 = vrot.slane %v5872_v46, %v12357_v47  ;;  %v5901_v27 = vrot.slane %v11005_v29, %v12357_v47  ;;  %v5847_v55 = vcombine.high %v5843_v49, %v5843_v49  ;;  %v5925_v37 = vrot.slane %v5822_v38, %v12357_v47 }
0x1368   : > { %v5902_v58 = vcombine.low %v5880_v26, %v5887_v10  ;;  %v5933_v63 = vcombine.low %v5836_v44, %v5844_v57  ;;  %v5935_v21 = vcombine.low %v5843_v49, %v5845_v19  ;;  %v5934_v5 = vcombine.low %v5846_v16, %v5829_v34 }
0x1369   : > { %v5903_v31 = vcombine.low %v5894_v54, %v5901_v27  ;;  %v5936_v4 = vcombine.low %v5847_v55, %v5862_v28  ;;  %v6722_v39 = vsel %vm2668_vm10, %v13118_v35, 0  ;;  %v5988_v56 = vrot.slane %v5869_v42, %v12357_v47 }
0x136a   : > { %v5910_v6 = vrot.slane %v5902_v58, %v12357_v47  ;;  %v5943_v36 = vrot.slane %v5933_v63, %v12357_v47  ;;  %v5957_v14 = vrot.slane %v5935_v21, %v12357_v47  ;;  %v5950_v12 = vrot.slane %v5934_v5, %v12357_v47  ;;  %11432 = vmatpush3.bf16.xpose.msra.mxu0 %v6722_v39 }
0x136b   : > { %v5917_v13 = vrot.slane %v5903_v31, %v12357_v47  ;;  %v5964_v9 = vrot.slane %v5936_v4, %v12357_v47  ;;  %v5932_v8 = vrot.slane %v5925_v37, %v12357_v47  ;;  %11443 = vmatprep.subr.bf16.mxu0 %v11866_v48  ;;  %v5995_v23 = vrot.slane %v5988_v56, %v12357_v47 }
0x136c   : > { %v5965_v60 = vcombine.low %v5943_v36, %v5950_v12 }
0x136d   : > { %v5918_v40 = vcombine.low %v5910_v6, %v5917_v13  ;;  %v5966_v28 = vcombine.low %v5957_v14, %v5964_v9 }
0x136e   : > { %v5973_v32 = vrot.slane %v5965_v60, %v12357_v47 }
0x136f   : > { %v13140_v1 = vpack.c.bf16 %v5932_v8, %v5918_v40  ;;  %v5980_v7 = vrot.slane %v5966_v28, %v12357_v47 }
0x1371   : > { %11428 = vmatmul.mubr.msk.bf16.vlgmr.msra.gmra.mxu1 %vm2668_vm10, %v13140_v1  ;;  %v5981_v42 = vcombine.low %v5973_v32, %v5980_v7 }
0x1372   : > { %11439 = vmatprep.mubr.msk.bf16.mxu1 %vm11867_vm9, %v11866_v48 }
0x1373   : > { %v13148_v41 = vpack.c.bf16 %v5995_v23, %v5981_v42 }
0x1375   : > { %11434 = vmatmul.mubr.msk.bf16.vlgmr.msra.gmra.mxu0 %vm2668_vm10, %v13148_v41 }
0x1376   : > { %11445 = vmatprep.mubr.msk.bf16.mxu0 %vm11867_vm9, %v11866_v48 }
0x1431   : > { %v6711_v2 = vpop.f32.mrf.mxu1 }
0x1432   : > { %v6765_v33 = vsel %vm2766_vm11, %v6711_v2, -inf }
0x1433   : > { %6766 = vmax.xlane.f32.xlu0 %v6765_v33  ;;  %v11429_v15 = vpop.f32.mrf.mxu1 }
0x1435   : > { %v6714_v11 = vpop.f32.mrf.mxu1  ;;  %v6758_v17 = vpop.f32.mrf.mxu0 }
0x1436   : > { %v6771_v59 = vsel %vm2766_vm11, %v6758_v17, -inf  ;;  %v6768_v53 = vsel %vm2770_vm12, %v6714_v11, -inf }
0x1437   : > { %v11430_v38 = vpop.f32.mrf.mxu1  ;;  %6772 = vmax.xlane.f32.xlu1 %v6771_v59  ;;  %v11435_v25 = vpop.f32.mrf.mxu0 }
0x1439   : > { %v6761_v43 = vpop.f32.mrf.mxu0 }
0x143a   : > { %v6774_v3 = vsel %vm2770_vm12, %v6761_v43, -inf }
0x143b   : > { %v11436_v34 = vpop.f32.mrf.mxu0  ;;  %6775 = vmax.xlane.f32.xlu0 %v6774_v3 }
0x143f   : > { %6769 = vmax.xlane.f32.xlu0 %v6768_v53 }
0x1448   : > { %6862 = vrot.lane.b32.xlu1 %v13118_v35, %s11864_s17 }
0x14bc   : > { %v6767_v52 = vpop.xlane.xlu0 %6766 }
0x14bd   : > { %v6777_v24 = vsub.f32 %v6711_v2, %v6767_v52 }
0x14bf   : > { %v6781_v44 = vmul.f32 1.442695, %v6777_v24 }
0x14c0   : > { %v6773_v46 = vpop.xlane.xlu1 %6772 }
0x14c1   : > { %11729 = vpow2.f32 %v6781_v44  ;;  %v6779_v29 = vsub.f32 %v6758_v17, %v6773_v46 }
0x14c3   : > { %v6785_v49 = vmul.f32 1.442695, %v6779_v29 }
0x14c4   : > { %v6863_v57 = vpop.permute.xlu1 %6862  ;;  %v6776_v26 = vpop.xlane.xlu0 %6775 }
0x14c5   : > { %11731 = vpow2.f32 %v6785_v49  ;;  %v6868_v10 = vand.u32 %v6863_v57, %v12466_v51  ;;  %v6780_v19 = vsub.f32 %v6761_v43, %v6776_v26 }
0x14c7   : > { %11444 = vmatpush3.bf16.msra.mxu0 %v6868_v10  ;;  %v6787_v16 = vmul.f32 1.442695, %v6780_v19 }
0x14c8   : > { %v6770_v54 = vpop.xlane.xlu0 %6769  ;;  %11455 = vmatprep.subr.bf16.mxu0 %v11866_v48 }
0x14c9   : > { %v6778_v27 = vsub.f32 %v6714_v11, %v6770_v54 }
0x14cb   : > { %v6783_v55 = vmul.f32 1.442695, %v6778_v27 }
0x14cd   : > { %11733 = vpow2.f32 %v6783_v55 }
0x14ce   : > { %v11730_v58 = vpop.eup %11729  ;;  %11735 = vpow2.f32 %v6787_v16 }
0x14cf   : > { %v6789_v37 = vsel %vm2766_vm11, %v11730_v58, 0.0 }
0x14d0   : > { %6790 = vadd.xlane.f32.xlu1 %v6789_v37 }
0x14d2   : > { %v11732_v63 = vpop.eup %11731 }
0x14d3   : > { %v6795_v21 = vsel %vm2766_vm11, %v11732_v63, 0.0 }
0x14d4   : > { %6796 = vadd.xlane.f32.xlu1 %v6795_v21 }
0x14da   : > { %v11734_v31 = vpop.eup %11733 }
0x14db   : > { %v6792_v5 = vsel %vm2770_vm12, %v11734_v31, 0.0  ;;  %v11736_v4 = vpop.eup %11735 }
0x14dc   : > { %6793 = vadd.xlane.f32.xlu0 %v6792_v5  ;;  %v6798_v20 = vsel %vm2770_vm12, %v11736_v4, 0.0 }
0x14e0   : > { %6799 = vadd.xlane.f32.xlu0 %v6798_v20 }
0x14e5   : > { %6968 = vrot.lane.b32.xlu1 %v13118_v35, %s11871_s3 }
0x14e9   : > { %6916 = vrot.lane.b32.xlu1 %v13104_v22, %s11871_s3 }
0x14ed   : > { %6966 = vrot.lane.b32.xlu1 %v13148_v41, %s11871_s3 }
0x14f6   : > { %6812 = vrot.lane.b32.xlu0 %v13104_v22, %s11864_s17 }
0x14fa   : > { %6914 = vrot.lane.b32.xlu0 %v13140_v1, %s11871_s3 }
0x1559   : > { %v6791_v6 = vpop.xlane.xlu1 %6790 }
0x155a   : > { %11737 = vrcp.f32 %v6791_v6 }
0x155d   : > { %v6797_v36 = vpop.xlane.xlu1 %6796 }
0x1561   : > { %v6969_v39 = vpop.permute.xlu1 %6968 }
0x1562   : > { %v6974_v11 = vsel %vm2668_vm10, %v6969_v39, 0 }
0x1565   : > { %v6794_v14 = vpop.xlane.xlu0 %6793  ;;  %v6917_v32 = vpop.permute.xlu1 %6916 }
0x1566   : > { %11739 = vrcp.f32 %v6794_v14  ;;  %v6922_v42 = vsel %vm2668_vm10, %v6917_v32, 0 }
0x1567   : > { %11741 = vrcp.f32 %v6797_v36  ;;  %v11738_v56 = vpop.eup %11737 }
0x1568   : > { %v6805_v8 = vmul.f32 %v11738_v56, %v11730_v58 }
0x1569   : > { %v6800_v13 = vpop.xlane.xlu0 %6799  ;;  %v6967_v59 = vpop.permute.xlu1 %6966 }
0x156a   : > { %11743 = vrcp.f32 %v6800_v13 }
0x156d   : > { %v6813_v12 = vpop.permute.xlu0 %6812 }
0x156e   : > { %v6818_v9 = vand.u32 %v6813_v12, %v12466_v51 }
0x1570   : > { %11438 = vmatpush3.bf16.msra.mxu1 %v6818_v9 }
0x1571   : > { %11449 = vmatprep.subr.bf16.mxu1 %v11866_v48  ;;  %v6915_v17 = vpop.permute.xlu0 %6914 }
0x1573   : > { %v11740_v40 = vpop.eup %11739 }
0x1574   : > { %v6806_v60 = vmul.f32 %v11740_v40, %v11734_v31  ;;  %v11742_v28 = vpop.eup %11741 }
0x1575   : > { %v6807_v2 = vmul.f32 %v11742_v28, %v11732_v63 }
0x1576   : > { %v6809_v7 = vpack.c.bf16 %v6806_v60, %v6805_v8 }
0x1577   : > { %v11744_v23 = vpop.eup %11743 }
0x1578   : > { %11440 = vmatmul.mubr.msk.bf16.vlgmr.msra.gmra.mxu1 %vm2766_vm11, %v6809_v7  ;;  %v6808_v33 = vmul.f32 %v11744_v23, %v11736_v4 }
0x1579   : > { %11450 = vmatpush3.bf16.xpose.msra.mxu1 %v6922_v42  ;;  %11451 = vmatprep.mubr.msk.bf16.mxu1 %vm11867_vm9, %v11866_v48 }
0x157a   : > { %v6810_v15 = vpack.c.bf16 %v6808_v33, %v6807_v2  ;;  %11461 = vmatprep.subr.bf16.mxu1 %v11866_v48 }
0x157c   : > { %11446 = vmatmul.mubr.msk.bf16.vlgmr.msra.gmra.mxu0 %vm2766_vm11, %v6810_v15 }
0x157d   : > { %11456 = vmatpush3.bf16.xpose.msra.mxu0 %v6974_v11  ;;  %11457 = vmatprep.mubr.msk.bf16.mxu0 %vm11867_vm9, %v11866_v48 }
0x157e   : > { %11467 = vmatprep.subr.bf16.mxu0 %v11866_v48 }
0x1580   : > { %11452 = vmatmul.mubr.msk.bf16.vlgmr.msra.gmra.mxu1 %vm2668_vm10, %v6915_v17 }
0x1581   : > { %11463 = vmatprep.mubr.msk.bf16.mxu1 %vm11867_vm9, %v11866_v48 }
0x1584   : > { %11458 = vmatmul.mubr.msk.bf16.vlgmr.msra.gmra.mxu0 %vm2668_vm10, %v6967_v59 }
0x1585   : > { %11469 = vmatprep.mubr.msk.bf16.mxu0 %vm11867_vm9, %v11866_v48 }
0x1638   : > { %v6854_v38 = vpop.f32.mrf.mxu1 }
0x163a   : > { %v11441_v25 = vpop.f32.mrf.mxu1 }
0x163c   : > { %v6857_v43 = vpop.f32.mrf.mxu1  ;;  %v6904_v3 = vpop.f32.mrf.mxu0 }
0x163d   : > { %v6911_v34 = vpack.c.bf16 %v6857_v43, %v6854_v38  ;;  %v11040_v53 = vpack.c.bf16 %v6857_v43, %v6857_v43 }
0x163e   : > { %v11442_v52 = vpop.f32.mrf.mxu1  ;;  %v11447_v24 = vpop.f32.mrf.mxu0 }
0x163f   : > { %v7399_v44 = vrot.slane %v6911_v34, %v12357_v47  ;;  %v7406_v26 = vrot.slane %v11040_v53, %v12357_v47 }
0x1640   : > { %v6907_v46 = vpop.f32.mrf.mxu0  ;;  %v6958_v29 = vpop.f32.mrf.mxu1 }
0x1641   : > { %v7407_v49 = vcombine.high %v7399_v44, %v7399_v44  ;;  %v6912_v57 = vpack.c.bf16 %v6907_v46, %v6904_v3  ;;  %v11041_v10 = vpack.c.bf16 %v6907_v46, %v6907_v46  ;;  %v7017_v54 = vsel %vm2766_vm11, %v6958_v29, -inf }
0x1642   : > { %v11448_v19 = vpop.f32.mrf.mxu0  ;;  %v11453_v27 = vpop.f32.mrf.mxu1  ;;  %7018 = vmax.xlane.f32.xlu0 %v7017_v54  ;;  %v7414_v58 = vrot.slane %v7399_v44, %v12357_v47  ;;  %v7421_v5 = vrot.slane %v7406_v26, %v12357_v47 }
0x1643   : > { %v7428_v16 = vrot.slane %v7407_v49, %v12357_v47  ;;  %v7438_v55 = vrot.slane %v6912_v57, %v12357_v47  ;;  %v7445_v20 = vrot.slane %v11041_v10, %v12357_v47 }
0x1644   : > { %v6961_v37 = vpop.f32.mrf.mxu1  ;;  %v7010_v63 = vpop.f32.mrf.mxu0 }
0x1645   : > { %v7446_v21 = vcombine.high %v7438_v55, %v7438_v55  ;;  %v7453_v31 = vrot.slane %v7438_v55, %v12357_v47  ;;  %v7497_v4 = vcombine.low %v7414_v58, %v7428_v16  ;;  %v7023_v6 = vsel %vm2766_vm11, %v7010_v63, -inf }
0x1646   : > { %v11454_v36 = vpop.f32.mrf.mxu1  ;;  %v11459_v14 = vpop.f32.mrf.mxu0  ;;  %v11047_v13 = vcombine.high %v7414_v58, %v7428_v16  ;;  %7024 = vmax.xlane.f32.xlu1 %v7023_v6  ;;  %v7460_v23 = vrot.slane %v7445_v20, %v12357_v47  ;;  %v7020_v43 = vsel %vm2770_vm12, %v6961_v37, -inf }
0x1647   : > { %v7467_v12 = vrot.slane %v7446_v21, %v12357_v47  ;;  %v7468_v9 = vcombine.high %v7453_v31, %v7453_v31  ;;  %v7480_v39 = vunpack.i.h.s16 %v7453_v31  ;;  %v11042_v56 = vpack.i.b16 %v7453_v31, %v7421_v5 }
0x1648   : > { %v7013_v40 = vpop.f32.mrf.mxu0  ;;  %v7507_v7 = vrot.slane %v7497_v4, %v12357_v47  ;;  %v7514_v33 = vrot.slane %v11047_v13, %v12357_v47 }
0x1649   : > { %v7469_v8 = vcombine.high %v7467_v12, %v7467_v12  ;;  %v7482_v60 = vunpack.i.h.s16 %v7467_v12  ;;  %v7484_v28 = vunpack.i.h.s16 %v7468_v9  ;;  %v7026_v32 = vsel %vm2770_vm12, %v7013_v40, -inf }
0x164a   : > { %v11043_v42 = vpack.i.b16 %v7467_v12, %v7480_v39  ;;  %v11460_v2 = vpop.f32.mrf.mxu0  ;;  %7027 = vmax.xlane.f32.xlu0 %v7026_v32  ;;  %v7529_v53 = vcombine.low %v7507_v7, %v7514_v33  ;;  %v6667_v39 = vld [vmem:[%s12006_s28] sm:$0xf] }
0x164b   : > { %v7486_v15 = vunpack.i.h.s16 %v7469_v8  ;;  %v11044_v11 = vpack.i.b16 %v7468_v9, %v7482_v60  ;;  %v11045_v17 = vpack.i.b16 %v7469_v8, %v7484_v28 }
0x164c   : > { %v7499_v59 = vcombine.low %v11042_v56, %v11043_v42  ;;  %v13215_v24 = vrot.slane %v7529_v53, %v12357_v47 }
0x164d   : > { %v13209_v38 = vpack.i.b16 %v7460_v23, %v7486_v15  ;;  %v7500_v25 = vcombine.low %v11044_v11, %v11045_v17 }
0x164e   : > { %7021 = vmax.xlane.f32.xlu0 %v7020_v43  ;;  %v7521_v3 = vrot.slane %v7499_v59, %v12357_v47  ;;  %v7567_v59 = vsel %vm2819_vm13, %v6667_v39, 0 }
0x164f   : > { %v7528_v34 = vrot.slane %v7500_v25, %v12357_v47  ;;  %v7552_v25 = vrot.slane %v13209_v38, %v12357_v47  ;;  %v6668_v38 = vld [vmem:[%s12006_s28 + $0x4] sm:$0xf] }
0x1651   : > { %v7530_v52 = vcombine.low %v7521_v3, %v7528_v34  ;;  %v7559_v3 = vrot.slane %v7552_v25, %v12357_v47 }
0x1653   : > { %v13218_v44 = vrot.slane %v7530_v52, %v12357_v47 }
0x1655   : > { %v7545_v46 = vcombine.low %v13215_v24, %v13218_v44  ;;  %v7340_v24 = vsel %vm2819_vm13, %v6668_v38, 0 }
0x16cb   : > { %v7019_v49 = vpop.xlane.xlu0 %7018 }
0x16cc   : > { %v7029_v57 = vsub.f32 %v6958_v29, %v7019_v49 }
0x16ce   : > { %v7033_v26 = vmul.f32 1.442695, %v7029_v57 }
0x16cf   : > { %v7025_v10 = vpop.xlane.xlu1 %7024 }
0x16d0   : > { %11745 = vpow2.f32 %v7033_v26  ;;  %v7031_v19 = vsub.f32 %v7010_v63, %v7025_v10 }
0x16d2   : > { %v7037_v54 = vmul.f32 1.442695, %v7031_v19 }
0x16d3   : > { %v7028_v27 = vpop.xlane.xlu0 %7027 }
0x16d4   : > { %11747 = vpow2.f32 %v7037_v54  ;;  %v7032_v16 = vsub.f32 %v7013_v40, %v7028_v27 }
0x16d6   : > { %v7039_v21 = vmul.f32 1.442695, %v7032_v16 }
0x16d7   : > { %v7022_v55 = vpop.xlane.xlu0 %7021 }
0x16d8   : > { %v7030_v58 = vsub.f32 %v6961_v37, %v7022_v55 }
0x16da   : > { %v7035_v31 = vmul.f32 1.442695, %v7030_v58 }
0x16dc   : > { %11749 = vpow2.f32 %v7035_v31 }
0x16dd   : > { %v11746_v5 = vpop.eup %11745  ;;  %11751 = vpow2.f32 %v7039_v21 }
0x16de   : > { %v7041_v4 = vsel %vm2766_vm11, %v11746_v5, 0.0 }
0x16df   : > { %7042 = vadd.xlane.f32.xlu1 %v7041_v4 }
0x16e1   : > { %v11748_v20 = vpop.eup %11747 }
0x16e2   : > { %v7047_v29 = vsel %vm2766_vm11, %v11748_v20, 0.0 }
0x16e3   : > { %7048 = vadd.xlane.f32.xlu1 %v7047_v29 }
0x16e9   : > { %v11750_v6 = vpop.eup %11749 }
0x16ea   : > { %v7044_v63 = vsel %vm2770_vm12, %v11750_v6, 0.0  ;;  %v11752_v36 = vpop.eup %11751 }
0x16eb   : > { %7045 = vadd.xlane.f32.xlu0 %v7044_v63  ;;  %v7050_v37 = vsel %vm2770_vm12, %v11752_v36, 0.0 }
0x16ef   : > { %7051 = vadd.xlane.f32.xlu0 %v7050_v37 }
0x16f4   : > { %7112 = vrot.lane.b32.xlu1 %v13118_v35, %s11870_s20 }
0x16f8   : > { %7811 = vrot.lane.b32.xlu1 %v13118_v35, %s11874_s9 }
0x16fc   : > { %7760 = vrot.lane.b32.xlu1 %v13104_v22, %s11874_s9 }
0x1700   : > { %7809 = vrot.lane.b32.xlu1 %v13148_v41, %s11874_s9 }
0x1705   : > { %7063 = vrot.lane.b32.xlu0 %v13104_v22, %s11870_s20 }
0x1709   : > { %7758 = vrot.lane.b32.xlu0 %v13140_v1, %s11874_s9 }
0x1768   : > { %v7043_v14 = vpop.xlane.xlu1 %7042 }
0x1769   : > { %11753 = vrcp.f32 %v7043_v14 }
0x176c   : > { %v7049_v13 = vpop.xlane.xlu1 %7048 }
0x1770   : > { %v7113_v12 = vpop.permute.xlu1 %7112 }
0x1771   : > { %v7118_v9 = vand.u32 %v7113_v12, %v12466_v51 }
0x1773   : > { %11468 = vmatpush3.bf16.msra.mxu0 %v7118_v9 }
0x1774   : > { %v7046_v56 = vpop.xlane.xlu0 %7045  ;;  %11578 = vmatprep.subr.msk.bf16.mxu0 %vm2819_vm13, %v6667_v39  ;;  %v7812_v43 = vpop.permute.xlu1 %7811 }
0x1775   : > { %11755 = vrcp.f32 %v7046_v56  ;;  %v7817_v34 = vsel %vm2668_vm10, %v7812_v43, 0 }
0x1776   : > { %11757 = vrcp.f32 %v7049_v13  ;;  %v11754_v28 = vpop.eup %11753 }
0x1777   : > { %v7057_v7 = vmul.f32 %v11754_v28, %v11746_v5 }
0x1778   : > { %v7052_v40 = vpop.xlane.xlu0 %7051  ;;  %v13255_v53 = vpop.permute.xlu1 %7760 }
0x1779   : > { %11759 = vrcp.f32 %v7052_v40 }
0x177c   : > { %v7064_v8 = vpop.permute.xlu0 %7063  ;;  %v7810_v52 = vpop.permute.xlu1 %7809 }
0x177d   : > { %v7069_v60 = vand.u32 %v7064_v8, %v12466_v51 }
0x177f   : > { %11462 = vmatpush3.bf16.msra.mxu1 %v7069_v60 }
0x1780   : > { %11577 = vmatprep.subr.msk.bf16.mxu1 %vm2819_vm13, %v6668_v38 }
0x1782   : > { %v11756_v32 = vpop.eup %11755 }
0x1783   : > { %v7058_v23 = vmul.f32 %v11756_v32, %v11750_v6  ;;  %v11758_v42 = vpop.eup %11757 }
0x1784   : > { %v7059_v15 = vmul.f32 %v11758_v42, %v11748_v20 }
0x1785   : > { %v7061_v2 = vpack.c.bf16 %v7058_v23, %v7057_v7 }
0x1786   : > { %v11760_v33 = vpop.eup %11759 }
0x1787   : > { %11464 = vmatmul.mubr.msk.bf16.vlgmr.msra.gmra.mxu1 %vm2766_vm11, %v7061_v2  ;;  %v7060_v11 = vmul.f32 %v11760_v33, %v11752_v36 }
0x1788   : > { %11474 = vmatpush3.bf16.msra.mxu1 %v7340_v24 }
0x1789   : > { %v7062_v17 = vpack.c.bf16 %v7060_v11, %v7059_v15  ;;  %11485 = vmatprep.subr.bf16.mxu1 %v11866_v48 }
0x178b   : > { %11470 = vmatmul.mubr.msk.bf16.vlgmr.msra.gmra.mxu0 %vm2766_vm11, %v7062_v17 }
0x178c   : > { %11481 = vmatprep.mubr.msk.bf16.mxu0 %vm2668_vm10, %v7545_v46  ;;  %11480 = vmatpush3.bf16.msra.mxu0 %v7567_v59 }
0x178d   : > { %11491 = vmatprep.subr.bf16.mxu0 %v11866_v48 }
0x1793   : > { %11482 = vmatmul.mubr.msk.bf16.vlgmr.msra.gmra.mxu0 %vm2668_vm10, %v7559_v3 }
0x1794   : > { %11492 = vmatpush3.bf16.xpose.msra.mxu0 %v7817_v34  ;;  %11493 = vmatprep.mubr.msk.bf16.mxu0 %vm11867_vm9, %v11866_v48 }
0x1795   : > { %11503 = vmatprep.subr.bf16.mxu0 %v11866_v48 }
0x179b   : > { %11494 = vmatmul.mubr.msk.bf16.vlgmr.msra.gmra.mxu0 %vm2668_vm10, %v7810_v52 }
0x179c   : > { %11505 = vmatprep.mubr.msk.bf16.mxu0 %vm11867_vm9, %v11866_v48 }
0x1847   : > { %v7105_v44 = vpop.f32.mrf.mxu1 }
0x1849   : > { %v11465_v46 = vpop.f32.mrf.mxu1 }
0x184b   : > { %v7108_v49 = vpop.f32.mrf.mxu1  ;;  %v7154_v57 = vpop.f32.mrf.mxu0 }
0x184c   : > { %v7161_v26 = vpack.c.bf16 %v7108_v49, %v7105_v44  ;;  %v11030_v27 = vpack.c.bf16 %v7108_v49, %v7108_v49 }
0x184d   : > { %v11466_v10 = vpop.f32.mrf.mxu1  ;;  %v11471_v19 = vpop.f32.mrf.mxu0 }
0x184e   : > { %v7172_v54 = vrot.slane %v7161_v26, %v12357_v47  ;;  %v7179_v4 = vrot.slane %v11030_v27, %v12357_v47 }
0x184f   : > { %v7157_v16 = vpop.f32.mrf.mxu0 }
0x1850   : > { %v7180_v55 = vcombine.high %v7172_v54, %v7172_v54  ;;  %v7162_v58 = vpack.c.bf16 %v7157_v16, %v7154_v57  ;;  %v7187_v20 = vrot.slane %v7172_v54, %v12357_v47  ;;  %v11031_v29 = vpack.c.bf16 %v7157_v16, %v7157_v16 }
0x1851   : > { %v11472_v21 = vpop.f32.mrf.mxu0  ;;  %v7194_v39 = vrot.slane %v7179_v4, %v12357_v47 }
0x1852   : > { %v7201_v31 = vrot.slane %v7180_v55, %v12357_v47  ;;  %v7211_v5 = vrot.slane %v7162_v58, %v12357_v47  ;;  %v7218_v56 = vrot.slane %v11031_v29, %v12357_v47  ;;  %v7766_v58 = vsel %vm2668_vm10, %v13255_v53, 0  ;;  %v7759_v21 = vpop.permute.xlu0 %7758 }
0x1853   : > { %v13272_v6 = vpop.f32.mrf.mxu0 }
0x1854   : > { %v7219_v63 = vcombine.high %v7211_v5, %v7211_v5  ;;  %v7226_v36 = vrot.slane %v7211_v5, %v12357_v47  ;;  %v7270_v37 = vcombine.low %v7187_v20, %v7201_v31  ;;  %v11037_v13 = vcombine.high %v7187_v20, %v7201_v31 }
0x1855   : > { %v13275_v14 = vpop.f32.mrf.mxu0  ;;  %v7233_v59 = vrot.slane %v7218_v56, %v12357_v47 }
0x1856   : > { %v7240_v12 = vrot.slane %v7219_v63, %v12357_v47  ;;  %v7241_v9 = vcombine.high %v7226_v36, %v7226_v36  ;;  %v7253_v40 = vunpack.i.h.s16 %v7226_v36  ;;  %v7280_v7 = vrot.slane %v7270_v37, %v12357_v47 }
0x1857   : > { %v11484_v8 = vpop.f32.mrf.mxu0  ;;  %v11032_v23 = vpack.i.b16 %v7226_v36, %v7194_v39  ;;  %v7287_v33 = vrot.slane %v11037_v13, %v12357_v47 }
0x1858   : > { %v7242_v60 = vcombine.high %v7240_v12, %v7240_v12  ;;  %v7255_v28 = vunpack.i.h.s16 %v7240_v12  ;;  %v7257_v32 = vunpack.i.h.s16 %v7241_v9  ;;  %v11033_v42 = vpack.i.b16 %v7240_v12, %v7253_v40 }
0x1859   : > { %v13281_v2 = vpop.f32.mrf.mxu0  ;;  %v7302_v46 = vcombine.low %v7280_v7, %v7287_v33 }
0x185a   : > { %v7259_v15 = vunpack.i.h.s16 %v7242_v60  ;;  %v11034_v11 = vpack.i.b16 %v7241_v9, %v7255_v28  ;;  %v11035_v17 = vpack.i.b16 %v7242_v60, %v7257_v32  ;;  %v7272_v25 = vcombine.low %v11032_v23, %v11033_v42 }
0x185b   : > { %v7853_v43 = vpop.f32.mrf.mxu0  ;;  %v7310_v54 = vrot.slane %v7302_v46, %v12357_v47 }
0x185c   : > { %v7273_v3 = vcombine.low %v11034_v11, %v11035_v17  ;;  %v7866_v34 = vsel %vm2766_vm11, %v7853_v43, -inf  ;;  %v11036_v52 = vpack.i.b16 %v7233_v59, %v7259_v15  ;;  %v7294_v24 = vrot.slane %v7272_v25, %v12357_v47 }
0x185d   : > { %7867 = vmax.xlane.f32.xlu1 %v7866_v34  ;;  %v11495_v38 = vpop.f32.mrf.mxu0 }
0x185e   : > { %v7301_v44 = vrot.slane %v7273_v3, %v12357_v47  ;;  %v7325_v10 = vrot.slane %v11036_v52, %v12357_v47 }
0x185f   : > { %v7856_v49 = vpop.f32.mrf.mxu0 }
0x1860   : > { %v7869_v57 = vsel %vm2770_vm12, %v7856_v49, -inf  ;;  %v7303_v26 = vcombine.low %v7294_v24, %v7301_v44  ;;  %v7332_v55 = vrot.slane %v7325_v10, %v12357_v47 }
0x1861   : > { %7870 = vmax.xlane.f32.xlu0 %v7869_v57  ;;  %v11496_v19 = vpop.f32.mrf.mxu0 }
0x1862   : > { %v7317_v27 = vrot.slane %v7303_v26, %v12357_v47 }
0x1864   : > { %v7318_v16 = vcombine.low %v7310_v54, %v7317_v27 }
0x1866   : > { %11475 = vmatprep.mubr.msk.bf16.mxu1 %vm2668_vm10, %v7318_v16 }
0x1867   : > { %11476 = vmatmul.mubr.msk.bf16.vlgmr.msra.gmra.mxu1 %vm2668_vm10, %v7332_v55 }
0x1868   : > { %11486 = vmatpush3.bf16.xpose.msra.mxu1 %v7766_v58  ;;  %11487 = vmatprep.mubr.msk.bf16.mxu1 %vm11867_vm9, %v11866_v48 }
0x1869   : > { %11497 = vmatprep.subr.bf16.mxu1 %v11866_v48 }
0x186f   : > { %11488 = vmatmul.mubr.msk.bf16.vlgmr.msra.gmra.mxu1 %vm2668_vm10, %v7759_v21 }
0x1870   : > { %11499 = vmatprep.mubr.msk.bf16.mxu1 %vm11867_vm9, %v11866_v48 }
0x18e6   : > { %v7868_v31 = vpop.xlane.xlu1 %7867 }
0x18e7   : > { %v7874_v5 = vsub.f32 %v7853_v43, %v7868_v31 }
0x18e9   : > { %v7880_v4 = vmul.f32 1.442695, %v7874_v5 }
0x18ea   : > { %v7871_v29 = vpop.xlane.xlu0 %7870 }
0x18eb   : > { %11761 = vpow2.f32 %v7880_v4  ;;  %v7875_v63 = vsub.f32 %v7856_v49, %v7871_v29 }
0x18ed   : > { %v7882_v36 = vmul.f32 1.442695, %v7875_v63 }
0x18ef   : > { %11763 = vpow2.f32 %v7882_v36 }
0x18f8   : > { %v11762_v20 = vpop.eup %11761 }
0x18f9   : > { %v7890_v53 = vsel %vm2766_vm11, %v11762_v20, 0.0 }
0x18fa   : > { %7891 = vadd.xlane.f32.xlu1 %v7890_v53 }
0x18fc   : > { %v11764_v32 = vpop.eup %11763 }
0x18fd   : > { %v7893_v7 = vsel %vm2770_vm12, %v11764_v32, 0.0 }
0x1927   : > { %v13304_v37 = vpop.f32.mrf.mxu1 }
0x1929   : > { %v13306_v13 = vpop.f32.mrf.mxu1 }
0x192b   : > { %v11478_v12 = vpop.f32.mrf.mxu1 }
0x192d   : > { %v13308_v9 = vpop.f32.mrf.mxu1 }
0x192f   : > { %v7802_v39 = vpop.f32.mrf.mxu1 }
0x1930   : > { %v7860_v56 = vsel %vm2766_vm11, %v7802_v39, -inf }
0x1931   : > { %v11489_v40 = vpop.f32.mrf.mxu1  ;;  %7861 = vmax.xlane.f32.xlu0 %v7860_v56 }
0x1933   : > { %v7805_v8 = vpop.f32.mrf.mxu1 }
0x1934   : > { %v7863_v60 = vsel %vm2770_vm12, %v7805_v8, -inf }
0x1935   : > { %v11490_v28 = vpop.f32.mrf.mxu1  ;;  %7864 = vmax.xlane.f32.xlu0 %v7863_v60 }
0x1939   : > { %7894 = vadd.xlane.f32.xlu0 %v7893_v7 }
0x1983   : > { %v7892_v52 = vpop.xlane.xlu1 %7891 }
0x19ba   : > { %v7862_v23 = vpop.xlane.xlu0 %7861 }
0x19bb   : > { %v7872_v42 = vsub.f32 %v7802_v39, %v7862_v23 }
0x19bd   : > { %v7876_v33 = vmul.f32 1.442695, %v7872_v42 }
0x19be   : > { %v7865_v15 = vpop.xlane.xlu0 %7864 }
0x19bf   : > { %11765 = vpow2.f32 %v7876_v33  ;;  %v7873_v11 = vsub.f32 %v7805_v8, %v7865_v15 }
0x19c1   : > { %v7878_v17 = vmul.f32 1.442695, %v7873_v11 }
0x19c2   : > { %v7895_v34 = vpop.xlane.xlu0 %7894 }
0x19c3   : > { %11767 = vpow2.f32 %v7878_v17 }
0x19c4   : > { %11769 = vrcp.f32 %v7895_v34 }
0x19c5   : > { %11771 = vrcp.f32 %v7892_v52 }
0x19cc   : > { %v11766_v59 = vpop.eup %11765 }
0x19cd   : > { %v7884_v25 = vsel %vm2766_vm11, %v11766_v59, 0.0 }
0x19ce   : > { %7885 = vadd.xlane.f32.xlu1 %v7884_v25 }
0x19d0   : > { %v11768_v43 = vpop.eup %11767 }
0x19d1   : > { %v7887_v3 = vsel %vm2770_vm12, %v11768_v43, 0.0  ;;  %v11770_v24 = vpop.eup %11769 }
0x19d2   : > { %7888 = vadd.xlane.f32.xlu0 %v7887_v3  ;;  %v11772_v44 = vpop.eup %11771  ;;  %v7903_v57 = vmul.f32 %v11770_v24, %v11764_v32 }
0x19d3   : > { %v7902_v10 = vmul.f32 %v11772_v44, %v11762_v20  ;;  %v6669_v20 = vld [vmem:[%s12006_s28 + $0x8] sm:$0xf] }
0x19d4   : > { %v8183_v53 = vsel %vm2819_vm13, %v6669_v20, 0 }
0x19df   : > { %7955 = vrot.lane.b32.xlu1 %v13118_v35, %s11873_s26 }
0x19e3   : > { %8445 = vrot.lane.b32.xlu1 %v13118_v35, %s11877_s8 }
0x19e7   : > { %8394 = vrot.lane.b32.xlu1 %v13104_v22, %s11877_s8 }
0x19e8   : > { %7906 = vrot.lane.b32.xlu0 %v13104_v22, %s11873_s26 }
0x19eb   : > { %8443 = vrot.lane.b32.xlu1 %v13148_v41, %s11877_s8 }
0x19ec   : > { %8392 = vrot.lane.b32.xlu0 %v13140_v1, %s11877_s8  ;;  %v7905_v1 = vpack.c.bf16 %v7903_v57, %v7902_v10 }
0x1a57   : > { %v7886_v38 = vpop.xlane.xlu1 %7885 }
0x1a58   : > { %11773 = vrcp.f32 %v7886_v38 }
0x1a5b   : > { %v7956_v46 = vpop.permute.xlu1 %7955  ;;  %v7889_v49 = vpop.xlane.xlu0 %7888 }
0x1a5c   : > { %v7961_v26 = vand.u32 %v7956_v46, %v12466_v51  ;;  %11775 = vrcp.f32 %v7889_v49 }
0x1a5e   : > { %11504 = vmatpush3.bf16.msra.mxu0 %v7961_v26 }
0x1a5f   : > { %v13328_v41 = vpop.permute.xlu1 %8445  ;;  %v7907_v19 = vpop.permute.xlu0 %7906  ;;  %11515 = vmatprep.subr.bf16.mxu0 %v11866_v48 }
0x1a60   : > { %v7912_v54 = vand.u32 %v7907_v19, %v12466_v51 }
0x1a61   : > { %11506 = vmatmul.mubr.msk.bf16.vlgmr.msra.gmra.mxu0 %vm2766_vm11, %v7905_v1 }
0x1a62   : > { %11498 = vmatpush3.bf16.msra.mxu1 %v7912_v54  ;;  %11517 = vmatprep.mubr.msk.bf16.mxu0 %vm11867_vm9, %v11866_v48 }
0x1a63   : > { %v8395_v27 = vpop.permute.xlu1 %8394  ;;  %v8393_v5 = vpop.permute.xlu0 %8392  ;;  %11579 = vmatprep.subr.msk.bf16.mxu1 %vm2819_vm13, %v6669_v20 }
0x1a64   : > { %v8400_v16 = vsel %vm2668_vm10, %v8395_v27, 0 }
0x1a65   : > { %11516 = vmatpush3.bf16.xpose.msra.mxu0 %v8400_v16  ;;  %v11774_v55 = vpop.eup %11773 }
0x1a66   : > { %11527 = vmatprep.subr.bf16.mxu0 %v11866_v48  ;;  %v7900_v21 = vmul.f32 %v11774_v55, %v11766_v59 }
0x1a69   : > { %v11776_v58 = vpop.eup %11775 }
0x1a6a   : > { %v7901_v31 = vmul.f32 %v11776_v58, %v11768_v43 }
0x1a6c   : > { %11518 = vmatmul.mubr.msk.bf16.vlgmr.msra.gmra.mxu0 %vm2668_vm10, %v8393_v5  ;;  %v7904_v4 = vpack.c.bf16 %v7901_v31, %v7900_v21 }
0x1a6d   : > { %11529 = vmatprep.mubr.msk.bf16.mxu0 %vm11867_vm9, %v11866_v48 }
0x1a6e   : > { %11500 = vmatmul.mubr.msk.bf16.vlgmr.msra.gmra.mxu1 %vm2766_vm11, %v7904_v4 }
0x1a6f   : > { %11510 = vmatpush3.bf16.msra.mxu1 %v8183_v53 }
0x1a70   : > { %11521 = vmatprep.subr.bf16.mxu1 %v11866_v48 }
0x1b21   : > { %v7997_v29 = vpop.f32.mrf.mxu0 }
0x1b23   : > { %v11507_v63 = vpop.f32.mrf.mxu0 }
0x1b25   : > { %v8000_v36 = vpop.f32.mrf.mxu0 }
0x1b26   : > { %v8005_v12 = vpack.c.bf16 %v8000_v36, %v7997_v29  ;;  %v11055_v25 = vpack.c.bf16 %v8000_v36, %v8000_v36 }
0x1b27   : > { %v11508_v39 = vpop.f32.mrf.mxu0 }
0x1b28   : > { %v8054_v56 = vrot.slane %v8005_v12, %v12357_v47  ;;  %v8061_v26 = vrot.slane %v11055_v25, %v12357_v47 }
0x1b2a   : > { %v8062_v40 = vcombine.high %v8054_v56, %v8054_v56  ;;  %v8069_v8 = vrot.slane %v8054_v56, %v12357_v47  ;;  %v8076_v21 = vrot.slane %v8061_v26, %v12357_v47 }
0x1b2c   : > { %v13347_v60 = vpop.f32.mrf.mxu0  ;;  %v8083_v28 = vrot.slane %v8062_v40, %v12357_v47  ;;  %v8084_v32 = vcombine.high %v8069_v8, %v8069_v8  ;;  %v8096_v38 = vunpack.i.h.s16 %v8069_v8 }
0x1b2d   : > { %v8494_v7 = vsel %vm2766_vm11, %v13347_v60, -inf }
0x1b2e   : > { %8495 = vmax.xlane.f32.xlu0 %v8494_v7  ;;  %v7948_v23 = vpop.f32.mrf.mxu1  ;;  %v11519_v42 = vpop.f32.mrf.mxu0  ;;  %v8085_v11 = vcombine.high %v8083_v28, %v8083_v28  ;;  %v8098_v17 = vunpack.i.h.s16 %v8083_v28  ;;  %v8100_v59 = vunpack.i.h.s16 %v8084_v32  ;;  %v11057_v54 = vpack.i.b16 %v8083_v28, %v8096_v38 }
0x1b2f   : > { %v8451_v7 = vsel %vm2668_vm10, %v13328_v41, 0  ;;  %v7604_v42 = vadd.f32 %v13275_v14, %v13306_v13  ;;  %v7612_v41 = vadd.f32 %v13272_v6, %v13304_v37 }
0x1b30   : > { %v11501_v33 = vpop.f32.mrf.mxu1  ;;  %v13352_v15 = vpop.f32.mrf.mxu0  ;;  %v11058_v44 = vpack.i.b16 %v8084_v32, %v8098_v17  ;;  %v11059_v46 = vpack.i.b16 %v8085_v11, %v8100_v59  ;;  %v8102_v1 = vunpack.i.h.s16 %v8085_v11  ;;  %v7607_v11 = vadd.f32 %v13281_v2, %v13308_v9 }
0x1b31   : > { %v7620_v33 = vcombine.high %v7604_v42, %v7604_v42  ;;  %v7627_v59 = vrot.slane %v7604_v42, %v12357_v47 }
0x1b32   : > { %v7951_v43 = vpop.f32.mrf.mxu1  ;;  %v11520_v3 = vpop.f32.mrf.mxu0  ;;  %v8116_v27 = vcombine.low %v11058_v44, %v11059_v46  ;;  %v11060_v20 = vpack.i.b16 %v8076_v21, %v8102_v1  ;;  %v7676_v14 = vrot.slane %v7607_v11, %v12357_v47 }
0x1b33   : > { %v8004_v34 = vpack.c.bf16 %v7951_v43, %v7948_v23  ;;  %v11054_v52 = vpack.c.bf16 %v7951_v43, %v7951_v43  ;;  %v8444_v23 = vpop.permute.xlu1 %8443  ;;  %v7634_v25 = vrot.slane %v7620_v33, %v12357_v47  ;;  %v7724_v43 = vrot.slane %v7612_v41, %v12357_v47 }
0x1b34   : > { %v11502_v24 = vpop.f32.mrf.mxu1  ;;  %v8144_v36 = vrot.slane %v8116_v27, %v12357_v47  ;;  %v8168_v56 = vrot.slane %v11060_v20, %v12357_v47  ;;  %v7643_v6 = vrot.slane %v7627_v59, %v12357_v47  ;;  %v7684_v44 = vcombine.high %v7676_v14, %v7676_v14 }
0x1b35   : > { %v8015_v49 = vrot.slane %v8004_v34, %v12357_v47  ;;  %v8022_v57 = vrot.slane %v11054_v52, %v12357_v47  ;;  %v7635_v34 = vcombine.high %v7627_v59, %v7627_v59  ;;  %v7636_v52 = vcombine.high %v7634_v25, %v7634_v25 }
0x1b36   : > { %v8175_v32 = vrot.slane %v8168_v56, %v12357_v47  ;;  %v7725_v13 = vcombine.high %v7724_v43, %v7724_v43  ;;  %v7650_v37 = vrot.slane %v7634_v25, %v12357_v47  ;;  %v7665_v26 = vcombine.high %v7643_v6, %v7643_v6 }
0x1b37   : > { %v8023_v10 = vcombine.high %v8015_v49, %v8015_v49  ;;  %v8037_v19 = vrot.slane %v8022_v57, %v12357_v47  ;;  %v8030_v16 = vrot.slane %v8015_v49, %v12357_v47  ;;  %v7657_v9 = vrot.slane %v7635_v34, %v12357_v47 }
0x1b38   : > { %v7664_v24 = vrot.slane %v7636_v52, %v12357_v47  ;;  %v7739_v49 = vrot.slane %v7725_v13, %v12357_v47  ;;  %v7666_v21 = vcombine.high %v7650_v37, %v7650_v37 }
0x1b39   : > { %v8044_v55 = vrot.slane %v8023_v10, %v12357_v47  ;;  %v11056_v58 = vpack.i.b16 %v8069_v8, %v8037_v19  ;;  %v13399_v19 = vrot.slane %v7676_v14, %v12357_v47 }
0x1b3b   : > { %v8113_v31 = vcombine.low %v8030_v16, %v8044_v55  ;;  %v11061_v5 = vcombine.high %v8030_v16, %v8044_v55  ;;  %v8115_v4 = vcombine.low %v11056_v58, %v11057_v54 }
0x1b3d   : > { %v8123_v53 = vrot.slane %v8113_v31, %v12357_v47  ;;  %v8130_v29 = vrot.slane %v11061_v5, %v12357_v47  ;;  %v8137_v63 = vrot.slane %v8115_v4, %v12357_v47  ;;  %v7667_v31 = vcombine.high %v7657_v9, %v7657_v9 }
0x1b3e   : > { %v7668_v5 = vcombine.high %v7664_v24, %v7664_v24  ;;  %v7706_v4 = vrot.slane %v7684_v44, %v12357_v47 }
0x1b3f   : > { %v8145_v12 = vcombine.low %v8123_v53, %v8130_v29  ;;  %v8146_v39 = vcombine.low %v8137_v63, %v8144_v36 }
0x1b41   : > { %v8153_v40 = vrot.slane %v8145_v12, %v12357_v47  ;;  %v8160_v8 = vrot.slane %v8146_v39, %v12357_v47  ;;  %v7714_v39 = vcombine.high %v13399_v19, %v13399_v19 }
0x1b43   : > { %v8161_v28 = vcombine.low %v8153_v40, %v8160_v8 }
0x1b45   : > { %11511 = vmatprep.mubr.msk.bf16.mxu1 %vm2668_vm10, %v8161_v28 }
0x1b46   : > { %11512 = vmatmul.mubr.msk.bf16.vlgmr.msra.gmra.mxu1 %vm2668_vm10, %v8175_v32 }
0x1b47   : > { %11522 = vmatpush3.bf16.xpose.msra.mxu1 %v8451_v7  ;;  %11523 = vmatprep.mubr.msk.bf16.mxu1 %vm11867_vm9, %v11866_v48 }
0x1b48   : > { %11533 = vmatprep.subr.bf16.mxu1 %v11866_v48 }
0x1b4e   : > { %11524 = vmatmul.mubr.msk.bf16.vlgmr.msra.gmra.mxu1 %vm2668_vm10, %v8444_v23 }
0x1b4f   : > { %11535 = vmatprep.mubr.msk.bf16.mxu1 %vm11867_vm9, %v11866_v48  ;;  %v7669_v48 = vcombine.high %v7607_v11, %v7607_v11 }
0x1b51   : > { %v7683_v2 = vrot.slane %v7669_v48, %v12357_v47 }
0x1b53   : > { %v7685_v10 = vcombine.high %v7683_v2, %v7683_v2  ;;  %v13402_v1 = vrot.slane %v7683_v2, %v12357_v47 }
0x1b55   : > { %v7713_v12 = vrot.slane %v7685_v10, %v12357_v47  ;;  %v7715_v56 = vcombine.high %v13402_v1, %v13402_v1 }
0x1bb7   : > { %v8496_v17 = vpop.xlane.xlu0 %8495 }
0x1bb8   : > { %v8506_v3 = vsub.f32 %v13347_v60, %v8496_v17  ;;  %v7732_v60 = vrot.slane %v7724_v43, %v12357_v47 }
0x1bba   : > { %v8510_v38 = vmul.f32 1.442695, %v8506_v3 }
0x1bbc   : > { %11777 = vpow2.f32 %v8510_v38 }
0x1c06   : > { %v11513_v46 = vpop.f32.mrf.mxu1 }
0x1c07   : > { %v8340_v57 = vrot.slane %v11513_v46, %v12357_v47 }
0x1c08   : > { %v8219_v54 = vpop.f32.mrf.mxu1 }
0x1c09   : > { %v8341_v27 = vcombine.high %v8340_v57, %v8340_v57  ;;  %v8348_v16 = vrot.slane %v8340_v57, %v12357_v47  ;;  %v8236_v55 = vcombine.high %v8219_v54, %v8219_v54  ;;  %v8243_v58 = vrot.slane %v8219_v54, %v12357_v47 }
0x1c0a   : > { %v11514_v20 = vpop.f32.mrf.mxu1  ;;  %v7716_v57 = vcombine.high %v7706_v4, %v7706_v4 }
0x1c0b   : > { %v8355_v53 = vrot.slane %v8341_v27, %v12357_v47  ;;  %v13408_v29 = vadd.f32 %v8348_v16, %v7732_v60  ;;  %v8250_v63 = vrot.slane %v8236_v55, %v12357_v47  ;;  %v8251_v36 = vcombine.high %v8243_v58, %v8243_v58  ;;  %v11778_v27 = vpop.eup %11777 }
0x1c0c   : > { %v8259_v40 = vrot.slane %v8243_v58, %v12357_v47  ;;  %v8222_v8 = vpop.f32.mrf.mxu1 }
0x1c0d   : > { %v13417_v28 = vadd.f32 %v8355_v53, %v7739_v49  ;;  %v8252_v32 = vcombine.high %v8250_v63, %v8250_v63  ;;  %v8266_v7 = vrot.slane %v8250_v63, %v12357_v47  ;;  %v8273_v23 = vrot.slane %v8251_v36, %v12357_v47 }
0x1c0e   : > { %v8281_v42 = vcombine.high %v8259_v40, %v8259_v40  ;;  %v13421_v33 = vadd.f32 %v8259_v40, %v7643_v6  ;;  %v8285_v41 = vcombine.high %v8222_v8, %v8222_v8  ;;  %v8292_v11 = vrot.slane %v8222_v8, %v12357_v47  ;;  %v8487_v17 = vpop.f32.mrf.mxu1 }
0x1c0f   : > { %v8280_v59 = vrot.slane %v8252_v32, %v12357_v47  ;;  %v8282_v25 = vcombine.high %v8266_v7, %v8266_v7  ;;  %v8283_v43 = vcombine.high %v8273_v23, %v8273_v23  ;;  %v13425_v3 = vadd.f32 %v8273_v23, %v7657_v9 }
0x1c10   : > { %v13427_v48 = vadd.f32 %v8281_v42, %v7665_v26  ;;  %v13429_v34 = vadd.f32 %v8266_v7, %v7650_v37  ;;  %v8299_v52 = vrot.slane %v8285_v41, %v12357_v47  ;;  %v8300_v14 = vcombine.high %v8292_v11, %v8292_v11  ;;  %v11525_v13 = vpop.f32.mrf.mxu1 }
0x1c11   : > { %v8284_v38 = vcombine.high %v8280_v59, %v8280_v59  ;;  %v13432_v6 = vadd.f32 %v8283_v43, %v7667_v31  ;;  %v13434_v2 = vadd.f32 %v8280_v59, %v7664_v24  ;;  %v13436_v44 = vadd.f32 %v8282_v25, %v7666_v21 }
0x1c12   : > { %v8301_v46 = vcombine.high %v8299_v52, %v8299_v52  ;;  %v8308_v60 = vrot.slane %v8292_v11, %v12357_v47  ;;  %v8315_v9 = vrot.slane %v8299_v52, %v12357_v47  ;;  %v8322_v49 = vrot.slane %v8300_v14, %v12357_v47  ;;  %v8490_v37 = vpop.f32.mrf.mxu1 }
0x1c13   : > { %v13441_v26 = vadd.f32 %v8284_v38, %v7668_v5  ;;  %v8500_v10 = vsel %vm2766_vm11, %v8487_v17, -inf  ;;  %v8503_v54 = vsel %vm2770_vm12, %v8490_v37, -inf  ;;  %v7717_v31 = vcombine.high %v7713_v12, %v7713_v12 }
0x1c14   : > { %v8329_v24 = vrot.slane %v8301_v46, %v12357_v47  ;;  %v8330_v16 = vcombine.high %v8308_v60, %v8308_v60  ;;  %v8331_v55 = vcombine.high %v8315_v9, %v8315_v9  ;;  %v8332_v58 = vcombine.high %v8322_v49, %v8322_v49  ;;  %8501 = vmax.xlane.f32.xlu1 %v8500_v10  ;;  %v11526_v21 = vpop.f32.mrf.mxu1 }
0x1c15   : > { %v13447_v20 = vadd.f32 %v8308_v60, %v13399_v19  ;;  %v13449_v53 = vadd.f32 %v8322_v49, %v7706_v4  ;;  %v13452_v5 = vadd.f32 %v8315_v9, %v13402_v1  ;;  %8504 = vmax.xlane.f32.xlu0 %v8503_v54  ;;  %v8518_v7 = vsel %vm2766_vm11, %v11778_v27, 0.0 }
0x1c16   : > { %v8333_v63 = vcombine.high %v8329_v24, %v8329_v24  ;;  %v13454_v36 = vadd.f32 %v8330_v16, %v7714_v39  ;;  %v13456_v40 = vadd.f32 %v8332_v58, %v7716_v57  ;;  %v13458_v8 = vadd.f32 %v8329_v24, %v7713_v12 }
0x1c17   : > { %v13460_v32 = vadd.f32 %v8331_v55, %v7715_v56  ;;  %v8497_v19 = vsel %vm2770_vm12, %v13352_v15, -inf }
0x1c18   : > { %v13463_v23 = vadd.f32 %v8333_v63, %v7717_v31  ;;  %8519 = vadd.xlane.f32.xlu1 %v8518_v7  ;;  %v6670_v63 = vld [vmem:[%s12006_s28 + $0xc] sm:$0xf] }
0x1c19   : > { %8498 = vmax.xlane.f32.xlu0 %v8497_v19 }
0x1c9d   : > { %v8502_v1 = vpop.xlane.xlu1 %8501 }
0x1c9e   : > { %v8508_v4 = vsub.f32 %v8487_v17, %v8502_v1  ;;  %v8505_v42 = vpop.xlane.xlu0 %8504 }
0x1c9f   : > { %v8509_v41 = vsub.f32 %v8490_v37, %v8505_v42 }
0x1ca0   : > { %v8514_v39 = vmul.f32 1.442695, %v8508_v4 }
0x1ca1   : > { %v8516_v56 = vmul.f32 1.442695, %v8509_v41 }
0x1ca2   : > { %11779 = vpow2.f32 %v8514_v39  ;;  %v8499_v11 = vpop.xlane.xlu0 %8498 }
0x1ca3   : > { %v8507_v12 = vsub.f32 %v13352_v15, %v8499_v11  ;;  %v8520_v15 = vpop.xlane.xlu1 %8519 }
0x1ca5   : > { %v8512_v59 = vmul.f32 1.442695, %v8507_v12 }
0x1ca7   : > { %11781 = vpow2.f32 %v8512_v59 }
0x1ca8   : > { %11783 = vpow2.f32 %v8516_v56 }
0x1ca9   : > { %11785 = vrcp.f32 %v8520_v15 }
0x1caf   : > { %v11780_v25 = vpop.eup %11779 }
0x1cb0   : > { %v8524_v43 = vsel %vm2766_vm11, %v11780_v25, 0.0 }
0x1cb1   : > { %8525 = vadd.xlane.f32.xlu1 %v8524_v43 }
0x1cb4   : > { %v11782_v52 = vpop.eup %11781 }
0x1cb5   : > { %v8521_v14 = vsel %vm2770_vm12, %v11782_v52, 0.0  ;;  %v11784_v13 = vpop.eup %11783 }
0x1cb6   : > { %8522 = vadd.xlane.f32.xlu0 %v8521_v14  ;;  %v8527_v17 = vsel %vm2770_vm12, %v11784_v13, 0.0 }
0x1cba   : > { %8528 = vadd.xlane.f32.xlu0 %v8527_v17 }
0x1cc2   : > { %8589 = vrot.lane.b32.xlu1 %v13118_v35, %s11876_s29  ;;  %v11786_v35 = vpop.eup %11785 }
0x1cd0   : > { %8540 = vrot.lane.b32.xlu0 %v13104_v22, %s11876_s29  ;;  %v8534_v22 = vmul.f32 %v11786_v35, %v11778_v27 }
0x1d3a   : > { %v8526_v38 = vpop.xlane.xlu1 %8525 }
0x1d3e   : > { %v8590_v46 = vpop.permute.xlu1 %8589 }
0x1d3f   : > { %v8595_v60 = vand.u32 %v8590_v46, %v12466_v51  ;;  %v8523_v9 = vpop.xlane.xlu0 %8522 }
0x1d40   : > { %11787 = vrcp.f32 %v8523_v9 }
0x1d41   : > { %11534 = vmatpush3.bf16.msra.mxu1 %v8595_v60  ;;  %11789 = vrcp.f32 %v8526_v38 }
0x1d43   : > { %v8529_v49 = vpop.xlane.xlu0 %8528 }
0x1d44   : > { %11791 = vrcp.f32 %v8529_v49 }
0x1d47   : > { %v8541_v37 = vpop.permute.xlu0 %8540 }
0x1d48   : > { %v8546_v57 = vand.u32 %v8541_v37, %v12466_v51  ;;  %v8817_v51 = vsel %vm2819_vm13, %v6670_v63, 0 }
0x1d4a   : > { %11528 = vmatpush3.bf16.msra.mxu0 %v8546_v57 }
0x1d4b   : > { %11580 = vmatprep.subr.msk.bf16.mxu0 %vm2819_vm13, %v6670_v63 }
0x1d4d   : > { %v11788_v10 = vpop.eup %11787 }
0x1d4e   : > { %v8535_v54 = vmul.f32 %v11788_v10, %v11782_v52  ;;  %v11790_v24 = vpop.eup %11789 }
0x1d4f   : > { %v8536_v58 = vmul.f32 %v11790_v24, %v11780_v25 }
0x1d50   : > { %v8538_v16 = vpack.c.bf16 %v8535_v54, %v8534_v22 }
0x1d51   : > { %v11792_v55 = vpop.eup %11791 }
0x1d52   : > { %11530 = vmatmul.mubr.msk.bf16.vlgmr.msra.gmra.mxu0 %vm2766_vm11, %v8538_v16  ;;  %v8537_v21 = vmul.f32 %v11792_v55, %v11784_v13 }
0x1d53   : > { %11540 = vmatpush3.bf16.msra.mxu0 %v8817_v51 }
0x1d54   : > { %v8539_v31 = vpack.c.bf16 %v8537_v21, %v8536_v58 }
0x1d56   : > { %11536 = vmatmul.mubr.msk.bf16.vlgmr.msra.gmra.mxu1 %vm2766_vm11, %v8539_v31 }
0x1e12   : > { %v8582_v7 = vpop.f32.mrf.mxu0 }
0x1e14   : > { %v11531_v19 = vpop.f32.mrf.mxu0 }
0x1e16   : > { %v8585_v27 = vpop.f32.mrf.mxu0  ;;  %v8631_v1 = vpop.f32.mrf.mxu1 }
0x1e17   : > { %v8638_v4 = vpack.c.bf16 %v8585_v27, %v8582_v7  ;;  %v11068_v11 = vpack.c.bf16 %v8585_v27, %v8585_v27 }
0x1e18   : > { %v11532_v42 = vpop.f32.mrf.mxu0  ;;  %v11537_v39 = vpop.f32.mrf.mxu1 }
0x1e19   : > { %v8649_v41 = vrot.slane %v8638_v4, %v12357_v47  ;;  %v8656_v14 = vrot.slane %v11068_v11, %v12357_v47 }
0x1e1a   : > { %v8634_v12 = vpop.f32.mrf.mxu1 }
0x1e1b   : > { %v8657_v56 = vcombine.high %v8649_v41, %v8649_v41  ;;  %v8639_v59 = vpack.c.bf16 %v8634_v12, %v8631_v1  ;;  %v8664_v13 = vrot.slane %v8649_v41, %v12357_v47  ;;  %v11069_v17 = vpack.c.bf16 %v8634_v12, %v8634_v12 }
0x1e1c   : > { %v11538_v25 = vpop.f32.mrf.mxu1  ;;  %v8671_v37 = vrot.slane %v8656_v14, %v12357_v47 }
0x1e1d   : > { %v8678_v43 = vrot.slane %v8657_v56, %v12357_v47  ;;  %v8688_v52 = vrot.slane %v8639_v59, %v12357_v47  ;;  %v8695_v57 = vrot.slane %v11069_v17, %v12357_v47 }
0x1e1f   : > { %v8696_v15 = vcombine.high %v8688_v52, %v8688_v52  ;;  %v8703_v38 = vrot.slane %v8688_v52, %v12357_v47  ;;  %v8747_v46 = vcombine.low %v8664_v13, %v8678_v43  ;;  %v11075_v60 = vcombine.high %v8664_v13, %v8678_v43 }
0x1e20   : > { %v8710_v51 = vrot.slane %v8695_v57, %v12357_v47 }
0x1e21   : > { %v8717_v9 = vrot.slane %v8696_v15, %v12357_v47  ;;  %v8718_v49 = vcombine.high %v8703_v38, %v8703_v38  ;;  %v8730_v35 = vunpack.i.h.s16 %v8703_v38  ;;  %v8757_v24 = vrot.slane %v8747_v46, %v12357_v47 }
0x1e22   : > { %v11070_v16 = vpack.i.b16 %v8703_v38, %v8671_v37  ;;  %v8764_v58 = vrot.slane %v11075_v60, %v12357_v47 }
0x1e23   : > { %v8719_v10 = vcombine.high %v8717_v9, %v8717_v9  ;;  %v8732_v22 = vunpack.i.h.s16 %v8717_v9  ;;  %v8734_v54 = vunpack.i.h.s16 %v8718_v49  ;;  %v11071_v55 = vpack.i.b16 %v8717_v9, %v8730_v35 }
0x1e24   : > { %v8779_v42 = vcombine.low %v8757_v24, %v8764_v58 }
0x1e25   : > { %v8736_v21 = vunpack.i.h.s16 %v8719_v10  ;;  %v11072_v31 = vpack.i.b16 %v8718_v49, %v8732_v22  ;;  %v11073_v63 = vpack.i.b16 %v8719_v10, %v8734_v54  ;;  %v8749_v7 = vcombine.low %v11070_v16, %v11071_v55 }
0x1e26   : > { %v8787_v11 = vrot.slane %v8779_v42, %v12357_v47  ;;  %v9178_v49 = vrot.slane %v12825_v45, 3 }
0x1e27   : > { %v8750_v19 = vcombine.low %v11072_v31, %v11073_v63  ;;  %v11074_v27 = vpack.i.b16 %v8710_v51, %v8736_v21  ;;  %v8771_v1 = vrot.slane %v8749_v7, %v12357_v47 }
0x1e29   : > { %v8778_v4 = vrot.slane %v8750_v19, %v12357_v47  ;;  %v8802_v41 = vrot.slane %v11074_v27, %v12357_v47 }
0x1e2b   : > { %v8780_v39 = vcombine.low %v8771_v1, %v8778_v4  ;;  %v8809_v59 = vrot.slane %v8802_v41, %v12357_v47 }
0x1e2d   : > { %v8794_v12 = vrot.slane %v8780_v39, %v12357_v47 }
0x1e2f   : > { %v8795_v56 = vcombine.low %v8787_v11, %v8794_v12 }
0x1e31   : > { %11541 = vmatprep.mubr.msk.bf16.mxu0 %vm2668_vm10, %v8795_v56 }
0x1e32   : > { %11542 = vmatmul.mubr.msk.bf16.vlgmr.msra.gmra.mxu0 %vm2668_vm10, %v8809_v59 }
0x1ef2   : > { %v11543_v25 = vpop.f32.mrf.mxu0 }
0x1ef3   : > { %v8974_v43 = vrot.slane %v11543_v25, %v12357_v47 }
0x1ef4   : > { %v8853_v52 = vpop.f32.mrf.mxu0 }
0x1ef5   : > { %v8975_v14 = vcombine.high %v8974_v43, %v8974_v43  ;;  %v8982_v13 = vrot.slane %v8974_v43, %v12357_v47  ;;  %v8870_v17 = vcombine.high %v8853_v52, %v8853_v52  ;;  %v8877_v15 = vrot.slane %v8853_v52, %v12357_v47 }
0x1ef6   : > { %v11544_v38 = vpop.f32.mrf.mxu0 }
0x1ef7   : > { %v8989_v46 = vrot.slane %v8975_v14, %v12357_v47  ;;  %v8884_v60 = vrot.slane %v8870_v17, %v12357_v47  ;;  %v8885_v9 = vcombine.high %v8877_v15, %v8877_v15  ;;  %v13509_v37 = vadd.f32 %v8982_v13, %v13408_v29 }
0x1ef8   : > { %v8893_v57 = vrot.slane %v8877_v15, %v12357_v47  ;;  %v8856_v35 = vpop.f32.mrf.mxu0 }
0x1ef9   : > { %v9025_v10 = vadd.f32 %v8989_v46, %v13417_v28  ;;  %v8886_v22 = vcombine.high %v8884_v60, %v8884_v60  ;;  %v8900_v54 = vrot.slane %v8884_v60, %v12357_v47  ;;  %v8907_v24 = vrot.slane %v8885_v9, %v12357_v47 }
0x1efa   : > { %v8915_v16 = vcombine.high %v8893_v57, %v8893_v57  ;;  %v9008_v55 = vadd.f32 %v8893_v57, %v13421_v33  ;;  %v8919_v58 = vcombine.high %v8856_v35, %v8856_v35  ;;  %v8926_v21 = vrot.slane %v8856_v35, %v12357_v47 }
0x1efb   : > { %v9162_v31 = vrot.slane %v9025_v10, %v12357_v47  ;;  %v8914_v29 = vrot.slane %v8886_v22, %v12357_v47  ;;  %v8916_v63 = vcombine.high %v8900_v54, %v8900_v54  ;;  %v8917_v51 = vcombine.high %v8907_v24, %v8907_v24 }
0x1efc   : > { %v9009_v7 = vadd.f32 %v8907_v24, %v13425_v3  ;;  %v9010_v28 = vadd.f32 %v8915_v16, %v13427_v48  ;;  %v9012_v19 = vadd.f32 %v8900_v54, %v13429_v34  ;;  %v8933_v27 = vrot.slane %v8919_v58, %v12357_v47 }
0x1efd   : > { %v8918_v1 = vcombine.high %v8914_v29, %v8914_v29  ;;  %v9011_v33 = vadd.f32 %v8917_v51, %v13432_v6  ;;  %v9013_v4 = vadd.f32 %v8914_v29, %v13434_v2  ;;  %v9014_v42 = vadd.f32 %v8916_v63, %v13436_v44 }
0x1efe   : > { %v9044_v39 = vcombine.low %v9008_v55, %v9009_v7  ;;  %v8934_v41 = vcombine.high %v8926_v21, %v8926_v21  ;;  %v8935_v11 = vcombine.high %v8933_v27, %v8933_v27  ;;  %v8942_v12 = vrot.slane %v8926_v21, %v12357_v47 }
0x1eff   : > { %v9015_v3 = vadd.f32 %v8918_v1, %v13441_v26  ;;  %v9045_v56 = vcombine.low %v9010_v28, %v9011_v33  ;;  %v9046_v48 = vcombine.low %v9012_v19, %v9013_v4  ;;  %v8949_v34 = vrot.slane %v8933_v27, %v12357_v47 }
0x1f00   : > { %v9054_v59 = vrot.slane %v9044_v39, %v12357_v47  ;;  %v8956_v25 = vrot.slane %v8934_v41, %v12357_v47  ;;  %v8963_v6 = vrot.slane %v8935_v11, %v12357_v47  ;;  %v8964_v2 = vcombine.high %v8942_v12, %v8942_v12 }
0x1f01   : > { %v9047_v43 = vcombine.low %v9014_v42, %v9015_v3  ;;  %v9061_v44 = vrot.slane %v9045_v56, %v12357_v47  ;;  %v9068_v52 = vrot.slane %v9046_v48, %v12357_v47  ;;  %v8965_v14 = vcombine.high %v8949_v34, %v8949_v34 }
0x1f02   : > { %v8966_v13 = vcombine.high %v8956_v25, %v8956_v25  ;;  %v8967_v17 = vcombine.high %v8963_v6, %v8963_v6  ;;  %v9016_v26 = vadd.f32 %v8942_v12, %v13447_v20  ;;  %v9017_v15 = vadd.f32 %v8956_v25, %v13449_v53 }
0x1f03   : > { %v9075_v38 = vrot.slane %v9047_v43, %v12357_v47  ;;  %v9076_v46 = vcombine.low %v9054_v59, %v9061_v44  ;;  %v9018_v60 = vadd.f32 %v8964_v2, %v13454_v36  ;;  %v9020_v9 = vadd.f32 %v8949_v34, %v13452_v5 }
0x1f04   : > { %v9019_v57 = vadd.f32 %v8966_v13, %v13456_v40  ;;  %v9021_v35 = vadd.f32 %v8963_v6, %v13458_v8  ;;  %v9022_v10 = vadd.f32 %v8965_v14, %v13460_v32  ;;  %v9023_v22 = vadd.f32 %v8967_v17, %v13463_v23 }
0x1f05   : > { %v9077_v54 = vcombine.low %v9068_v52, %v9075_v38  ;;  %v9099_v20 = vrot.slane %v9016_v26, %v12357_v47  ;;  %v9107_v24 = vcombine.low %v9017_v15, %v9018_v60  ;;  %v9169_v53 = vrot.slane %v9162_v31, %v12357_v47  ;;  %v11631_v60 = vld [vmem:[%s12011_s23 + $0x8] sm:$0xff]  }
0x1f06   : > { %v9182_v16 = vrot.slane %v9178_v49, %v12341_v30  ;;  %v9108_v55 = vcombine.low %v9019_v57, %v9020_v9  ;;  %v9109_v36 = vcombine.low %v9021_v35, %v9022_v10  ;;  %v9110_v5 = vcombine.low %v9023_v22, %v13509_v37  ;;  %v11632_v9 = vld [vmem:[%s12011_s23] sm:$0xff]   ;;  %11545 = vmatprep.subr.bf16.mxu1 %v11631_v60 }
0x1f07   : > { %v9106_v40 = vrot.slane %v9099_v20, %v12357_v47  ;;  %v9177_v8 = vadd.f32 %v9169_v53, %v12885_v62  ;;  %v9084_v32 = vrot.slane %v9076_v46, %v12357_v47  ;;  %v9091_v23 = vrot.slane %v9077_v54, %v12357_v47  ;;  %v13585_v46 = vld [vmem:[%s11991_s18] sm:$0x3f]  ;;  %11546 = vmatpush3.bf16.msra.mxu1 %v11631_v60 }
0x1f08   : > { %v9117_v58 = vrot.slane %v9107_v24, %v12357_v47  ;;  %v9124_v21 = vrot.slane %v9108_v55, %v12357_v47  ;;  %v9131_v31 = vrot.slane %v9109_v36, %v12357_v47  ;;  %v9138_v49 = vrot.slane %v9110_v5, %v12357_v47  ;;  %11547 = vmatprep.subr.bf16.mxu1 %v11632_v9 }
0x1f09   : > { %v13555_v29 = vadd.f32 %v9182_v16, %v9177_v8  ;;  %v9175_v37 = vadd.f32 %v9106_v40, %v12890_v50  ;;  %v9092_v63 = vcombine.low %v9084_v32, %v9091_v23 }
0x1f0a   : > { %v9139_v51 = vcombine.low %v9117_v58, %v9124_v21  ;;  %v9140_v7 = vcombine.low %v9131_v31, %v9138_v49  ;;  %v9252_v58 = vrot.slane %v12825_v45, 1 }
0x1f0b   : > { %v9197_v62 = vsel %vm1926_vm8, %v13555_v29, 0.0  ;;  %v13560_v28 = vadd.f32 %v9182_v16, %v9175_v37  ;;  %v9174_v19 = vadd.f32 %v9092_v63, %v12913_v18  ;;  %11548 = vmatpush3.bf16.msra.mxu1 %v11632_v9 }
0x1f0c   : > { %9198 = vadd.xlane.f32.xlu0 %v9197_v62  ;;  %v9147_v27 = vrot.slane %v9139_v51, %v12357_v47  ;;  %v9154_v1 = vrot.slane %v9140_v7, %v12357_v47  ;;  %v9256_v51 = vrot.slane %v9252_v58, %v12341_v30 }
0x1f0d   : > { %v9191_v33 = vsel %vm1926_vm8, %v13560_v28, 0.0  ;;  %v13567_v4 = vadd.f32 %v9182_v16, %v9174_v19 }
0x1f0e   : > { %v9155_v50 = vcombine.low %v9147_v27, %v9154_v1 }
0x1f0f   : > { %v9188_v18 = vsel %vm1922_vm7, %v13567_v4, 0.0 }
0x1f10   : > { %9192 = vadd.xlane.f32.xlu0 %v9191_v33  ;;  %v9176_v42 = vadd.f32 %v9155_v50, %v12908_v61 }
0x1f12   : > { %v13570_v39 = vadd.f32 %v9182_v16, %v9176_v42 }
0x1f14   : > { %v9194_v41 = vsel %vm1922_vm7, %v13570_v39, 0.0 }
0x1f15   : > { %9195 = vadd.xlane.f32.xlu1 %v9194_v41 }
0x1f19   : > { %9189 = vadd.xlane.f32.xlu1 %v9188_v18 }
0x1f95   : > { %v9199_v11 = vpop.xlane.xlu0 %9198 }
0x1f96   : > { %v9203_v12 = vmul.f32 0.03125, %v9199_v11 }
0x1f98   : > { %v9207_v3 = vsub.f32 %v13555_v29, %v9203_v12 }
0x1f99   : > { %v9193_v56 = vpop.xlane.xlu0 %9192 }
0x1f9a   : > { %v9201_v48 = vmul.f32 0.03125, %v9193_v56  ;;  %v9211_v34 = vmul.f32 %v9207_v3, %v9207_v3 }
0x1f9c   : > { %v9205_v59 = vsub.f32 %v13560_v28, %v9201_v48  ;;  %v9221_v61 = vsel %vm1926_vm8, %v9211_v34, 0.0 }
0x1f9d   : > { %9222 = vadd.xlane.f32.xlu0 %v9221_v61 }
0x1f9e   : > { %v9209_v25 = vmul.f32 %v9205_v59, %v9205_v59  ;;  %v9196_v6 = vpop.xlane.xlu1 %9195 }
0x1f9f   : > { %v9202_v43 = vmul.f32 0.03125, %v9196_v6 }
0x1fa0   : > { %v9215_v2 = vsel %vm1926_vm8, %v9209_v25, 0.0 }
0x1fa1   : > { %9216 = vadd.xlane.f32.xlu0 %v9215_v2  ;;  %v9206_v14 = vsub.f32 %v13570_v39, %v9202_v43 }
0x1fa2   : > { %v9190_v44 = vpop.xlane.xlu1 %9189 }
0x1fa3   : > { %v9200_v52 = vmul.f32 0.03125, %v9190_v44  ;;  %v9210_v15 = vmul.f32 %v9206_v14, %v9206_v14 }
0x1fa5   : > { %v9204_v13 = vsub.f32 %v13567_v4, %v9200_v52  ;;  %v9218_v38 = vsel %vm1922_vm7, %v9210_v15, 0.0 }
0x1fa7   : > { %v9208_v17 = vmul.f32 %v9204_v13, %v9204_v13 }
0x1fa9   : > { %v9212_v26 = vsel %vm1922_vm7, %v9208_v17, 0.0 }
0x1faa   : > { %9213 = vadd.xlane.f32.xlu1 %v9212_v26 }
0x1fae   : > { %9219 = vadd.xlane.f32.xlu1 %v9218_v38 }
0x1fbf   : > { %9240 = vrot.lane.b32.xlu1 %v13585_v46, %s11868_s27 }
0x2026   : > { %v9223_v57 = vpop.xlane.xlu0 %9222 }
0x2027   : > { %v9227_v22 = vmul.f32 0.03125, %v9223_v57 }
0x2029   : > { %v9231_v20 = vadd.f32 1e-05, %v9227_v22 }
0x202a   : > { %v9217_v35 = vpop.xlane.xlu0 %9216 }
0x202b   : > { %v9225_v10 = vmul.f32 0.03125, %v9217_v35 }
0x202d   : > { %v9229_v54 = vadd.f32 1e-05, %v9225_v10 }
0x202f   : > { %11793 = vrsqrt.f32 %v9229_v54 }
0x2030   : > { %11795 = vrsqrt.f32 %v9231_v20 }
0x2033   : > { %v9214_v24 = vpop.xlane.xlu1 %9213 }
0x2034   : > { %v9224_v53 = vmul.f32 0.03125, %v9214_v24 }
0x2036   : > { %v9228_v16 = vadd.f32 1e-05, %v9224_v53 }
0x2037   : > { %v9220_v55 = vpop.xlane.xlu1 %9219 }
0x2038   : > { %11797 = vrsqrt.f32 %v9228_v16  ;;  %v9226_v36 = vmul.f32 0.03125, %v9220_v55 }
0x203a   : > { %v9230_v5 = vadd.f32 1e-05, %v9226_v36 }
0x203b   : > { %v9241_v40 = vpop.permute.xlu1 %9240 }
0x203c   : > { %11799 = vrsqrt.f32 %v9230_v5  ;;  %v9242_v8 = vrot.slane %v9241_v40, 1  ;;  %v11794_v32 = vpop.eup %11793 }
0x203d   : > { %v9237_v21 = vmul.f32 %v11794_v32, %v9205_v59  ;;  %v11796_v31 = vpop.eup %11795 }
0x203e   : > { %v9246_v23 = vrot.slane %v9242_v8, %v12341_v30  ;;  %v9239_v7 = vmul.f32 %v11796_v31, %v9207_v3 }
0x2040   : > { %v9249_v37 = vmul.f32 %v9246_v23, %v9237_v21  ;;  %v9251_v33 = vmul.f32 %v9246_v23, %v9239_v7  ;;  %v11637_v7 = vld [vmem:[%s12016_s21 + $0x18] sm:$0xff]  }
0x2042   : > { %v9259_v27 = vadd.f32 %v9256_v51, %v9249_v37  ;;  %v9261_v12 = vadd.f32 %v9256_v51, %v9251_v33  ;;  %v11634_v37 = vld [vmem:[%s12016_s21 + $0x30] sm:$0xff]  }
0x2044   : > { %v11078_v18 = vpack.c.bf16 %v9259_v27, %v9259_v27  ;;  %v11079_v61 = vpack.c.bf16 %v9261_v12, %v9261_v12 }
0x2045   : > { %v11798_v49 = vpop.eup %11797 }
0x2046   : > { %v9236_v63 = vmul.f32 %v11798_v49, %v9204_v13  ;;  %v9289_v34 = vrot.slane %v11078_v18, %v12357_v47  ;;  %v9328_v26 = vrot.slane %v11079_v61, %v12357_v47  ;;  %v11633_v49 = vld [vmem:[%s12016_s21 + $0x38] sm:$0xff]  }
0x2047   : > { %11553 = vmatprep.subr.bf16.mxu0 %v11633_v49 }
0x2048   : > { %v9248_v62 = vmul.f32 %v9246_v23, %v9236_v63  ;;  %v9304_v43 = vrot.slane %v9289_v34, %v12357_v47  ;;  %v9343_v53 = vrot.slane %v9328_v26, %v12357_v47  ;;  %11554 = vmatpush3.bf16.msra.mxu0 %v11633_v49  ;;  %v11635_v63 = vld [vmem:[%s12016_s21 + $0x28] sm:$0xff]  }
0x2049   : > { %v11800_v19 = vpop.eup %11799  ;;  %11555 = vmatprep.subr.bf16.mxu0 %v11634_v37 }
0x204a   : > { %v9238_v1 = vmul.f32 %v11800_v19, %v9206_v14  ;;  %v9258_v50 = vadd.f32 %v9256_v51, %v9248_v62  ;;  %v9268_v62 = vrot.slane %v13585_v46, 4  ;;  %v11638_v19 = vld [vmem:[%s12016_s21 + $0x10] sm:$0xff]  }
0x204c   : > { %v9250_v42 = vmul.f32 %v9246_v23, %v9238_v1  ;;  %v9262_v41 = vpack.c.bf16 %v9259_v27, %v9258_v50  ;;  %11556 = vmatpush3.bf16.msra.mxu0 %v11634_v37  ;;  %v9272_v27 = vrot.slane %v9268_v62, %v12341_v30  ;;  %v11639_v1 = vld [vmem:[%s12016_s21 + $0x8] sm:$0xff]   ;;  %v11640_v50 = vld [vmem:[%s12016_s21] sm:$0xff]  }
0x204d   : > { %11557 = vmatprep.subr.bf16.mxu0 %v11635_v63 }
0x204e   : > { %v9260_v11 = vadd.f32 %v9256_v51, %v9250_v42  ;;  %v9282_v45 = vrot.slane %v9262_v41, %v12357_v47  ;;  %v11636_v51 = vld [vmem:[%s12016_s21 + $0x20] sm:$0xff]   ;;  %v9371_v33 = vcombine.high %v9272_v27, %v9272_v27  ;;  %v9378_v42 = vrot.slane %v9272_v27, %v12357_v47 }
0x2050   : > { %v9263_v56 = vpack.c.bf16 %v9261_v12, %v9260_v11  ;;  %v9290_v48 = vcombine.high %v9282_v45, %v9282_v45  ;;  %v9297_v25 = vrot.slane %v9282_v45, %v12357_v47  ;;  %11558 = vmatpush3.bf16.msra.mxu0 %v11635_v63  ;;  %v9385_v41 = vrot.slane %v9371_v33, %v12357_v47 }
0x2051   : > { %11559 = vmatprep.subr.bf16.mxu0 %v11636_v51  ;;  %v9386_v11 = vcombine.high %v9378_v42, %v9378_v42  ;;  %v9394_v12 = vrot.slane %v9378_v42, %v12357_v47 }
0x2052   : > { %v9321_v59 = vrot.slane %v9263_v56, %v12357_v47  ;;  %v9311_v3 = vrot.slane %v9290_v48, %v12357_v47  ;;  %v9387_v18 = vcombine.high %v9385_v41, %v9385_v41  ;;  %v9401_v56 = vrot.slane %v9385_v41, %v12357_v47 }
0x2053   : > { %v9408_v48 = vrot.slane %v9386_v11, %v12357_v47 }
0x2054   : > { %v9329_v6 = vcombine.high %v9321_v59, %v9321_v59  ;;  %v9336_v2 = vrot.slane %v9321_v59, %v12357_v47  ;;  %v9429_v44 = vcombine.low %v9297_v25, %v9311_v3  ;;  %v11085_v52 = vcombine.high %v9297_v25, %v9311_v3  ;;  %11560 = vmatpush3.bf16.msra.mxu0 %v11636_v51 }
0x2055   : > { %11561 = vmatprep.subr.bf16.mxu0 %v11637_v7  ;;  %v9415_v45 = vrot.slane %v9387_v18, %v12357_v47  ;;  %v9504_v34 = vcombine.low %v9394_v12, %v9408_v48  ;;  %v11088_v59 = vcombine.high %v9394_v12, %v9408_v48 }
0x2056   : > { %v9350_v14 = vrot.slane %v9329_v6, %v12357_v47  ;;  %v9351_v13 = vcombine.high %v9336_v2, %v9336_v2  ;;  %v9363_v17 = vunpack.i.h.s16 %v9336_v2  ;;  %v11080_v15 = vpack.i.b16 %v9336_v2, %v9304_v43 }
0x2057   : > { %v9439_v35 = vrot.slane %v9429_v44, %v12357_v47  ;;  %v9446_v10 = vrot.slane %v11085_v52, %v12357_v47  ;;  %v9506_v3 = vcombine.low %v9401_v56, %v9415_v45  ;;  %v11089_v61 = vcombine.high %v9401_v56, %v9415_v45 }
0x2058   : > { %v9352_v38 = vcombine.high %v9350_v14, %v9350_v14  ;;  %v9365_v60 = vunpack.i.h.s16 %v9350_v14  ;;  %v9367_v9 = vunpack.i.h.s16 %v9351_v13  ;;  %v11081_v57 = vpack.i.b16 %v9350_v14, %v9363_v17  ;;  %11562 = vmatpush3.bf16.msra.mxu0 %v11637_v7 }
0x2059   : > { %v9461_v40 = vcombine.low %v9439_v35, %v9446_v10  ;;  %11563 = vmatprep.subr.bf16.mxu0 %v11638_v19  ;;  %v9419_v25 = vcombine.high %v9415_v45, %v9415_v45  ;;  %v9514_v6 = vrot.slane %v9504_v34, %v12357_v47  ;;  %v9521_v2 = vrot.slane %v11088_v59, %v12357_v47 }
0x205a   : > { %v11082_v22 = vpack.i.b16 %v9351_v13, %v9365_v60  ;;  %v11083_v54 = vpack.i.b16 %v9352_v38, %v9367_v9  ;;  %v9431_v20 = vcombine.low %v11080_v15, %v11081_v57  ;;  %v9369_v24 = vunpack.i.h.s16 %v9352_v38 }
0x205b   : > { %v9469_v23 = vrot.slane %v9461_v40, %v12357_v47  ;;  %v9528_v43 = vrot.slane %v9506_v3, %v12357_v47  ;;  %v9535_v44 = vrot.slane %v11089_v61, %v12357_v47  ;;  %v9416_v52 = vcombine.high %v9394_v12, %v9394_v12 }
0x205c   : > { %v9432_v16 = vcombine.low %v11082_v22, %v11083_v54  ;;  %v11084_v55 = vpack.i.b16 %v9343_v53, %v9369_v24  ;;  %v9453_v36 = vrot.slane %v9431_v20, %v12357_v47  ;;  %11564 = vmatpush3.bf16.msra.mxu0 %v11638_v19  ;;  %v9602_v14 = vcombine.low %v9419_v25, %v9394_v12 }
0x205d   : > { %11565 = vmatprep.subr.bf16.mxu0 %v11639_v1  ;;  %v9417_v13 = vcombine.high %v9401_v56, %v9401_v56  ;;  %v9418_v17 = vcombine.high %v9408_v48, %v9408_v48  ;;  %v9536_v26 = vcombine.low %v9514_v6, %v9521_v2  ;;  %v9537_v15 = vcombine.low %v9528_v43, %v9535_v44 }
0x205e   : > { %v9460_v5 = vrot.slane %v9432_v16, %v12357_v47  ;;  %v9484_v32 = vrot.slane %v11084_v55, %v12357_v47  ;;  %v9553_v38 = vcombine.low %v9394_v12, %v9394_v12  ;;  %v9554_v60 = vcombine.low %v9408_v48, %v9416_v52 }
0x205f   : > { %v9609_v9 = vrot.slane %v9602_v14, %v12357_v47  ;;  %v9555_v57 = vcombine.low %v9418_v17, %v9401_v56  ;;  %v9556_v35 = vcombine.low %v9415_v45, %v9417_v13  ;;  %v9544_v10 = vrot.slane %v9536_v26, %v12357_v47 }
0x2060   : > { %v9462_v8 = vcombine.low %v9453_v36, %v9460_v5  ;;  %v9491_v31 = vrot.slane %v9484_v32, %v12357_v47  ;;  %11566 = vmatpush3.bf16.msra.mxu0 %v11639_v1  ;;  %v9551_v22 = vrot.slane %v9537_v15, %v12357_v47  ;;  %v9563_v54 = vrot.slane %v9553_v38, %v12357_v47 }
0x2061   : > { %11567 = vmatprep.subr.bf16.mxu0 %v11640_v50  ;;  %v9570_v20 = vrot.slane %v9554_v60, %v12357_v47  ;;  %v9616_v24 = vrot.slane %v9609_v9, %v12357_v47  ;;  %v9577_v53 = vrot.slane %v9555_v57, %v12357_v47  ;;  %v9584_v16 = vrot.slane %v9556_v35, %v12357_v47 }
0x2062   : > { %v9476_v58 = vrot.slane %v9462_v8, %v12357_v47  ;;  %v9552_v55 = vcombine.low %v9544_v10, %v9551_v22 }
0x2063   : > { %v9585_v5 = vcombine.low %v9563_v54, %v9570_v20  ;;  %v9586_v8 = vcombine.low %v9577_v53, %v9584_v16 }
0x2064   : > { %v9477_v21 = vcombine.low %v9469_v23, %v9476_v58  ;;  %11568 = vmatpush3.bf16.msra.mxu0 %v11640_v50 }
0x2065   : > { %v9600_v63 = vrot.slane %v9586_v8, %v12357_v47 }
0x2066   : > { %11549 = vmatprep.mubr.msk.bf16.mxu1 %vm1922_vm7, %v9477_v21  ;;  %v9593_v21 = vrot.slane %v9585_v5, %v12357_v47 }
0x2067   : > { %11550 = vmatmul.mubr.msk.bf16.vlgmr.msra.gmra.mxu1 %vm1922_vm7, %v9491_v31 }
0x2068   : > { %v9601_v33 = vcombine.low %v9593_v21, %v9600_v63 }
0x2127   : > { %v11551_v36 = vpop.f32.mrf.mxu1 }
0x2128   : > { %v9669_v40 = vadd.f32 %v11551_v36, %v9616_v24 }
0x2129   : > { %v9660_v32 = vpop.f32.mrf.mxu1 }
0x212a   : > { %v9661_v23 = vadd.f32 %v9660_v32, %v9552_v55  ;;  %v9781_v31 = vrot.slane %v9669_v40, %v12357_v47 }
0x212b   : > { %v11552_v58 = vpop.f32.mrf.mxu1 }
0x212c   : > { %v9677_v49 = vcombine.high %v9661_v23, %v9661_v23  ;;  %v9684_v37 = vrot.slane %v9661_v23, %v12357_v47  ;;  %v9782_v19 = vcombine.high %v9781_v31, %v9781_v31  ;;  %v13663_v11 = vrot.slane %v9781_v31, %v12357_v47 }
0x212d   : > { %v9663_v18 = vpop.f32.mrf.mxu1 }
0x212e   : > { %v9691_v51 = vrot.slane %v9677_v49, %v12357_v47  ;;  %v9692_v7 = vcombine.high %v9684_v37, %v9684_v37  ;;  %v13648_v62 = vrot.slane %v9684_v37, %v12357_v47  ;;  %v13683_v3 = vrot.slane %v9782_v19, %v12357_v47 }
0x212f   : > { %v9664_v6 = vadd.f32 %v9663_v18, %v9601_v33  ;;  %v9831_v60 = vmul.f32 %v13663_v11, %v13663_v11 }
0x2130   : > { %v9693_v27 = vcombine.high %v9691_v51, %v9691_v51  ;;  %v13651_v1 = vrot.slane %v9691_v51, %v12357_v47  ;;  %v13654_v50 = vrot.slane %v9692_v7, %v12357_v47  ;;  %v13658_v42 = vcombine.high %v13648_v62, %v13648_v62 }
0x2131   : > { %v9815_v41 = vmul.f32 %v13648_v62, %v13648_v62  ;;  %v9832_v9 = vmul.f32 %v13683_v3, %v13683_v3  ;;  %v9726_v20 = vcombine.high %v9664_v6, %v9664_v6  ;;  %v9733_v55 = vrot.slane %v9664_v6, %v12357_v47 }
0x2132   : > { %v13666_v12 = vrot.slane %v9693_v27, %v12357_v47  ;;  %v13670_v45 = vcombine.high %v13651_v1, %v13651_v1  ;;  %v13674_v56 = vcombine.high %v13654_v50, %v13654_v50  ;;  %v9816_v48 = vmul.f32 %v13654_v50, %v13654_v50 }
0x2133   : > { %v9817_v34 = vmul.f32 %v13658_v42, %v13658_v42  ;;  %v9819_v59 = vmul.f32 %v13651_v1, %v13651_v1  ;;  %v9833_v44 = vmul.f32 %v9815_v41, %v13648_v62  ;;  %v9849_v32 = vmul.f32 %v9831_v60, %v13663_v11 }
0x2134   : > { %v13687_v61 = vcombine.high %v13666_v12, %v13666_v12  ;;  %v9820_v25 = vmul.f32 %v13666_v12, %v13666_v12  ;;  %v9818_v2 = vmul.f32 %v13674_v56, %v13674_v56  ;;  %v9821_v43 = vmul.f32 %v13670_v45, %v13670_v45 }
0x2135   : > { %v9834_v52 = vmul.f32 %v9816_v48, %v13654_v50  ;;  %v9835_v13 = vmul.f32 %v9817_v34, %v13658_v42  ;;  %v9837_v26 = vmul.f32 %v9819_v59, %v13651_v1  ;;  %v9851_v35 = vmul.f32 0.044715, %v9833_v44 }
0x2136   : > { %v9822_v14 = vmul.f32 %v13687_v61, %v13687_v61  ;;  %v9836_v17 = vmul.f32 %v9818_v2, %v13674_v56  ;;  %v9838_v15 = vmul.f32 %v9820_v25, %v13666_v12  ;;  %v9839_v38 = vmul.f32 %v9821_v43, %v13670_v45 }
0x2137   : > { %v9852_v10 = vmul.f32 0.044715, %v9834_v52  ;;  %v9853_v22 = vmul.f32 0.044715, %v9835_v13  ;;  %v9855_v24 = vmul.f32 0.044715, %v9837_v26  ;;  %v9869_v5 = vadd.f32 %v9851_v35, %v13648_v62 }
0x2138   : > { %v9840_v57 = vmul.f32 %v9822_v14, %v13687_v61  ;;  %v9854_v54 = vmul.f32 0.044715, %v9836_v17  ;;  %v9856_v53 = vmul.f32 0.044715, %v9838_v15  ;;  %v9857_v16 = vmul.f32 0.044715, %v9839_v38 }
0x2139   : > { %v9870_v40 = vadd.f32 %v9852_v10, %v13654_v50  ;;  %v9871_v8 = vadd.f32 %v9853_v22, %v13658_v42  ;;  %v9873_v58 = vadd.f32 %v9855_v24, %v13651_v1  ;;  %v9887_v49 = vmul.f32 0.7978846, %v9869_v5 }
0x213a   : > { %v9858_v36 = vmul.f32 0.044715, %v9840_v57  ;;  %v9872_v23 = vadd.f32 %v9854_v54, %v13674_v56  ;;  %v9874_v21 = vadd.f32 %v9856_v53, %v13666_v12  ;;  %v9875_v31 = vadd.f32 %v9857_v16, %v13670_v45 }
0x213b   : > { %v9888_v37 = vmul.f32 0.7978846, %v9870_v40  ;;  %v9889_v63 = vmul.f32 0.7978846, %v9871_v8  ;;  %v9850_v51 = vmul.f32 %v9832_v9, %v13683_v3  ;;  %v9740_v27 = vrot.slane %v9726_v20, %v12357_v47 }
0x213c   : > { %v9876_v7 = vadd.f32 %v9858_v36, %v13687_v61  ;;  %v9890_v19 = vmul.f32 0.7978846, %v9872_v23  ;;  %v9891_v33 = vmul.f32 0.7978846, %v9873_v58  ;;  %v9892_v41 = vmul.f32 0.7978846, %v9874_v21 }
0x213d   : > { %11801 = vtanh.f32 %v9887_v49  ;;  %v9741_v18 = vcombine.high %v9733_v55, %v9733_v55  ;;  %v9742_v48 = vcombine.high %v9740_v27, %v9740_v27  ;;  %v13722_v34 = vrot.slane %v9733_v55, %v12357_v47 }
0x213e   : > { %11803 = vtanh.f32 %v9888_v37  ;;  %v13725_v59 = vrot.slane %v9740_v27, %v12357_v47  ;;  %v9867_v25 = vmul.f32 0.044715, %v9849_v32  ;;  %v9893_v6 = vmul.f32 0.7978846, %v9875_v31 }
0x213f   : > { %11805 = vtanh.f32 %v9889_v63  ;;  %v13728_v2 = vrot.slane %v9741_v18, %v12357_v47  ;;  %v9894_v43 = vmul.f32 0.7978846, %v9876_v7  ;;  %v13731_v44 = vrot.slane %v9742_v48, %v12357_v47 }
0x2140   : > { %11807 = vtanh.f32 %v9890_v19  ;;  %v13735_v52 = vcombine.high %v13722_v34, %v13722_v34  ;;  %v9823_v13 = vmul.f32 %v13722_v34, %v13722_v34  ;;  %v9868_v26 = vmul.f32 0.044715, %v9850_v51 }
0x2141   : > { %11809 = vtanh.f32 %v9891_v33  ;;  %v13739_v14 = vcombine.high %v13728_v2, %v13728_v2  ;;  %v9824_v17 = vmul.f32 %v13728_v2, %v13728_v2  ;;  %v13747_v15 = vcombine.high %v13725_v59, %v13725_v59 }
0x2142   : > { %11811 = vtanh.f32 %v9892_v41  ;;  %v9825_v38 = vmul.f32 %v13735_v52, %v13735_v52  ;;  %v13753_v60 = vcombine.high %v13731_v44, %v13731_v44  ;;  %v9827_v57 = vmul.f32 %v13725_v59, %v13725_v59 }
0x2143   : > { %11813 = vtanh.f32 %v9893_v6  ;;  %v9826_v9 = vmul.f32 %v13739_v14, %v13739_v14  ;;  %v9828_v35 = vmul.f32 %v13731_v44, %v13731_v44  ;;  %v9841_v10 = vmul.f32 %v9823_v13, %v13722_v34 }
0x2144   : > { %11815 = vtanh.f32 %v9894_v43  ;;  %v9885_v22 = vadd.f32 %v9867_v25, %v13663_v11  ;;  %v9842_v54 = vmul.f32 %v9824_v17, %v13728_v2  ;;  %v9886_v20 = vadd.f32 %v9868_v26, %v13683_v3 }
0x2145   : > { %v9829_v24 = vmul.f32 %v13747_v15, %v13747_v15  ;;  %v9843_v53 = vmul.f32 %v9825_v38, %v13735_v52  ;;  %v9830_v16 = vmul.f32 %v13753_v60, %v13753_v60  ;;  %v9844_v55 = vmul.f32 %v9826_v9, %v13739_v14 }
0x2146   : > { %v9859_v36 = vmul.f32 0.044715, %v9841_v10  ;;  %v9845_v5 = vmul.f32 %v9827_v57, %v13725_v59  ;;  %v9846_v40 = vmul.f32 %v9828_v35, %v13731_v44  ;;  %v9903_v8 = vmul.f32 0.7978846, %v9885_v22 }
0x2147   : > { %v9860_v32 = vmul.f32 0.044715, %v9842_v54  ;;  %v9904_v58 = vmul.f32 0.7978846, %v9886_v20  ;;  %v9847_v21 = vmul.f32 %v9829_v24, %v13747_v15  ;;  %v9861_v31 = vmul.f32 0.044715, %v9843_v53 }
0x2148   : > { %v9848_v37 = vmul.f32 %v9830_v16, %v13753_v60  ;;  %v9862_v63 = vmul.f32 0.044715, %v9844_v55  ;;  %v9877_v51 = vadd.f32 %v9859_v36, %v13722_v34  ;;  %v9863_v19 = vmul.f32 0.044715, %v9845_v5 }
0x2149   : > { %v9864_v27 = vmul.f32 0.044715, %v9846_v40  ;;  %11817 = vtanh.f32 %v9903_v8  ;;  %v9878_v41 = vadd.f32 %v9860_v32, %v13728_v2  ;;  %v9865_v48 = vmul.f32 0.044715, %v9847_v21 }
0x214a   : > { %v11802_v23 = vpop.eup %11801  ;;  %11819 = vtanh.f32 %v9904_v58  ;;  %v9879_v25 = vadd.f32 %v9861_v31, %v13735_v52  ;;  %v9866_v13 = vmul.f32 0.044715, %v9848_v37  ;;  %v9880_v17 = vadd.f32 %v9862_v63, %v13739_v14 }
0x214b   : > { %v11804_v49 = vpop.eup %11803  ;;  %v9895_v26 = vmul.f32 0.7978846, %v9877_v51  ;;  %v9923_v9 = vadd.f32 1.0, %v11802_v23  ;;  %v9881_v35 = vadd.f32 %v9863_v19, %v13725_v59  ;;  %v9882_v10 = vadd.f32 %v9864_v27, %v13731_v44 }
0x214c   : > { %v11806_v7 = vpop.eup %11805  ;;  %v9924_v54 = vadd.f32 1.0, %v11804_v49  ;;  %v9896_v53 = vmul.f32 0.7978846, %v9878_v41  ;;  %v9883_v36 = vadd.f32 %v9865_v48, %v13747_v15  ;;  %v9897_v5 = vmul.f32 0.7978846, %v9879_v25 }
0x214d   : > { %v11808_v33 = vpop.eup %11807  ;;  %v9925_v20 = vadd.f32 1.0, %v11806_v7  ;;  %v9884_v8 = vadd.f32 %v9866_v13, %v13753_v60  ;;  %v9898_v32 = vmul.f32 0.7978846, %v9880_v17  ;;  %11821 = vtanh.f32 %v9895_v26 }
0x214e   : > { %v11810_v18 = vpop.eup %11809  ;;  %v9926_v43 = vadd.f32 1.0, %v11808_v33  ;;  %v9899_v31 = vmul.f32 0.7978846, %v9881_v35  ;;  %v9942_v37 = vmul.f32 0.5, %v9924_v54  ;;  %v9900_v49 = vmul.f32 0.7978846, %v9882_v10 }
0x214f   : > { %v11812_v6 = vpop.eup %11811  ;;  %v9927_v16 = vadd.f32 1.0, %v11810_v18  ;;  %v9943_v63 = vmul.f32 0.5, %v9925_v20  ;;  %11823 = vtanh.f32 %v9896_v53  ;;  %v9901_v19 = vmul.f32 0.7978846, %v9883_v36 }
0x2150   : > { %v11814_v38 = vpop.eup %11813  ;;  %v9928_v57 = vadd.f32 1.0, %v11812_v6  ;;  %v9944_v40 = vmul.f32 0.5, %v9926_v43  ;;  %11825 = vtanh.f32 %v9897_v5  ;;  %v9941_v27 = vmul.f32 0.5, %v9923_v9 }
0x2151   : > { %v11816_v22 = vpop.eup %11815  ;;  %v9929_v24 = vadd.f32 1.0, %v11814_v38  ;;  %v9945_v51 = vmul.f32 0.5, %v9927_v16  ;;  %v9902_v41 = vmul.f32 0.7978846, %v9884_v8  ;;  %11827 = vtanh.f32 %v9898_v32 }
0x2152   : > { %v9930_v55 = vadd.f32 1.0, %v11816_v22  ;;  %v9946_v23 = vmul.f32 0.5, %v9928_v57  ;;  %v9962_v33 = vmul.f32 %v9944_v40, %v13674_v56  ;;  %11829 = vtanh.f32 %v9899_v31 }
0x2153   : > { %v9947_v58 = vmul.f32 0.5, %v9929_v24  ;;  %v9960_v25 = vmul.f32 %v9942_v37, %v13654_v50  ;;  %v9961_v6 = vmul.f32 %v9943_v63, %v13658_v42  ;;  %11831 = vtanh.f32 %v9900_v49 }
0x2154   : > { %v9948_v21 = vmul.f32 0.5, %v9930_v55  ;;  %v9964_v18 = vmul.f32 %v9946_v23, %v13666_v12  ;;  %11833 = vtanh.f32 %v9901_v19  ;;  %v9959_v56 = vmul.f32 %v9941_v27, %v13648_v62 }
0x2155   : > { %v9965_v48 = vmul.f32 %v9947_v58, %v13670_v45  ;;  %v9996_v26 = vcombine.low %v9961_v6, %v9962_v33  ;;  %11835 = vtanh.f32 %v9902_v41 }
0x2156   : > { %v9966_v7 = vmul.f32 %v9948_v21, %v13687_v61  ;;  %v11818_v43 = vpop.eup %11817  ;;  %v9963_v61 = vmul.f32 %v9945_v51, %v13651_v1  ;;  %v9995_v12 = vcombine.low %v9959_v56, %v9960_v25 }
0x2157   : > { %v11820_v17 = vpop.eup %11819  ;;  %v10012_v9 = vrot.slane %v9996_v26, %v12357_v47  ;;  %v9939_v55 = vadd.f32 1.0, %v11818_v43 }
0x2158   : > { %v9998_v13 = vcombine.low %v9965_v48, %v9966_v7  ;;  %v9997_v38 = vcombine.low %v9963_v61, %v9964_v18  ;;  %v10005_v57 = vrot.slane %v9995_v12, %v12357_v47  ;;  %v9940_v32 = vadd.f32 1.0, %v11820_v17 }
0x2159   : > { %v9957_v41 = vmul.f32 0.5, %v9939_v55 }
0x215a   : > { %v10026_v45 = vrot.slane %v9998_v13, %v12357_v47  ;;  %v11822_v50 = vpop.eup %11821  ;;  %v10019_v42 = vrot.slane %v9997_v38, %v12357_v47  ;;  %v10027_v54 = vcombine.low %v10005_v57, %v10012_v9  ;;  %v9958_v13 = vmul.f32 0.5, %v9940_v32 }
0x215b   : > { %v9931_v35 = vadd.f32 1.0, %v11822_v50  ;;  %v9975_v12 = vmul.f32 %v9957_v41, %v13663_v11 }
0x215c   : > { %v11824_v1 = vpop.eup %11823  ;;  %v10028_v10 = vcombine.low %v10019_v42, %v10026_v45  ;;  %v10035_v51 = vrot.slane %v10027_v54, %v12357_v47 }
0x215d   : > { %v11826_v22 = vpop.eup %11825  ;;  %v9932_v20 = vadd.f32 1.0, %v11824_v1  ;;  %v9949_v62 = vmul.f32 0.5, %v9931_v35 }
0x215e   : > { %v11828_v24 = vpop.eup %11827  ;;  %v9933_v53 = vadd.f32 1.0, %v11826_v22  ;;  %v10042_v21 = vrot.slane %v10028_v10, %v12357_v47 }
0x215f   : > { %v11830_v16 = vpop.eup %11829  ;;  %v9934_v36 = vadd.f32 1.0, %v11828_v24  ;;  %v9950_v5 = vmul.f32 0.5, %v9932_v20  ;;  %v9967_v40 = vmul.f32 %v9949_v62, %v13722_v34 }
0x2160   : > { %v11832_v8 = vpop.eup %11831  ;;  %v9935_v23 = vadd.f32 1.0, %v11830_v16  ;;  %v9951_v58 = vmul.f32 0.5, %v9933_v53  ;;  %v10043_v61 = vcombine.low %v10035_v51, %v10042_v21 }
0x2161   : > { %v11834_v31 = vpop.eup %11833  ;;  %v9936_v37 = vadd.f32 1.0, %v11832_v8  ;;  %v9952_v63 = vmul.f32 0.5, %v9934_v36  ;;  %v9968_v49 = vmul.f32 %v9950_v5, %v13728_v2  ;;  %v10050_v34 = vrot.slane %v9967_v40, %v12357_v47 }
0x2162   : > { %v11836_v7 = vpop.eup %11835  ;;  %v9937_v19 = vadd.f32 1.0, %v11834_v31  ;;  %v9953_v27 = vmul.f32 0.5, %v9935_v23  ;;  %v9969_v33 = vmul.f32 %v9951_v58, %v13735_v52 }
0x2163   : > { %v9938_v18 = vadd.f32 1.0, %v11836_v7  ;;  %v9954_v48 = vmul.f32 0.5, %v9936_v37  ;;  %v9970_v25 = vmul.f32 %v9952_v63, %v13739_v14  ;;  %v10057_v52 = vrot.slane %v10050_v34, %v12357_v47 }
0x2164   : > { %v9955_v6 = vmul.f32 0.5, %v9937_v19  ;;  %v9971_v43 = vmul.f32 %v9953_v27, %v13725_v59  ;;  %v10058_v56 = vcombine.low %v9968_v49, %v9969_v33  ;;  %v9976_v59 = vmul.f32 %v9958_v13, %v13683_v3 }
0x2165   : > { %v9956_v2 = vmul.f32 0.5, %v9938_v18  ;;  %v9972_v17 = vmul.f32 %v9954_v48, %v13731_v44  ;;  %v10125_v50 = vpack.c.bf16 %v10057_v52, %v10043_v61  ;;  %v11092_v54 = vpack.c.bf16 %v10057_v52, %v10057_v52 }
0x2166   : > { %v9973_v26 = vmul.f32 %v9955_v6, %v13747_v15  ;;  %v10059_v38 = vcombine.low %v9970_v25, %v9971_v43  ;;  %v10068_v57 = vrot.slane %v10058_v56, %v12357_v47  ;;  %v10113_v11 = vrot.slane %v9976_v59, %v12357_v47 }
0x2167   : > { %v9974_v45 = vmul.f32 %v9956_v2, %v13753_v60  ;;  %v10152_v1 = vrot.slane %v10125_v50, %v12357_v47  ;;  %v10159_v53 = vrot.slane %v11092_v54, %v12357_v47 }
0x2168   : > { %v10060_v9 = vcombine.low %v9972_v17, %v9973_v26  ;;  %v10075_v14 = vrot.slane %v10059_v38, %v12357_v47  ;;  %v10120_v3 = vrot.slane %v10113_v11, %v12357_v47 }
0x2169   : > { %v10061_v42 = vcombine.low %v9974_v45, %v9975_v12  ;;  %v10160_v20 = vcombine.high %v10152_v1, %v10152_v1  ;;  %v10167_v36 = vrot.slane %v10152_v1, %v12357_v47  ;;  %v10174_v32 = vrot.slane %v10159_v53, %v12357_v47 }
0x216a   : > { %v10082_v44 = vrot.slane %v10060_v9, %v12357_v47  ;;  %v10090_v35 = vcombine.low %v10068_v57, %v10075_v14  ;;  %v11093_v5 = vpack.c.bf16 %v10120_v3, %v10120_v3 }
0x216b   : > { %v10089_v15 = vrot.slane %v10061_v42, %v12357_v47  ;;  %v10181_v16 = vrot.slane %v10160_v20, %v12357_v47 }
0x216c   : > { %v10098_v60 = vrot.slane %v10090_v35, %v12357_v47  ;;  %v10198_v49 = vrot.slane %v11093_v5, %v12357_v47 }
0x216d   : > { %v10091_v10 = vcombine.low %v10082_v44, %v10089_v15  ;;  %v10250_v23 = vcombine.low %v10167_v36, %v10181_v16  ;;  %v11099_v58 = vcombine.high %v10167_v36, %v10181_v16  ;;  %v10668_v44 = vrot.slane %v13585_v46, 5 }
0x216e   : > { %v10213_v6 = vrot.slane %v10198_v49, %v12357_v47 }
0x216f   : > { %v10105_v22 = vrot.slane %v10091_v10, %v12357_v47  ;;  %v10260_v33 = vrot.slane %v10250_v23, %v12357_v47  ;;  %v10267_v34 = vrot.slane %v11099_v58, %v12357_v47 }
0x2171   : > { %v10106_v62 = vcombine.low %v10098_v60, %v10105_v22  ;;  %v10282_v17 = vcombine.low %v10260_v33, %v10267_v34 }
0x2173   : > { %v10126_v24 = vpack.c.bf16 %v10120_v3, %v10106_v62  ;;  %v10290_v38 = vrot.slane %v10282_v17, %v12357_v47  ;;  %v10672_v3 = vrot.slane %v10668_v44, %v12341_v30 }
0x2175   : > { %v10191_v55 = vrot.slane %v10126_v24, %v12357_v47 }
0x2177   : > { %v10199_v40 = vcombine.high %v10191_v55, %v10191_v55  ;;  %v10206_v8 = vrot.slane %v10191_v55, %v12357_v47 }
0x2179   : > { %v10220_v21 = vrot.slane %v10199_v40, %v12357_v47  ;;  %v10221_v31 = vcombine.high %v10206_v8, %v10206_v8  ;;  %v10233_v37 = vunpack.i.h.s16 %v10206_v8  ;;  %v11094_v63 = vpack.i.b16 %v10206_v8, %v10174_v32 }
0x217b   : > { %v10222_v51 = vcombine.high %v10220_v21, %v10220_v21  ;;  %v10235_v7 = vunpack.i.h.s16 %v10220_v21  ;;  %v10237_v19 = vunpack.i.h.s16 %v10221_v31  ;;  %v11095_v27 = vpack.i.b16 %v10220_v21, %v10233_v37 }
0x217d   : > { %v11096_v41 = vpack.i.b16 %v10221_v31, %v10235_v7  ;;  %v11097_v18 = vpack.i.b16 %v10222_v51, %v10237_v19  ;;  %v10252_v48 = vcombine.low %v11094_v63, %v11095_v27  ;;  %v10239_v25 = vunpack.i.h.s16 %v10222_v51 }
0x217f   : > { %v10253_v43 = vcombine.low %v11096_v41, %v11097_v18  ;;  %v11098_v61 = vpack.i.b16 %v10213_v6, %v10239_v25  ;;  %v10274_v13 = vrot.slane %v10252_v48, %v12357_v47 }
0x2181   : > { %v10281_v2 = vrot.slane %v10253_v43, %v12357_v47  ;;  %v10305_v26 = vrot.slane %v11098_v61, %v12357_v47 }
0x2183   : > { %v10283_v56 = vcombine.low %v10274_v13, %v10281_v2  ;;  %v10312_v45 = vrot.slane %v10305_v26, %v12357_v47 }
0x2185   : > { %v10297_v52 = vrot.slane %v10283_v56, %v12357_v47 }
0x2187   : > { %v10298_v12 = vcombine.low %v10290_v38, %v10297_v52 }
0x2189   : > { %11569 = vmatprep.mubr.bf16.mxu0 %v10298_v12 }
0x218a   : > { %11570 = vmatmul.mubr.bf16.vlgmr.msra.gmra.mxu0 %v10312_v45 }
0x224a   : > { %v11571_v9 = vpop.f32.mrf.mxu0 }
0x224b   : > { %v10518_v14 = vrot.slane %v11571_v9, %v12357_v47 }
0x224c   : > { %v10397_v50 = vpop.f32.mrf.mxu0 }
0x224d   : > { %v10519_v59 = vcombine.high %v10518_v14, %v10518_v14  ;;  %v10414_v42 = vcombine.high %v10397_v50, %v10397_v50  ;;  %v10421_v57 = vrot.slane %v10397_v50, %v12357_v47  ;;  %v10526_v6 = vrot.slane %v10518_v14, %v12357_v47 }
0x224e   : > { %v11572_v15 = vpop.f32.mrf.mxu0 }
0x224f   : > { %v10533_v35 = vrot.slane %v10519_v59, %v12357_v47  ;;  %v10428_v1 = vrot.slane %v10414_v42, %v12357_v47  ;;  %v10429_v11 = vcombine.high %v10421_v57, %v10421_v57  ;;  %v10437_v54 = vrot.slane %v10421_v57, %v12357_v47 }
0x2250   : > { %v10400_v10 = vpop.f32.mrf.mxu0 }
0x2251   : > { %v10652_v60 = vrot.slane %v10533_v35, %v12357_v47  ;;  %v10430_v22 = vcombine.high %v10428_v1, %v10428_v1  ;;  %v10451_v20 = vrot.slane %v10429_v11, %v12357_v47  ;;  %v10444_v62 = vrot.slane %v10428_v1, %v12357_v47 }
0x2252   : > { %v10463_v24 = vcombine.high %v10400_v10, %v10400_v10  ;;  %v10470_v46 = vrot.slane %v10400_v10, %v12357_v47 }
0x2253   : > { %v10659_v53 = vrot.slane %v10652_v60, %v12357_v47  ;;  %v10458_v16 = vrot.slane %v10430_v22, %v12357_v47  ;;  %v10534_v55 = vcombine.low %v10437_v54, %v10451_v20  ;;  %v11108_v36 = vcombine.high %v10437_v54, %v10451_v20 }
0x2254   : > { %v10477_v5 = vrot.slane %v10463_v24, %v12357_v47  ;;  %v10478_v40 = vcombine.high %v10470_v46, %v10470_v46  ;;  %v10486_v8 = vrot.slane %v10470_v46, %v12357_v47 }
0x2255   : > { %v10667_v32 = vadd.f32 %v10659_v53, %v13555_v29  ;;  %v10536_v23 = vcombine.low %v10444_v62, %v10458_v16  ;;  %v11109_v58 = vcombine.high %v10444_v62, %v10458_v16  ;;  %v10544_v21 = vrot.slane %v10534_v55, %v12357_v47 }
0x2256   : > { %v10551_v31 = vrot.slane %v11108_v36, %v12357_v47  ;;  %v10479_v37 = vcombine.high %v10477_v5, %v10477_v5  ;;  %v10493_v63 = vrot.slane %v10477_v5, %v12357_v47  ;;  %v10500_v49 = vrot.slane %v10478_v40, %v12357_v47 }
0x2257   : > { %v10677_v51 = vadd.f32 %v10672_v3, %v10667_v32  ;;  %v10558_v7 = vrot.slane %v10536_v23, %v12357_v47  ;;  %v10565_v19 = vrot.slane %v11109_v58, %v12357_v47  ;;  %v10508_v27 = vcombine.high %v10486_v8, %v10486_v8 }
0x2258   : > { %v10566_v33 = vcombine.low %v10544_v21, %v10551_v31  ;;  %v10507_v29 = vrot.slane %v10479_v37, %v12357_v47  ;;  %v10509_v34 = vcombine.high %v10493_v63, %v10493_v63  ;;  %v10510_v41 = vcombine.high %v10500_v49, %v10500_v49 }
0x2259   : > { %10681 = vst.msk [vmem:[#allocation2 + $0x18] sm:$0x1] %vm1926_vm8, %v10677_v51  ;;  %v10567_v18 = vcombine.low %v10558_v7, %v10565_v19  ;;  %v10589_v48 = vrot.slane %v10486_v8, %v12357_v47  ;;  %v10597_v25 = vcombine.low %v10500_v49, %v10508_v27 }
0x225a   : > { %v10511_v43 = vcombine.high %v10507_v29, %v10507_v29  ;;  %v10598_v61 = vcombine.low %v10510_v41, %v10493_v63  ;;  %v10599_v13 = vcombine.low %v10507_v29, %v10509_v34  ;;  %v10574_v2 = vrot.slane %v10566_v33, %v12357_v47 }
0x225b   : > { %v10581_v17 = vrot.slane %v10567_v18, %v12357_v47  ;;  %v10596_v56 = vrot.slane %v10589_v48, %v12357_v47  ;;  %v10607_v38 = vrot.slane %v10597_v25, %v12357_v47 }
0x225c   : > { %v10600_v26 = vcombine.low %v10511_v43, %v10526_v6  ;;  %v10614_v52 = vrot.slane %v10598_v61, %v12357_v47  ;;  %v10621_v9 = vrot.slane %v10599_v13, %v12357_v47 }
0x225d   : > { %v10582_v12 = vcombine.low %v10574_v2, %v10581_v17  ;;  %v10665_v45 = vadd.f32 %v10596_v56, %v13560_v28 }
0x225e   : > { %v10628_v14 = vrot.slane %v10600_v26, %v12357_v47  ;;  %v10629_v50 = vcombine.low %v10607_v38, %v10614_v52 }
0x225f   : > { %v10664_v59 = vadd.f32 %v10582_v12, %v13567_v4  ;;  %v10675_v42 = vadd.f32 %v10672_v3, %v10665_v45 }
0x2260   : > { %v10630_v57 = vcombine.low %v10621_v9, %v10628_v14  ;;  %v10637_v15 = vrot.slane %v10629_v50, %v12357_v47 }
0x2261   : > { %v10674_v44 = vadd.f32 %v10672_v3, %v10664_v59  ;;  %10679 = vst.msk [vmem:[#allocation2 + $0x8] sm:$0x1] %vm1926_vm8, %v10675_v42 }
0x2262   : > { %v10644_v35 = vrot.slane %v10630_v57, %v12357_v47 }
0x2263   : > { %10678 = vst.msk [vmem:[#allocation2] sm:$0xff] %vm1922_vm7, %v10674_v44 }
0x2264   : > { %v10645_v1 = vcombine.low %v10637_v15, %v10644_v35 }
0x2266   : > { %v10666_v28 = vadd.f32 %v10645_v1, %v13570_v39  ;;  %10685 = sbr.rel (%p11110_p5) target bundleno = 9128 (0x23a8), region = 88 }
0x2268   : > { %v10676_v11 = vadd.f32 %v10672_v3, %v10666_v28 }
0x226a   : > { %10680 = vst.msk [vmem:[#allocation2 + $0x10] sm:$0xff] %vm1922_vm7, %v10676_v11 }
0x226b   : > { %v10686_v4 = vsel %vm1922_vm7, %v10674_v44, 0.0  ;;  %v10692_v10 = vsel %vm1922_vm7, %v10676_v11, 0.0  ;;  %v10689_v60 = vsel %vm1926_vm8, %v10675_v42, 0.0  ;;  %v10695_v47 = vsel %vm1926_vm8, %v10677_v51, 0.0 }
0x226c   : > { %10687 = vadd.xlane.f32.xlu0 %v10686_v4  ;;  %10693 = vadd.xlane.f32.xlu1 %v10692_v10  ;;  %v10742_v37 = vrot.slane %v11975_v0, %v12341_v30  ;;  %v10750_v25 = vrot.slane %v11975_v0, 1 }
0x226e   : > { %v10754_v13 = vrot.slane %v10750_v25, %v12341_v30 }
0x2270   : > { %10690 = vadd.xlane.f32.xlu0 %v10689_v60  ;;  %10696 = vadd.xlane.f32.xlu1 %v10695_v47 }
0x22f5   : > { %v10688_v22 = vpop.xlane.xlu0 %10687  ;;  %v10694_v39 = vpop.xlane.xlu1 %10693 }
0x22f6   : > { %v10698_v54 = vmul.f32 0.03125, %v10688_v22  ;;  %v10700_v20 = vmul.f32 0.03125, %v10694_v39 }
0x22f8   : > { %v10702_v3 = vsub.f32 %v10674_v44, %v10698_v54  ;;  %v10704_v62 = vsub.f32 %v10676_v11, %v10700_v20 }
0x22f9   : > { %v10691_v24 = vpop.xlane.xlu0 %10690  ;;  %v10697_v46 = vpop.xlane.xlu1 %10696 }
0x22fa   : > { %v10699_v53 = vmul.f32 0.03125, %v10691_v24  ;;  %v10701_v16 = vmul.f32 0.03125, %v10697_v46  ;;  %v10706_v55 = vmul.f32 %v10702_v3, %v10702_v3  ;;  %v10708_v36 = vmul.f32 %v10704_v62, %v10704_v62 }
0x22fc   : > { %v10703_v5 = vsub.f32 %v10675_v42, %v10699_v53  ;;  %v10705_v40 = vsub.f32 %v10677_v51, %v10701_v16  ;;  %v10710_v8 = vsel %vm1922_vm7, %v10706_v55, 0.0  ;;  %v10716_v32 = vsel %vm1922_vm7, %v10708_v36, 0.0 }
0x22fd   : > { %10711 = vadd.xlane.f32.xlu0 %v10710_v8 }
0x22fe   : > { %v10707_v23 = vmul.f32 %v10703_v5, %v10703_v5  ;;  %v10709_v58 = vmul.f32 %v10705_v40, %v10705_v40 }
0x2300   : > { %v10713_v21 = vsel %vm1926_vm8, %v10707_v23, 0.0  ;;  %v10719_v31 = vsel %vm1926_vm8, %v10709_v58, 0.0 }
0x2301   : > { %10717 = vadd.xlane.f32.xlu0 %v10716_v32  ;;  %10714 = vadd.xlane.f32.xlu1 %v10713_v21 }
0x2305   : > { %10720 = vadd.xlane.f32.xlu1 %v10719_v31 }
0x2317   : > { %10743 = vrot.lane.b32.xlu0 %v10742_v37, %s11880_s6 }
0x2386   : > { %v10712_v63 = vpop.xlane.xlu0 %10711 }
0x2387   : > { %v10722_v49 = vmul.f32 0.03125, %v10712_v63 }
0x2389   : > { %v10726_v51 = vadd.f32 1e-05, %v10722_v49 }
0x238a   : > { %v10715_v7 = vpop.xlane.xlu1 %10714  ;;  %v10718_v19 = vpop.xlane.xlu0 %10717 }
0x238b   : > { %11843 = vrsqrt.f32 %v10726_v51  ;;  %v10723_v27 = vmul.f32 0.03125, %v10715_v7  ;;  %v10724_v33 = vmul.f32 0.03125, %v10718_v19 }
0x238d   : > { %v10727_v29 = vadd.f32 1e-05, %v10723_v27  ;;  %v10728_v34 = vadd.f32 1e-05, %v10724_v33 }
0x238e   : > { %v10721_v41 = vpop.xlane.xlu1 %10720  ;;  %v10744_v43 = vpop.permute.xlu0 %10743 }
0x238f   : > { %11845 = vrsqrt.f32 %v10727_v29  ;;  %v10725_v18 = vmul.f32 0.03125, %v10721_v41 }
0x2390   : > { %11847 = vrsqrt.f32 %v10728_v34 }
0x2391   : > { %v10729_v48 = vadd.f32 1e-05, %v10725_v18 }
0x2393   : > { %11849 = vrsqrt.f32 %v10729_v48 }
0x2398   : > { %v11844_v6 = vpop.eup %11843 }
0x2399   : > { %v10734_v61 = vmul.f32 %v11844_v6, %v10702_v3 }
0x239b   : > { %v10746_v2 = vmul.f32 %v10744_v43, %v10734_v61 }
0x239c   : > { %v11846_v17 = vpop.eup %11845 }
0x239d   : > { %v11848_v56 = vpop.eup %11847  ;;  %v10735_v26 = vmul.f32 %v11846_v17, %v10703_v5  ;;  %v10756_v38 = vadd.f32 %v10754_v13, %v10746_v2 }
0x239e   : > { %v10736_v52 = vmul.f32 %v11848_v56, %v10704_v62 }
0x239f   : > { %v10747_v12 = vmul.f32 %v10744_v43, %v10735_v26  ;;  %10760 = vst.msk [vmem:[%s13937_s30] sm:$0xff] %vm1922_vm7, %v10756_v38 }
0x23a0   : > { %v11850_v45 = vpop.eup %11849  ;;  %v10748_v9 = vmul.f32 %v10744_v43, %v10736_v52 }
0x23a1   : > { %v10737_v0 = vmul.f32 %v11850_v45, %v10705_v40  ;;  %v10757_v14 = vadd.f32 %v10754_v13, %v10747_v12 }
0x23a2   : > { %v10758_v50 = vadd.f32 %v10754_v13, %v10748_v9 }
0x23a3   : > { %v10749_v59 = vmul.f32 %v10744_v43, %v10737_v0  ;;  %10761 = vst.msk [vmem:[%s13937_s30 + $0x8] sm:$0x1] %vm1926_vm8, %v10757_v14 }
0x23a4   : > { %10762 = vst.msk [vmem:[%s13937_s30 + $0x10] sm:$0xff] %vm1922_vm7, %v10758_v50 }
0x23a5   : > { %v10759_v30 = vadd.f32 %v10754_v13, %v10749_v59 }
0x23a7   : > { %10763 = vst.msk [vmem:[%s13937_s30 + $0x18] sm:$0x1] %vm1926_vm8, %v10759_v30 }
0x23a8 PF: > { %s13938_s20 = sld [smem:[#allocation4_spill]] }
0x23ae   : > { %s25_s18 = sadd.s32 1, %s13938_s20  }
0x23af   : > { %p22_p6 = scmp.ge.s32.totalorder %s25_s18, 4  }
0x23b1   :  { %24 = sbr.rel (!%p22_p6) target bundleno = 6 (0x6), region = 135 }

</bundles_post_ra>
